<compile_context>
chip_gen: v5e
topology: v5e:2x2
jax: 0.10.0
libtpu: 0.0.40
codegen_flags: <defaults>
</compile_context>

<pallas_src>
import math
from functools import partial

import jax
import jax.numpy as jnp
from jax.experimental import pallas as pl
from jax.experimental.pallas import tpu as pltpu


# ----------------------------------------------------------------------------
# Lane-shift helper (direction of pltpu.roll is probed at runtime; safe fallback)
# ----------------------------------------------------------------------------
_ROLL_MODE = ["jnp"]  # "pos": pltpu.roll == jnp.roll, "neg": opposite, "jnp": fallback


def _dx_shift(x, amount):
    """out[..., j] = x[..., j - amount] (wrap-around), amount in {+1, -1}."""
    n = x.shape[-1]
    mode = _ROLL_MODE[0]
    if mode == "jnp":
        return jnp.roll(x, amount, axis=-1)
    shift = amount % n
    if mode == "neg":
        shift = (n - shift) % n
    return pltpu.roll(x, shift, 1)


def _detect_roll_mode():
    x = jnp.arange(8 * 128, dtype=jnp.float32).reshape(8, 128)
    try:
        def k(x_ref, o_ref):
            o_ref[...] = pltpu.roll(x_ref[...], 1, 1)
        got = pl.pallas_call(
            k, out_shape=jax.ShapeDtypeStruct((8, 128), jnp.float32))(x)
    except Exception:
        return "jnp"
    if bool(jnp.array_equal(got, jnp.roll(x, 1, axis=1))):
        return "pos"
    if bool(jnp.array_equal(got, jnp.roll(x, -1, axis=1))):
        return "neg"
    return "jnp"


# ----------------------------------------------------------------------------
# Pallas kernel: fused 3x3 / stride-1 / pad-1 conv (+bias, +SiLU) on a row tile
# ----------------------------------------------------------------------------
def _conv3x3_kernel(top_ref, x_ref, bot_ref, w_ref, b_ref, m_ref, o_ref, *, act):
    """top/bot: (Cin, 2W) row pairs containing the halo rows (zeroed at borders).
    x_ref: (Cin, T*W) main tile (spatial dims flattened into the lane axis).
    w_ref: (Cout, 9*Cinp) bf16 taps, group k = 3*dy + dx, channels padded to Cinp.
    b_ref: (Cout, 1) f32.  m_ref: (2, (T+2)*W) bf16 edge masks (not-first/not-last col).
    o_ref: (Cout, T*W)."""
    i = pl.program_id(1)
    nt = pl.num_programs(1)
    cin, tw = x_ref.shape
    wdt = top_ref.shape[1] // 2
    cout, k = w_ref.shape
    cinp = k // 9
    win = tw + 2 * wdt

    # Row halos: real neighbour rows inside the image, zeros at image borders.
    tv = top_ref[...]
    bv = bot_ref[...]
    top = tv[:, wdt:] * (i > 0).astype(tv.dtype)          # row i*T - 1
    bot = bv[:, :wdt] * (i < nt - 1).astype(bv.dtype)     # row (i+1)*T

    # Haloed window (Cin, (T+2)*W) -- all concatenation offsets are W-aligned.
    xw = jnp.concatenate([top, x_ref[...], bot], axis=1)
    if cinp > cin:                                        # pad channels to sublane tile
        xw = jnp.concatenate(
            [xw, jnp.zeros((cinp - cin, win), xw.dtype)], axis=0)

    # +-1 column taps via lane roll + image-edge masks (conv zero padding).
    ml = m_ref[0:1, :]
    mr = m_ref[1:2, :]
    xl = _dx_shift(xw, 1) * ml       # input column x-1  (dx = 0 tap)
    xr = _dx_shift(xw, -1) * mr      # input column x+1  (dx = 2 tap)

    # im2col in VMEM: lane-aligned slices only, k = 3*dy + dx ordering.
    slabs = []
    for dy in range(3):
        lo = dy * wdt
        slabs += [xl[:, lo:lo + tw], xw[:, lo:lo + tw], xr[:, lo:lo + tw]]
    patches = jnp.concatenate(slabs, axis=0)              # (9*Cinp, T*W)

    # Single weight-stationary MXU matmul, f32 accumulation.
    acc = jnp.dot(w_ref[...], patches, preferred_element_type=jnp.float32)
    acc = acc + b_ref[...]
    if act:                                               # SiLU
        acc = acc * jax.nn.sigmoid(acc)
    o_ref[...] = acc.astype(o_ref.dtype)


def _pick_rows(h, w, cinp, cout, budget=8 * 1024 * 1024):
    """Largest even divisor T of h with nt >= 2 and a bounded VMEM footprint."""
    per_row = (20 * cinp + 8 * cout + 4) * w * 2          # patches + windows + acc, bytes
    tmax = max(2, min(budget // max(per_row, 1), h // 2, 256))
    t = 2
    for cand in range(2, tmax + 1, 2):
        if h % cand == 0:
            t = cand
    return t


def conv3x3(x, wmat, bias, *, act, out_dtype=jnp.bfloat16):
    """x: (N, Cin, H, W) bf16; wmat: (Cout, 9*Cinp) bf16; bias: (Cout,) f32."""
    N, Cin, H, W = x.shape
    Cout, K = wmat.shape
    assert K % 9 == 0 and K // 9 >= Cin
    # TODO(synk): general multiple-of-64 inputs can yield per-level widths that are
    # only multiples of 8; those would need batch/row folding of the halo blocks.
    assert H % 2 == 0 and (2 * W) % 128 == 0, (H, W)

    Cinp = K // 9
    T = _pick_rows(H, W, Cinp, Cout)
    nt = H // T
    half = T // 2
    WIN = (T + 2) * W

    xf = x.reshape(N, Cin, H * W)
    col = jnp.arange(WIN, dtype=jnp.int32) % W
    masks = jnp.stack([col != 0, col != (W - 1)], axis=0).astype(jnp.bfloat16)
    bias2d = bias.astype(jnp.float32).reshape(Cout, 1)

    def top_map(n, i):   # 2-row block containing row i*T - 1 (second row of the pair)
        return (n, 0, jnp.maximum(i * half - 1, 0))

    def main_map(n, i):
        return (n, 0, i)

    def bot_map(n, i):   # 2-row block containing row (i+1)*T (first row of the pair)
        return (n, 0, jnp.minimum((i + 1) * half, H // 2 - 1))

    out = pl.pallas_call(
        partial(_conv3x3_kernel, act=act),
        out_shape=jax.ShapeDtypeStruct((N, Cout, H * W), out_dtype),
        grid_spec=pltpu.PrefetchScalarGridSpec(
            num_scalar_prefetch=0,
            grid=(N, nt),
            in_specs=[
                pl.BlockSpec((None, Cin, 2 * W), top_map),
                pl.BlockSpec((None, Cin, T * W), main_map),
                pl.BlockSpec((None, Cin, 2 * W), bot_map),
                pl.BlockSpec((Cout, K), lambda n, i: (0, 0)),
                pl.BlockSpec((Cout, 1), lambda n, i: (0, 0)),
                pl.BlockSpec((2, WIN), lambda n, i: (0, 0)),
            ],
            out_specs=pl.BlockSpec((None, Cout, T * W), main_map),
        ),
        compiler_params=pltpu.CompilerParams(
            dimension_semantics=("parallel", "parallel"),
            vmem_limit_bytes=32 * 1024 * 1024),
    )(xf, xf, xf, wmat, bias2d, masks)
    return out.reshape(N, Cout, H, W)


# ----------------------------------------------------------------------------
# Weight / layout glue (plain JAX, tiny)
# ----------------------------------------------------------------------------
def _ceil_to(x, m):
    return ((x + m - 1) // m) * m


def _flatten_taps(w):
    """(3, 3, Cin, Cout) -> (Cout, 9*Cinp), tap order k = 3*dy + dx, Cin padded to 16."""
    _, _, cin, cout = w.shape
    cinp = _ceil_to(cin, 16)
    wp = jnp.zeros((3, 3, cinp, cout), w.dtype).at[:, :, :cin, :].set(w)
    return jnp.transpose(wp, (3, 0, 1, 2)).reshape(cout, 9 * cinp)


def _stride2_as_stride1(w):
    """Stride-2 3x3 conv -> stride-1 3x3 conv over the space-to-depth input."""
    _, _, cin, cout = w.shape
    w3 = jnp.zeros((3, 3, 4 * cin, cout), w.dtype)
    for dy in range(3):
        r, a = (0, 1) if dy == 0 else (1, dy - 1)
        for dx in range(3):
            s, b = (0, 1) if dx == 0 else (1, dx - 1)
            ch = (2 * a + b) * cin
            w3 = w3.at[r, s, ch:ch + cin, :].set(w[dy, dx])
    return w3


def _subpixel_weight(w):
    """Fold nearest-x2 upsample + 3x3 conv into a low-res 3x3 conv with 4*Cout
    phase-decomposed outputs (channel index = (2a+b)*Cout + o)."""
    _, _, cin, cout = w.shape
    maps = ({0: (0,), 1: (1, 2), 2: ()},      # phase 0
            {0: (), 1: (0, 1), 2: (2,)})      # phase 1
    out = jnp.zeros((3, 3, cin, 4, cout), w.dtype)
    for a in (0, 1):
        for b in (0, 1):
            for r in range(3):
                for s in range(3):
                    acc = None
                    for dy in maps[a][r]:
                        for dx in maps[b][s]:
                            acc = w[dy, dx] if acc is None else acc + w[dy, dx]
                    if acc is not None:
                        out = out.at[r, s, :, 2 * a + b, :].set(acc)
    return out.reshape(3, 3, cin, 4 * cout)


def space_to_depth(x):
    """(N, C, H, W) -> (N, 4C, H/2, W/2), channel order (2a+b)*C + c."""
    N, C, H, W = x.shape
    x = x.reshape(N, C, H // 2, 2, W // 2, 2)
    x = jnp.transpose(x, (0, 3, 5, 1, 2, 4))
    return x.reshape(N, 4 * C, H // 2, W // 2)


def depth_to_space(x):
    """(N, 4C, H, W) -> (N, C, 2H, 2W), inverse of space_to_depth."""
    # TODO(synk): still an XLA transpose between decoder layers; could be folded
    # into the next layer's kernel for another small HBM saving.
    N, C4, H, W = x.shape
    C = C4 // 4
    x = x.reshape(N, 2, 2, C, H, W)
    x = jnp.transpose(x, (0, 3, 4, 1, 5, 2))
    return x.reshape(N, C, 2 * H, 2 * W)


def bicubic_resize_nchw(x, hw):
    # TODO(synk): not bit-identical to torch F.interpolate(mode='bicubic').
    N, C, _, _ = x.shape
    return jax.image.resize(x, (N, C, hw[0], hw[1]), method="bicubic",
                            antialias=False)


# ----------------------------------------------------------------------------
# Synthetic DiffUIE parameters (deterministic; stands in for SD-turbo VAE)
# ----------------------------------------------------------------------------
C1, C2, CZ, NUM_TASKS = 8, 16, 4, 4
TASKS = {"deblur": 0, "denoise": 1, "derain": 2, "lowlight": 3}


def init_params(key):
    # TODO(synk): pretrained AutoencoderKL weights replaced by a small synthetic
    # skip-connected conv autoencoder (3->8->16->4 encoder, mirrored decoder).
    def conv_init(k, cin, cout):
        kw, kb = jax.random.split(k)
        scale = 1.0 / math.sqrt(9 * cin)
        return (jax.random.normal(kw, (3, 3, cin, cout), jnp.float32) * scale,
                jax.random.normal(kb, (cout,), jnp.float32) * 0.01)

    keys = jax.random.split(key, 7)
    p = {}
    p["enc1"] = conv_init(keys[0], 3, C1)
    p["enc2"] = conv_init(keys[1], C1, C2)
    p["enc3"] = conv_init(keys[2], C2, CZ)
    p["dec1"] = conv_init(keys[3], CZ, C2)
    p["dec2"] = conv_init(keys[4], C2, C1)
    p["dec3"] = conv_init(keys[5], C1, 3)
    # TODO(synk): task-conditioned decoding ("tedit") reduced to a per-task bias.
    p["task_emb"] = jax.random.normal(keys[6], (NUM_TASKS, CZ), jnp.float32) * 0.02
    return p


# ----------------------------------------------------------------------------
# DiffUIE forward
# ----------------------------------------------------------------------------
def diffuie_forward(params, images, task, *, min_size=512, multiple=64):
    """images: (N, 3, H, W) float32 NCHW -> (N, 3, H, W) float32 NCHW."""
    _, _, org_h, org_w = images.shape
    h, w = org_h, org_w

    # 1) upscale so min(h, w) >= min_size (bicubic, align_corners=False).
    if h < min_size or w < min_size:
        scale = min_size / min(h, w)
        h, w = round(h * scale), round(w * scale)
        images = bicubic_resize_nchw(images, (h, w))

    # 2) reflect-pad so spatial dims become multiples of `multiple`.
    pad_h = (multiple - h % multiple) % multiple
    pad_w = (multiple - w % multiple) % multiple
    if pad_h or pad_w:
        assert pad_h < h and pad_w < w
        images = jnp.pad(images, ((0, 0), (0, 0), (0, pad_h), (0, pad_w)),
                         mode="reflect")

    x = images.astype(jnp.bfloat16)

    bf = jnp.bfloat16
    we1 = _flatten_taps(_stride2_as_stride1(params["enc1"][0])).astype(bf)
    we2 = _flatten_taps(_stride2_as_stride1(params["enc2"][0])).astype(bf)
    we3 = _flatten_taps(_stride2_as_stride1(params["enc3"][0])).astype(bf)
    wd1 = _flatten_taps(_subpixel_weight(params["dec1"][0])).astype(bf)
    wd2 = _flatten_taps(_subpixel_weight(params["dec2"][0])).astype(bf)
    wd3 = _flatten_taps(_subpixel_weight(params["dec3"][0])).astype(bf)

    # 3) encode (stride-2 conv == stride-1 conv on space-to-depth input).
    m1 = conv3x3(space_to_depth(x), we1, params["enc1"][1], act=True)
    m2 = conv3x3(space_to_depth(m1), we2, params["enc2"][1], act=True)
    z0 = conv3x3(space_to_depth(m2), we3, params["enc3"][1], act=False)

    # 4) diffusion / ControlNet branch: control_type is None -> zt = z0.
    # TODO(synk): ControlNet + DDIM refinement loop not implemented (reference
    # takes the `else` branch when cnet is None).
    zt = z0

    # 5) task-conditioned decode, upsample fused into the conv (sub-pixel);
    #    skip order is bias -> SiLU -> +skip, same as the previous version.
    # TODO(synk): verify the reference decoder adds the skip post-activation.
    task_id = TASKS[task]
    temb = params["task_emb"][task_id].astype(zt.dtype).reshape(1, CZ, 1, 1)
    zt = zt + temb

    d1 = conv3x3(zt, wd1, jnp.tile(params["dec1"][1], 4), act=True)
    u1 = depth_to_space(d1) + m2
    d2 = conv3x3(u1, wd2, jnp.tile(params["dec2"][1], 4), act=True)
    u2 = depth_to_space(d2) + m1
    d3 = conv3x3(u2, wd3, jnp.tile(params["dec3"][1], 4), act=False,
                 out_dtype=jnp.float32)
    preds = depth_to_space(d3)

    # 6) crop padding, resize back to the original resolution.
    preds = preds[..., :h, :w]
    preds = bicubic_resize_nchw(preds, (org_h, org_w))
    return preds


# ----------------------------------------------------------------------------
# Lightweight numeric self-checks of the kernel building blocks
# ----------------------------------------------------------------------------
def _self_check():
    kx, kw, kb = jax.random.split(jax.random.PRNGKey(1), 3)
    cin, cout, h, w = 8, 8, 64, 128
    x = jax.random.normal(kx, (1, cin, h, w), jnp.float32).astype(jnp.bfloat16)
    wt = jax.random.normal(kw, (3, 3, cin, cout), jnp.float32) / math.sqrt(9 * cin)
    b = jax.random.normal(kb, (cout,), jnp.float32) * 0.1
    wt_bf = wt.astype(jnp.bfloat16)
    xf = x.astype(jnp.float32)

    def ref_conv(inp, wgt, stride):
        out = jax.lax.conv_general_dilated(
            inp, wgt, (stride, stride), ((1, 1), (1, 1)),
            dimension_numbers=("NCHW", "HWIO", "NCHW"))
        return out + b.reshape(1, cout, 1, 1)

    # 1) plain 3x3 stride-1 conv.
    got = conv3x3(x, _flatten_taps(wt_bf), b, act=False, out_dtype=jnp.float32)
    ref = ref_conv(xf, wt_bf.astype(jnp.float32), 1)
    assert float(jnp.max(jnp.abs(got - ref))) < 5e-2

    # 2) stride-2 conv via the space-to-depth rewrite.
    got = conv3x3(space_to_depth(x), _flatten_taps(_stride2_as_stride1(wt_bf)), b,
                  act=False, out_dtype=jnp.float32)
    ref = ref_conv(xf, wt_bf.astype(jnp.float32), 2)
    assert float(jnp.max(jnp.abs(got - ref))) < 5e-2

    # 3) nearest-x2 upsample + conv via the sub-pixel conv.
    got = depth_to_space(
        conv3x3(x, _flatten_taps(_subpixel_weight(wt)).astype(jnp.bfloat16),
                jnp.tile(b, 4), act=False, out_dtype=jnp.float32))
    up = jnp.repeat(jnp.repeat(xf, 2, axis=2), 2, axis=3)
    ref = ref_conv(up, wt.astype(jnp.float32), 1)
    assert float(jnp.max(jnp.abs(got - ref))) < 5e-2


# ----------------------------------------------------------------------------
if __name__ == "__main__":
    _ROLL_MODE[0] = _detect_roll_mode()
    _self_check()

    key = jax.random.PRNGKey(0)
    pkey, xkey = jax.random.split(key)
    params = init_params(pkey)

    # Small input; the forward upsamples it to 512x512 like the module does.
    images = jax.random.normal(xkey, (2, 3, 16, 16), jnp.float32)

    fwd = jax.jit(partial(diffuie_forward, task="deblur"))
    preds = jax.block_until_ready(fwd(params, images))

    assert preds.shape == images.shape, preds.shape
    assert preds.dtype == jnp.float32
    assert bool(jnp.all(jnp.isfinite(preds)))
    print("KERNEL_OK")
</pallas_src>

<mosaic_0001>
module attributes {stable_mosaic.version = 11 : i64} {
  func.func @k(%arg0: memref<8x128xf32, #tpu.memory_space<vmem>>, %arg1: memref<8x128xf32, #tpu.memory_space<vmem>>) attributes {dimension_semantics = [], scalar_prefetch = 0 : i64, scratch_operands = 0 : i64, tpu.core_type = #tpu.core_type<tc>} {
    %c0 = arith.constant 0 : index
    %c0_0 = arith.constant 0 : index
    %0 = vector.load %arg0[%c0, %c0_0] : memref<8x128xf32, #tpu.memory_space<vmem>>, vector<8x128xf32>
    %c1_i32 = arith.constant 1 : i32
    %1 = tpu.dynamic_rotate %0 by %c1_i32 dim 1 : vector<8x128xf32>, i32 -> vector<8x128xf32>
    %c0_1 = arith.constant 0 : index
    %c0_2 = arith.constant 0 : index
    %2 = vector.load %arg1[%c0_1, %c0_2] : memref<8x128xf32, #tpu.memory_space<vmem>>, vector<8x128xf32>
    tpu.vector_store %arg1[%c0_1, %c0_2], %1 {strides = array<i32>} : memref<8x128xf32, #tpu.memory_space<vmem>>, vector<8x128xf32>,
    return
  }
}

module attributes {stable_mosaic.version = 11 : i64} {
  func.func @_conv3x3_kernel(%arg0: i32, %arg1: i32, %arg2: memref<1x8x256xbf16, #tpu.memory_space<vmem>>, %arg3: memref<1x8x4096xbf16, #tpu.memory_space<vmem>>, %arg4: memref<1x8x256xbf16, #tpu.memory_space<vmem>>, %arg5: memref<8x144xbf16, #tpu.memory_space<vmem>>, %arg6: memref<8x1xf32, #tpu.memory_space<vmem>>, %arg7: memref<2x4352xbf16, #tpu.memory_space<vmem>>, %arg8: memref<1x8x4096xf32, #tpu.memory_space<vmem>>) attributes {dimension_semantics = [#tpu.dimension_semantics<parallel>, #tpu.dimension_semantics<parallel>], iteration_bounds = array<i64: 1, 2>, scalar_prefetch = 0 : i64, scratch_operands = 0 : i64, tpu.core_type = #tpu.core_type<tc>, window_params = [{transform_indices = @transform_0, window_bounds = array<i64: 1, 8, 256>}, {transform_indices = @transform_1, window_bounds = array<i64: 1, 8, 4096>}, {transform_indices = @transform_2, window_bounds = array<i64: 1, 8, 256>}, {pipeline_mode = #tpu.pipeline_mode<synchronous>, transform_indices = @transform_3, window_bounds = array<i64: 8, 144>}, {pipeline_mode = #tpu.pipeline_mode<synchronous>, transform_indices = @transform_4, window_bounds = array<i64: 8, 1>}, {pipeline_mode = #tpu.pipeline_mode<synchronous>, transform_indices = @transform_5, window_bounds = array<i64: 2, 4352>}, {transform_indices = @transform_6, window_bounds = array<i64: 1, 8, 4096>}]} {
    %c0 = arith.constant 0 : index
    %c0_0 = arith.constant 0 : index
    %c0_1 = arith.constant 0 : index
    %0 = vector.load %arg2[%c0, %c0_0, %c0_1] : memref<1x8x256xbf16, #tpu.memory_space<vmem>>, vector<1x8x256xbf16>
    %1 = vector.shape_cast %0 : vector<1x8x256xbf16> to vector<8x256xbf16>
    %c0_2 = arith.constant 0 : index
    %c0_3 = arith.constant 0 : index
    %c0_4 = arith.constant 0 : index
    %2 = vector.load %arg4[%c0_2, %c0_3, %c0_4] : memref<1x8x256xbf16, #tpu.memory_space<vmem>>, vector<1x8x256xbf16>
    %3 = vector.shape_cast %2 : vector<1x8x256xbf16> to vector<8x256xbf16>
    %4 = vector.extract_strided_slice %1 {offsets = [0, 128], sizes = [8, 128], strides = [1, 1]} : vector<8x256xbf16> to vector<8x128xbf16>
    %c0_i32 = arith.constant 0 : i32
    %5 = arith.cmpi sgt, %arg1, %c0_i32 : i32
    %6 = arith.extui %5 : i1 to i32
    %7 = arith.sitofp %6 : i32 to f32
    %8 = arith.truncf %7 : f32 to bf16
    %9 = vector.broadcast %8 : bf16 to vector<8x128xbf16>
    %10 = arith.mulf %4, %9 : vector<8x128xbf16>
    %11 = vector.extract_strided_slice %3 {offsets = [0, 0], sizes = [8, 128], strides = [1, 1]} : vector<8x256xbf16> to vector<8x128xbf16>
    %c1_i32 = arith.constant 1 : i32
    %12 = arith.cmpi slt, %arg1, %c1_i32 : i32
    %13 = arith.extui %12 : i1 to i32
    %14 = arith.sitofp %13 : i32 to f32
    %15 = arith.truncf %14 : f32 to bf16
    %16 = vector.broadcast %15 : bf16 to vector<8x128xbf16>
    %17 = arith.mulf %11, %16 : vector<8x128xbf16>
    %c0_5 = arith.constant 0 : index
    %c0_6 = arith.constant 0 : index
    %c0_7 = arith.constant 0 : index
    %18 = vector.load %arg3[%c0_5, %c0_6, %c0_7] : memref<1x8x4096xbf16, #tpu.memory_space<vmem>>, vector<1x8x4096xbf16>
    %19 = vector.shape_cast %18 : vector<1x8x4096xbf16> to vector<8x4096xbf16>
    %20 = tpu.concatenate %10, %19, %17 in 1 : vector<8x128xbf16>, vector<8x4096xbf16>, vector<8x128xbf16> -> vector<8x4352xbf16>
    %cst = arith.constant 0.000000e+00 : bf16
    %21 = vector.broadcast %cst : bf16 to vector<8x4352xbf16>
    %22 = tpu.concatenate %20, %21 in 0 : vector<8x4352xbf16>, vector<8x4352xbf16> -> vector<16x4352xbf16>
    %c0_8 = arith.constant 0 : index
    %c0_9 = arith.constant 0 : index
    %23 = vector.load %arg7[%c0_8, %c0_9] : memref<2x4352xbf16, #tpu.memory_space<vmem>>, vector<1x4352xbf16>
    %c1 = arith.constant 1 : index
    %c0_10 = arith.constant 0 : index
    %24 = vector.load %arg7[%c1, %c0_10] : memref<2x4352xbf16, #tpu.memory_space<vmem>>, vector<1x4352xbf16>
    %25 = vector.extract_strided_slice %22 {offsets = [0, 4351], sizes = [16, 1], strides = [1, 1]} : vector<16x4352xbf16> to vector<16x1xbf16>
    %26 = vector.extract_strided_slice %22 {offsets = [0, 0], sizes = [16, 4351], strides = [1, 1]} : vector<16x4352xbf16> to vector<16x4351xbf16>
    %27 = tpu.concatenate %25, %26 in 1 : vector<16x1xbf16>, vector<16x4351xbf16> -> vector<16x4352xbf16>
    %28 = vector.broadcast %23 : vector<1x4352xbf16> to vector<16x4352xbf16>
    %29 = arith.mulf %27, %28 : vector<16x4352xbf16>
    %30 = vector.extract_strided_slice %22 {offsets = [0, 1], sizes = [16, 4351], strides = [1, 1]} : vector<16x4352xbf16> to vector<16x4351xbf16>
    %31 = vector.extract_strided_slice %22 {offsets = [0, 0], sizes = [16, 1], strides = [1, 1]} : vector<16x4352xbf16> to vector<16x1xbf16>
    %32 = tpu.concatenate %30, %31 in 1 : vector<16x4351xbf16>, vector<16x1xbf16> -> vector<16x4352xbf16>
    %33 = vector.broadcast %24 : vector<1x4352xbf16> to vector<16x4352xbf16>
    %34 = arith.mulf %32, %33 : vector<16x4352xbf16>
    %35 = vector.extract_strided_slice %29 {offsets = [0, 0], sizes = [16, 4096], strides = [1, 1]} : vector<16x4352xbf16> to vector<16x4096xbf16>
    %36 = vector.extract_strided_slice %22 {offsets = [0, 0], sizes = [16, 4096], strides = [1, 1]} : vector<16x4352xbf16> to vector<16x4096xbf16>
    %37 = vector.extract_strided_slice %34 {offsets = [0, 0], sizes = [16, 4096], strides = [1, 1]} : vector<16x4352xbf16> to vector<16x4096xbf16>
    %38 = vector.extract_strided_slice %29 {offsets = [0, 128], sizes = [16, 4096], strides = [1, 1]} : vector<16x4352xbf16> to vector<16x4096xbf16>
    %39 = vector.extract_strided_slice %22 {offsets = [0, 128], sizes = [16, 4096], strides = [1, 1]} : vector<16x4352xbf16> to vector<16x4096xbf16>
    %40 = vector.extract_strided_slice %34 {offsets = [0, 128], sizes = [16, 4096], strides = [1, 1]} : vector<16x4352xbf16> to vector<16x4096xbf16>
    %41 = vector.extract_strided_slice %29 {offsets = [0, 256], sizes = [16, 4096], strides = [1, 1]} : vector<16x4352xbf16> to vector<16x4096xbf16>
    %42 = vector.extract_strided_slice %22 {offsets = [0, 256], sizes = [16, 4096], strides = [1, 1]} : vector<16x4352xbf16> to vector<16x4096xbf16>
    %43 = vector.extract_strided_slice %34 {offsets = [0, 256], sizes = [16, 4096], strides = [1, 1]} : vector<16x4352xbf16> to vector<16x4096xbf16>
    %44 = tpu.concatenate %35, %36, %37, %38, %39, %40, %41, %42, %43 in 0 : vector<16x4096xbf16>, vector<16x4096xbf16>, vector<16x4096xbf16>, vector<16x4096xbf16>, vector<16x4096xbf16>, vector<16x4096xbf16>, vector<16x4096xbf16>, vector<16x4096xbf16>, vector<16x4096xbf16> -> vector<144x4096xbf16>
    %c0_11 = arith.constant 0 : index
    %c0_12 = arith.constant 0 : index
    %45 = vector.load %arg5[%c0_11, %c0_12] : memref<8x144xbf16, #tpu.memory_space<vmem>>, vector<8x144xbf16>
    %cst_13 = arith.constant dense<0.000000e+00> : vector<8x4096xf32>
    %46 = tpu.matmul %45, %44, %cst_13 {dimension_numbers = #tpu.dot_dimension_numbers<[1], [0], [0], [1], [0, 0, 1, 1], [], []>} : vector<8x144xbf16>, vector<144x4096xbf16>, vector<8x4096xf32> -> vector<8x4096xf32>
    %c0_14 = arith.constant 0 : index
    %c0_15 = arith.constant 0 : index
    %47 = vector.load %arg6[%c0_14, %c0_15] : memref<8x1xf32, #tpu.memory_space<vmem>>, vector<8x1xf32>
    %48 = vector.broadcast %47 : vector<8x1xf32> to vector<8x4096xf32>
    %49 = arith.addf %46, %48 : vector<8x4096xf32>
    %c0_16 = arith.constant 0 : index
    %c0_17 = arith.constant 0 : index
    %c0_18 = arith.constant 0 : index
    %50 = vector.load %arg8[%c0_16, %c0_17, %c0_18] : memref<1x8x4096xf32, #tpu.memory_space<vmem>>, vector<1x8x4096xf32>
    %51 = vector.shape_cast %50 : vector<1x8x4096xf32> to vector<8x4096xf32>
    %52 = vector.shape_cast %49 : vector<8x4096xf32> to vector<1x8x4096xf32>
    tpu.vector_store %arg8[%c0_16, %c0_17, %c0_18], %52 {strides = array<i32>} : memref<1x8x4096xf32, #tpu.memory_space<vmem>>, vector<1x8x4096xf32>,
    return
  }
  func.func @transform_0(%arg0: i32, %arg1: i32) -> (i32, i32, i32) {
    %c16_i32 = arith.constant 16 : i32
    %0 = arith.muli %arg1, %c16_i32 : i32
    %c1_i32 = arith.constant 1 : i32
    %1 = arith.subi %0, %c1_i32 : i32
    %c0_i32 = arith.constant 0 : i32
    %2 = arith.maxsi %1, %c0_i32 : i32
    %c0_i32_0 = arith.constant 0 : i32
    %c0_i32_1 = arith.constant 0 : i32
    return %arg0, %c0_i32_0, %2 : i32, i32, i32
  }
  func.func @transform_1(%arg0: i32, %arg1: i32) -> (i32, i32, i32) {
    %c0_i32 = arith.constant 0 : i32
    %c0_i32_0 = arith.constant 0 : i32
    return %arg0, %c0_i32, %arg1 : i32, i32, i32
  }
  func.func @transform_2(%arg0: i32, %arg1: i32) -> (i32, i32, i32) {
    %c1_i32 = arith.constant 1 : i32
    %0 = arith.addi %arg1, %c1_i32 : i32
    %c16_i32 = arith.constant 16 : i32
    %1 = arith.muli %0, %c16_i32 : i32
    %c31_i32 = arith.constant 31 : i32
    %2 = arith.minsi %1, %c31_i32 : i32
    %c0_i32 = arith.constant 0 : i32
    %c0_i32_0 = arith.constant 0 : i32
    return %arg0, %c0_i32, %2 : i32, i32, i32
  }
  func.func @transform_3(%arg0: i32, %arg1: i32) -> (i32, i32) {
    %c0_i32 = arith.constant 0 : i32
    %c0_i32_0 = arith.constant 0 : i32
    %c0_i32_1 = arith.constant 0 : i32
    return %c0_i32, %c0_i32_0 : i32, i32
  }
  func.func @transform_4(%arg0: i32, %arg1: i32) -> (i32, i32) {
    %c0_i32 = arith.constant 0 : i32
    %c0_i32_0 = arith.constant 0 : i32
    %c0_i32_1 = arith.constant 0 : i32
    return %c0_i32, %c0_i32_0 : i32, i32
  }
  func.func @transform_5(%arg0: i32, %arg1: i32) -> (i32, i32) {
    %c0_i32 = arith.constant 0 : i32
    %c0_i32_0 = arith.constant 0 : i32
    %c0_i32_1 = arith.constant 0 : i32
    return %c0_i32, %c0_i32_0 : i32, i32
  }
  func.func @transform_6(%arg0: i32, %arg1: i32) -> (i32, i32, i32) {
    %c0_i32 = arith.constant 0 : i32
    %c0_i32_0 = arith.constant 0 : i32
    return %arg0, %c0_i32, %arg1 : i32, i32, i32
  }
}

</mosaic_0001>

<bundles_post_ra>
// kernel: tpu_custom_call.1
= control target key start
LH: loop header
LB: loop body
LE: loop exit
PB: predicated region body
PF: predicated region fallthrough
CT: control target
= control target key end

     0   :  { %6 = vsyncpa [#allocation3], 0  ;;  %s118_s0 = inlined_call_operand.hbm [shape: f32[8,128], index: 0, kind: input, shape index: {}]   ;;  %s119_s1 = inlined_call_operand.hbm [shape: f32[8,128], index: 1, kind: output, shape index: {}]  }
   0x1   :  { %7 = vsyncpa [#allocation4], 0  ;;  %s13_s8 = sshll.u32 %s118_s0, 4  ;;  %s99_s9 = smov [#allocation2]   ;;  %s14_s8 = int_to_ptr.hbm [resolvable:$true] %s13_s8 }
   0x2   :  { %s15_s10 = sshll.u32 %s99_s9, 4  ;;  %s16_s10 = int_to_ptr.vmem [resolvable:$true] %s15_s10 }
   0x3   :  { %18 = dma.hbm_to_vmem [thread:$0]  %s14_s8, 128, %s16_s10, [#allocation3]  }
   0x4   :  { %95 = dma.done.wait [#allocation3], 128  }
   0x5   :  { %96 = vsyncadd [#allocation3], 4294967168  ;;  %v23_v0 = vld [vmem:[#allocation2] sm:$0xff]  ;;  %s100_s11 = smov 1   ;;  %s101_s12 = smov [#allocation5]  }
   0x6   :  { %24 = vrot.lane.b32.xlu0 %v23_v0, %s100_s11  ;;  %s32_s13 = sshll.u32 %s101_s12, 4  ;;  %s34_s16 = sshll.u32 %s119_s1, 4  ;;  %s33_s13 = int_to_ptr.vmem [resolvable:$true] %s32_s13  ;;  %s35_s16 = int_to_ptr.hbm [resolvable:$true] %s34_s16 }
  0x78   :  { %v25_v1 = vpop.permute.xlu0 %24 }
  0x79   :  { %26 = vst [vmem:[#allocation5] sm:$0xff] %v25_v1 }
  0x7a   :  { %37 = dma.vmem_to_hbm [thread:$0]  %s33_s13, 128, %s35_s16, [#allocation4]  }
  0x7b   :  { %97 = dma.done.wait [#allocation4], 128  }
  0x7c   :  { %98 = vsyncadd [#allocation4], 4294967168 }
  0x7d   :  { %42 = vsyncpa [#allocation3], 1 }
  0x7e   :  { %43 = vsyncpa [#allocation4], 1 }

// kernel: tpu_custom_call.1
= control target key start
LH: loop header
LB: loop body
LE: loop exit
PB: predicated region body
PF: predicated region fallthrough
CT: control target
= control target key end

     0   :  { %s5602_s0 = inlined_call_operand.hbm [shape: bf16[1,8,8192], index: 0, kind: input, shape index: {}]   ;;  %s5603_s1 = inlined_call_operand.hbm [shape: bf16[1,8,8192], index: 1, kind: input, shape index: {}]   ;;  %s5604_s2 = inlined_call_operand.hbm [shape: bf16[1,8,8192], index: 2, kind: input, shape index: {}]   ;;  %s5605_s3 = inlined_call_operand.vmem [shape: bf16[8,144], index: 3, kind: input, shape index: {}]   ;;  %s5606_s4 = inlined_call_operand.vmem [shape: f32[8,1], index: 4, kind: input, shape index: {}]   ;;  %s5607_s5 = inlined_call_operand.hbm [shape: bf16[2,4352], index: 5, kind: input, shape index: {}]   ;;  %s5608_s6 = inlined_call_operand.hbm [shape: f32[1,8,8192], index: 6, kind: output, shape index: {}]  }
   0x1   :  { %5687 = sst [smem:[#allocation75_spill]] %s5603_s1 }
   0x2   :  { %5688 = sst [smem:[#allocation76_spill]] %s5605_s3 }
   0x3   :  { %5689 = sst [smem:[#allocation77_spill]] %s5606_s4 }
   0x4   :  { %5690 = sst [smem:[#allocation78_spill]] %s5607_s5 }
   0x5   :  { %5691 = sst [smem:[#allocation79_spill]] %s5608_s6 }
   0x6   :  { %11 = vsyncpa [#allocation3], 0 }
   0x7   :  { %13 = vsyncpa [#allocation3 + $0x1], 0 }
   0x8   :  { %14 = vsyncpa [#allocation6], 0 }
   0x9   :  { %16 = vsyncpa [#allocation6 + $0x1], 0 }
   0xa   :  { %17 = vsyncpa [#allocation9], 0 }
   0xb   :  { %18 = vsyncpa [#allocation4], 0 }
   0xc   :  { %20 = vsyncpa [#allocation4 + $0x1], 0  ;;  %s3618_s21 = smov 0   ;;  %s3620_s22 = smov 0  }
   0xd   :  { %s3622_s23 = smov 0   ;;  %s3624_s24 = smov 0  }
   0xe   :  { %s3626_s25 = smov 0   ;;  %s3628_s26 = smov 0  }
   0xf   :  { %s3630_s27 = smov 0   ;;  %s3632_s28 = smov 0  }
  0x10   :  { %s3634_s29 = smov 0   ;;  %s3636_s30 = smov 0  }
  0x11   :  { %s3638_s7 = smov 0   ;;  %s3640_s8 = smov 0  }
  0x12 LB: > { %5692 = sst [smem:[#allocation16_spill]] %s3553_s26  ;;  %s3679_s9 = sadd.s32 4294967295, %s3577_s8   ;;  %s3577_s8 = sphi %s3640_s8, %s26_s8   ;;  %s3573_s7 = sphi %s3638_s7, %s5862_s7   ;;  %s3569_s30 = sphi %s3636_s30, %s5861_s30   ;;  %s3565_s29 = sphi %s3634_s29, %s5870_s29   ;;  %s3561_s28 = sphi %s3632_s28, %s5869_s28   ;;  %s3557_s27 = sphi %s3630_s27, %s5868_s27   ;;  %s3553_s26 = sphi %s3628_s26, %s5859_s26   ;;  %s3549_s25 = sphi %s3626_s25, %s5867_s25   ;;  %s3545_s24 = sphi %s3624_s24, %s5866_s24   ;;  %s3541_s23 = sphi %s3622_s23, %s5865_s23   ;;  %s3537_s22 = sphi %s3620_s22, %s5864_s22   ;;  %s3533_s21 = sphi %s3618_s21, %s5863_s21  }
  0x13   : > { %5693 = sst [smem:[#allocation17_spill]] %s3573_s7  ;;  %s3104_s10 = sadd.s32 4294967294, %s3577_s8  }
  0x14   : > { %s35_s11 = sadd.s32 1, %s3573_s7  ;;  %p63_p0 = scmp.eq.s32.totalorder %s3577_s8, 0 }
  0x15   : > { %p36_p1 = scmp.ge.s32.totalorder %s35_s11, 2  ;;  %s83_s12 = sadd.s32 1, %s3553_s26 }
  0x16   : > { %p90_p2 = scmp.ne.s32.totalorder %s3553_s26, %s3549_s25  ;;  %p96_p3 = scmp.ne.s32.totalorder %s3549_s25, %s3545_s24 }
  0x17   : > { %s5872_s11 = smov (%p36_p1, %s35_s11), 0  ;;  %p221_p5 = scmp.eq.s32.totalorder %s3679_s9, 1 }
  0x18   : > { %5694 = sst [smem:[#allocation18_spill]] %s5872_s11  ;;  %p3693_p4 = por %p90_p2, %p63_p0 }
  0x19   : > { %s79_s14 = ssub.s32 %s3573_s7, %s5872_s11  ;;  %p227_p6 = scmp.eq.s32.totalorder %s3104_s10, 1 }
  0x1a   : > { %p81_p7 = scmp.eq.s32.totalorder %s79_s14, 0  ;;  %p3700_p8 = por %p221_p5, %p90_p2 }
  0x1b   : > { %p3707_p9 = por %p227_p6, %p96_p3  ;;  %p5613_p11 = scmp.lt.s32.totalorder %s3577_s8, 2 }
  0x1c   : > { %s5696_s15 = scalar_select %p3700_p8, 1, 0 }
  0x1d   : > { %s5698_s16 = scalar_select %p3707_p9, 1, 0 }
  0x1e   : > { %5697 = sst [smem:[#allocation19_spill]] %s5696_s15  ;;  %s291_s18 = sand.u32 1, %s3577_s8  }
  0x1f   : > { %5699 = sst [smem:[#allocation20_spill]] %s5698_s16  ;;  %s293_s19 = sand.u32 1, %s3553_s26  }
  0x20   : > { %s3712_s17 = scalar_select %p81_p7, %s3553_s26, %s83_s12  }
  0x21   : > { %s3119_s20 = sshll.u32 %s293_s19, 7  ;;  %s3174_s10 = sshll.u32 %s3573_s7, 7 }
  0x22   : > { %5700 = sst [smem:[#allocation21_spill]] %s3712_s17  ;;  %s295_s4 = scalar_lea.vmem [#allocation5], %s3119_s20 }
  0x23   : > { %s5701_s1 = sld [smem:[#allocation75_spill]]  ;;  %s306_s3 = sshll.u32 %s295_s4, 4  ;;  %s307_s3 = int_to_ptr.vmem [resolvable:$true] %s306_s3 }
  0x24   : > { %p3199_p12 = pnand %p5613_p11, %p3693_p4  ;;  %p5617_p13 = scmp.eq.s32.totalorder %s3679_s9, 0 }
  0x25   : > { %s3727_s12 = scalar_lea.sflag [#allocation6], %s291_s18  ;;  %p3111_p2 = scmp.ge.s32.totalorder %s3577_s8, 1 }
  0x26   : > { %p3735_p1 = por %p96_p3, %p5617_p13  ;;  %p234_p5 = scmp.lt.s32.totalorder %s3577_s8, 3 }
  0x27   : > { %s5703_s5 = sld [smem:[#allocation78_spill]]  ;;  %s3105_s19 = sshll.u32 %s3573_s7, 4 }
  0x28   : > { %s5702_s15 = scalar_select %p3735_p1, 1, 0 }
  0x29   : > { %s302_s6 = scalar_lea.hbm %s5701_s1, %s3174_s10  ;;  %p3744_p4 = pnand %p3111_p2, %p234_p5 }
  0x2a   : > { %s304_s16 = sshll.u32 %s302_s6, 4  ;;  %s3106_s20 = sadd.s32 4294967295, %s3105_s19  ;;  %s305_s16 = int_to_ptr.hbm [resolvable:$true] %s304_s16 }
  0x2b   : > { %3201 = dma.hbm_to_vmem [thread:$0]  (!%p3199_p12), %s305_s16, 2048, %s307_s3, %s3727_s12  }
  0x2c   : > { %s3579_s3 = smov [#allocation8]   ;;  %p3191_p3 = pneg %p3744_p4 }
  0x2d   : > { %s252_s13 = sshll.u32 %s5703_s5, 4  ;;  %s254_s16 = sshll.u32 %s3579_s3, 4  ;;  %s253_s13 = int_to_ptr.hbm [resolvable:$true] %s252_s13  ;;  %s255_s16 = int_to_ptr.vmem [resolvable:$true] %s254_s16 }
  0x2e   : > { %p3192_p6 = pnand %p3191_p3, %p5617_p13  ;;  %p44_p7 = scmp.gt.s32.totalorder %s3106_s20, 0 }
  0x2f   : > { %s3107_s10 = sshll.u32 %s5872_s11, 4  ;;  %s55_s4 = sadd.s32 1, %s3565_s29 }
  0x30   : > { %3194 = dma.hbm_to_vmem [thread:$0]  (!%p3192_p6), %s253_s13, 544, %s255_s16, [#allocation9]  }
  0x31   : > { %s3108_s14 = sadd.s32 4294967295, %s3107_s10  ;;  %s5874_s20 = smov (!%p44_p7, %s3106_s20), 0 }
  0x32   : > { %p48_p12 = scmp.gt.s32.totalorder %s3108_s14, 0  ;;  %p62_p2 = scmp.ne.s32.totalorder %s3565_s29, %s3561_s28 }
  0x33   : > { %p68_p5 = scmp.ne.s32.totalorder %s3561_s28, %s3557_s27  ;;  %s3170_s6 = sadd.s32 16, %s3105_s19 }
  0x34   : > { %s5876_s14 = smov (!%p48_p12, %s3108_s14), 0  ;;  %p3761_p10 = por %p63_p0, %p62_p2 }
  0x35   : > { %p3767_p3 = por %p5617_p13, %p68_p5  ;;  %s51_s16 = ssub.s32 %s5874_s20, %s5876_s14 }
  0x36   : > { %p108_p6 = scmp.lt.s32.totalorder %s3170_s6, 31  ;;  %p53_p7 = scmp.eq.s32.totalorder %s51_s16, 0 }
  0x37   : > { %s3172_s1 = sadd.s32 16, %s3107_s10  ;;  %s265_s27 = sand.u32 1, %s3565_s29  }
  0x38   : > { %p112_p11 = scmp.lt.s32.totalorder %s3172_s1, 31  ;;  %s3114_s5 = sshll.u32 %s265_s27, 3 }
  0x39   : > { %s3773_s19 = scalar_select %p53_p7, %s3565_s29, %s55_s4  }
  0x3a   : > { %s3173_s11 = sshll.u32 %s5874_s20, 3  ;;  %s269_s14 = scalar_lea.vmem [#allocation2], %s3114_s5 }
  0x3b   : > { %5707 = sst [smem:[#allocation22_spill]] %s3773_s19  ;;  %s280_s26 = scalar_lea.hbm %s5602_s0, %s3173_s11 }
  0x3c   : > { %s284_s16 = sshll.u32 %s269_s14, 4  ;;  %s282_s10 = sshll.u32 %s280_s26, 4  ;;  %s285_s16 = int_to_ptr.vmem [resolvable:$true] %s284_s16  ;;  %s283_s10 = int_to_ptr.hbm [resolvable:$true] %s282_s10 }
  0x3d   : > { %p5708_p12 = scmp.lt.s32.totalorder %s3577_s8, 2  ;;  %s266_s4 = scalar_lea.sflag [#allocation3], %s265_s27 }
  0x3e   : > { %s119_s19 = sadd.s32 1, %s3541_s23  ;;  %s5878_s6 = smov (!%p108_p6, %s3170_s6), 31 }
  0x3f   : > { %p3196_p2 = pnand %p5708_p12, %p3761_p10  ;;  %s5880_s1 = smov (!%p112_p11, %s3172_s1), 31 }
  0x40   : > { %p126_p5 = scmp.ne.s32.totalorder %s3541_s23, %s3537_s22  ;;  %p132_p7 = scmp.ne.s32.totalorder %s3537_s22, %s3533_s21 }
  0x41   : > { %3198 = dma.hbm_to_vmem [thread:$0]  (!%p3196_p2), %s283_s10, 128, %s285_s16, %s266_s4  }
  0x42   : > { %s115_s5 = ssub.s32 %s5878_s6, %s5880_s1  ;;  %s315_s7 = sand.u32 1, %s3541_s23  }
  0x43   : > { %p117_p13 = scmp.eq.s32.totalorder %s115_s5, 0  ;;  %p128_p9 = por %p126_p5, %p63_p0 }
  0x44   : > { %p5709_p8 = scmp.eq.s32.totalorder %s3679_s9, 0  ;;  %s3122_s11 = sshll.u32 %s315_s7, 3 }
  0x45   : > { %s3799_s17 = scalar_select %p117_p13, %s3541_s23, %s119_s19  }
  0x46   : > { %p3794_p1 = por %p132_p7, %p5709_p8  ;;  %s3177_s20 = sshll.u32 %s5878_s6, 3 }
  0x47   : > { %s328_s14 = scalar_lea.hbm %s5604_s2, %s3177_s20  ;;  %s317_s21 = scalar_lea.vmem [#allocation7], %s3122_s11 }
  0x48   : > { %s332_s16 = sshll.u32 %s317_s21, 4  ;;  %s330_s1 = sshll.u32 %s328_s14, 4  ;;  %s333_s16 = int_to_ptr.vmem [resolvable:$true] %s332_s16  ;;  %s331_s1 = int_to_ptr.hbm [resolvable:$true] %s330_s1 }
  0x49   : > { %p5711_p10 = pmov %p5708_p12  ;;  %341 = sbr.rel (%p3744_p4) target bundleno = 692 (0x2b4), region = 44 }
  0x4b   : > { %p3202_p0 = pnand %p5711_p10, %p128_p9 }
  0x4d   : > { %3204 = dma.hbm_to_vmem [thread:$0]  (!%p3202_p0), %s331_s1, 128, %s333_s16, %s3727_s12  }
  0x4e   : > { %s343_s19 = sand.u32 1, %s3561_s28  }
  0x4f   : > { %s3810_s10 = sshll.u32 %s343_s19, 3  ;;  %s344_s6 = scalar_lea.sflag [#allocation3], %s343_s19 }
  0x50   : > { %s347_s4 = scalar_lea.vmem [#allocation2], %s3810_s10 }
  0x51   : > { %3512 = dma.done.wait (%p3767_p3), %s344_s6, 128  }
  0x52   : > { %3514 = vsyncadd (%p3767_p3), %s344_s6, 4294967168  ;;  %s353_s12 = sand.u32 1, %s3679_s9   ;;  %s3819_s5 = sand.u32 1, %s3549_s25  }
  0x53   : > { %s3128_s18 = sshll.u32 %s3819_s5, 7  ;;  %s354_s7 = scalar_lea.sflag [#allocation6], %s353_s12 }
  0x54   : > { %s3822_s11 = scalar_lea.vmem [#allocation5], %s3128_s18  ;;  %p5712_p8 = scmp.ne.s32.totalorder %s5702_s15, 0 }
  0x56   : > { %3516 = dma.done.wait (%p5712_p8), %s354_s7, 2048  }
  0x57   : > { %3518 = vsyncadd (%p5712_p8), %s354_s7, 4294965248  ;;  %s365_s13 = sand.u32 1, %s3537_s22  }
  0x58   : > { %s3829_s20 = sshll.u32 %s365_s13, 3 }
  0x59   : > { %s367_s3 = scalar_lea.vmem [#allocation7], %s3829_s20 }
  0x5a   : > { %3520 = dma.done.wait (%p3794_p1), %s354_s7, 128  }
  0x5b   : > { %3522 = vsyncadd (%p3794_p1), %s354_s7, 4294967168  ;;  %p5713_p9 = scmp.eq.s32.totalorder %s3679_s9, 0 }
  0x5d   : > { %3524 = dma.done.wait (%p5713_p9), [#allocation9], 544   ;;  %p5714_p11 = pmov %p5713_p9 }
  0x5e   : > { %p427_p13 = scmp.gt.s32.totalorder %s3569_s30, 0  ;;  %p451_p4 = scmp.lt.s32.totalorder %s3569_s30, 1  ;;  %v3847_v0 = vld [vmem:[%s3822_s11 + $0x10] sm:$0xff]  ;;  %v473_v1 = vld [vmem:[%s3822_s11 + $0x8] sm:$0xff]  ;;  %v472_v2 = vld [vmem:[%s3822_s11] sm:$0xff]  ;;  %vm568_vm0 = vcmask 1043456  }
  0x5f   : > { %3526 = vsyncadd (%p5714_p11), [#allocation9], 4294966752  ;;  %v508_v3 = vunpack.c.l.b16 %v3847_v0  ;;  %v506_v4 = vunpack.c.l.b16 %v473_v1  ;;  %v504_v5 = vunpack.c.l.b16 %v472_v2  ;;  %v505_v6 = vunpack.c.h.b16 %v472_v2  ;;  %v425_v8 = vld [vmem:[%s347_s4] sm:$0xff]  ;;  %s3580_s10 = smov 1   ;;  %v426_v23 = vld [vmem:[%s367_s3] sm:$0xf] }
  0x60   : > { %s428_s15 = scalar_select %p427_p13, 1, 0  ;;  %v507_v7 = vunpack.c.h.b16 %v473_v1  ;;  %v445_v17 = vrot.slane %v425_v8, 4  ;;  %v468_v27 = vunpack.c.l.bf16 %v426_v23  ;;  %v475_v32 = vld [vmem:[%s3822_s11 + $0x18] sm:$0xff]  ;;  %v509_v35 = vunpack.c.h.b16 %v3847_v0  ;;  %v476_v41 = vld [vmem:[%s3822_s11 + $0x20] sm:$0xff]  ;;  %v477_v46 = vld [vmem:[%s3822_s11 + $0x28] sm:$0xff] }
  0x61   : > { %s452_s27 = scalar_select %p451_p4, 1, 0  ;;  %v540_v9 = vpack.c.b16 %v508_v3, %v508_v3  ;;  %v538_v10 = vpack.c.b16 %v506_v4, %v506_v4  ;;  %v536_v11 = vpack.c.b16 %v504_v5, %v504_v5  ;;  %v537_v12 = vpack.c.b16 %v505_v6, %v505_v6  ;;  %v3942_v49 = vld [vmem:[#allocation8] sm:$0xff]  ;;  %v3956_v56 = vld [vmem:[#allocation8 + $0x8] sm:$0xff]  ;;  %v3986_v6 = vld [vmem:[#allocation8 + $0x10] sm:$0xff] }
  0x62   : > { %s3842_s14 = scvt.s32.f32 %s428_s15  ;;  %v539_v13 = vpack.c.b16 %v507_v7, %v507_v7  ;;  %v447_v20 = vunpack.c.l.bf16 %v445_v17  ;;  %v510_v34 = vunpack.c.l.b16 %v475_v32  ;;  %v541_v37 = vpack.c.b16 %v509_v35, %v509_v35  ;;  %852 = vst [vmem:[#allocation1] ss:$9 sm:$0xff] %v3942_v49  ;;  %v478_v2 = vld [vmem:[%s3822_s11 + $0x30] sm:$0xff]  ;;  %v479_v17 = vld [vmem:[%s3822_s11 + $0x38] sm:$0xff] }
  0x63   : > { %s3844_s26 = scvt.s32.f32 %s452_s27  ;;  %v3860_v14 = vsel %vm568_vm0, %v540_v9, 0  ;;  %v3863_v15 = vsel %vm568_vm0, %v538_v10, 0  ;;  %v3866_v16 = vsel %vm568_vm0, %v536_v11, 0  ;;  %v3884_v19 = vsel %vm568_vm0, %v537_v12, 0 }
  0x64   : > { %s432_s9 = sshrl.u32 %s3842_s14, 16  ;;  %p431_p1 = scmp.ne.f32.partialorder %s3842_s14, %s3842_s14  ;;  %5715 = vst [vmem:[#allocation23_spill] sm:$0xff] %v3863_v15  ;;  %723 = vrot.lane.b32.xlu2 %v3860_v14, %s3580_s10  ;;  %719 = vrot.lane.b32.xlu1 %v3863_v15, %s3580_s10  ;;  %v3876_v18 = vsel %vm568_vm0, %v539_v13, 0  ;;  %v542_v36 = vpack.c.b16 %v510_v34, %v510_v34  ;;  %v3920_v39 = vsel %vm568_vm0, %v541_v37, 0  ;;  %v511_v40 = vunpack.c.h.b16 %v475_v32  ;;  %v480_v32 = vld [vmem:[%s3822_s11 + $0x40] sm:$0xff] }
  0x65   : > { %s433_s21 = sand.u32 1, %s432_s9  ;;  %s456_s1 = sshrl.u32 %s3844_s26, 16  ;;  %715 = vrot.lane.b32.xlu0 %v3866_v16, %s3580_s10  ;;  %2129 = vmatpush.bf16.msra.mxu1 %v3876_v18  ;;  %v512_v43 = vunpack.c.l.b16 %v476_v41  ;;  %v513_v48 = vunpack.c.h.b16 %v476_v41  ;;  %v514_v50 = vunpack.c.l.b16 %v477_v46  ;;  %v515_v54 = vunpack.c.h.b16 %v477_v46 }
  0x66   : > { %s434_s16 = sadd.s32 32767, %s433_s21  ;;  %s457_s6 = sand.u32 1, %s456_s1  ;;  %2077 = vmatpush.bf16.msra.mxu0 %v3884_v19  ;;  %v3917_v38 = vsel %vm568_vm0, %v542_v36, 0  ;;  %v543_v42 = vpack.c.b16 %v511_v40, %v511_v40  ;;  %v516_v4 = vunpack.c.l.b16 %v478_v2  ;;  %v517_v5 = vunpack.c.h.b16 %v478_v2 }
  0x67   : > { %s435_s19 = sadd.s32 %s434_s16, %s3842_s14  ;;  %s458_s18 = sadd.s32 32767, %s457_s6  ;;  %v544_v45 = vpack.c.b16 %v512_v43, %v512_v43  ;;  %v545_v51 = vpack.c.b16 %v513_v48, %v513_v48  ;;  %v546_v52 = vpack.c.b16 %v514_v50, %v514_v50  ;;  %v547_v1 = vpack.c.b16 %v515_v54, %v515_v54  ;;  %v4053_v48 = vld [vmem:[#allocation8 + $0x20] sm:$0x3] }
  0x68   : > { %s436_s12 = sand.u32 4294901760, %s435_s19  ;;  %p455_p3 = scmp.ne.f32.partialorder %s3844_s26, %s3844_s26  ;;  %v3930_v44 = vsel %vm568_vm0, %v543_v42, 0  ;;  %v548_v10 = vpack.c.b16 %v516_v4, %v516_v4  ;;  %v519_v42 = vunpack.c.h.b16 %v479_v17  ;;  %v520_v43 = vunpack.c.l.b16 %v480_v32  ;;  %5737 = vst [vmem:[#allocation45_spill] sm:$0xff] %v4053_v48 }
  0x69   : > { %s5882_s12 = smov (%p431_p1, %s436_s12), 2143289344  ;;  %s459_s4 = sadd.s32 %s458_s18, %s3844_s26  ;;  %5717 = vst [vmem:[#allocation25_spill] sm:$0xff] %v3930_v44  ;;  %v3940_v47 = vsel %vm568_vm0, %v544_v45, 0  ;;  %v3952_v53 = vsel %vm568_vm0, %v545_v51, 0  ;;  %v3954_v55 = vld [vmem:[#allocation1 + $0x9] sm:$0xff]  ;;  %v3958_v57 = vld [vmem:[#allocation1] sm:$0xff] }
  0x6a   : > { %s439_s7 = sshrl.u32 %s5882_s12, 16  ;;  %s460_s13 = sand.u32 4294901760, %s459_s4  ;;  %5718 = vst [vmem:[#allocation26_spill] sm:$0xff] %v3952_v53  ;;  %v3961_v58 = vsel %vm568_vm0, %v546_v52, 0  ;;  %v3963_v59 = vld [vmem:[#allocation1 + $0x12] sm:$0xff]  ;;  %v3965_v60 = vld [vmem:[#allocation1 + $0x1b] sm:$0xff]  ;;  %v551_v45 = vpack.c.b16 %v519_v42, %v519_v42  ;;  %v552_v46 = vpack.c.b16 %v520_v43, %v520_v43 }
  0x6b   : > { %s440_s15 = sshll.u32 %s439_s7, 16  ;;  %s5884_s13 = smov (%p455_p3, %s460_s13), 2143289344  ;;  %5719 = vst [vmem:[#allocation27_spill] sm:$0xff] %v3961_v58  ;;  %v3967_v61 = vld [vmem:[#allocation1 + $0x24] sm:$0xff]  ;;  %v3973_v62 = vld [vmem:[#allocation1 + $0x2d] sm:$0xff]  ;;  %v3975_v63 = vld [vmem:[#allocation1 + $0x36] sm:$0xff] }
  0x6c   : > { %s441_s27 = sor.u32 %s440_s15, %s439_s7  ;;  %s463_s14 = sshrl.u32 %s5884_s13, 16  ;;  %721 = vrot.lane.b32.xlu1 %v3876_v18, %s3580_s10  ;;  %v3977_v0 = vld [vmem:[#allocation1 + $0x3f] sm:$0xff]  ;;  %v3984_v3 = vsel %vm568_vm0, %v547_v1, 0  ;;  %v4013_v23 = vsel %vm568_vm0, %v548_v10, 0  ;;  %v4062_v54 = vsel %vm568_vm0, %v551_v45, 0  ;;  %v521_v1 = vunpack.c.h.b16 %v480_v32 }
  0x6d   : > { %v442_v21 = vstv %s441_s27  ;;  %s464_s26 = sshll.u32 %s463_s14, 16  ;;  %s3581_s9 = smov 127   ;;  %717 = vrot.lane.b32.xlu0 %v3884_v19, %s3580_s10  ;;  %862 = vst [vmem:[#allocation1] ss:$9 sm:$0xff] %v3956_v56  ;;  %vm779_vm1 = vcmask 7168   ;;  %vm1269_vm2 = vcmask 1039360  }
  0x6e   : > { %v448_v22 = vunpack.c.l.bf16 %v442_v21  ;;  %1207 = vrot.lane.b32.xlu2 %v3863_v15, %s3581_s9  ;;  %s465_s21 = sor.u32 %s464_s26, %s463_s14  ;;  %5720 = vst [vmem:[#allocation28_spill] sm:$0xff] %v3984_v3  ;;  %s5764_s16 = sld [smem:[#allocation76_spill]]  ;;  %vm2073_vm3 = vcmask 130048  }
  0x6f   : > { %v466_v26 = vstv %s465_s21  ;;  %5725 = vst [vmem:[#allocation33_spill] sm:$0xff] %v4013_v23  ;;  %s5782_s19 = sld [smem:[#allocation77_spill]]  ;;  %s3131_s6 = sshll.u32 %s3819_s5, 8 }
  0x70   : > { %v449_v24 = vmul.f32 %v448_v22, %v447_v20  ;;  %v469_v28 = vunpack.c.l.bf16 %v466_v26  ;;  %v549_v22 = vpack.c.b16 %v517_v5, %v517_v5  ;;  %5741 = vst [vmem:[#allocation49_spill] sm:$0xff] %v4062_v54  ;;  %s5210_s12 = scalar_lea.vmem [#allocation10], %s3131_s6  ;;  %s3178_s18 = sshll.u32 %s3569_s30, 8 }
  0x71   : > { %s5851_s7 = sld [smem:[#allocation79_spill]]  ;;  %s2957_s14 = sshll.u32 %s5210_s12, 4  ;;  %s2958_s14 = int_to_ptr.vmem [resolvable:$true] %s2957_s14 }
  0x72   : > { %v450_v25 = vpack.c.bf16 %v449_v24, %v449_v24  ;;  %v470_v30 = vmul.f32 %v469_v28, %v468_v27  ;;  %v518_v24 = vunpack.c.l.b16 %v479_v17  ;;  %v4024_v27 = vld [vmem:[#allocation8 + $0x18] sm:$0xff]  ;;  %s5853_s27 = sld [smem:[#allocation19_spill]] }
  0x73   : > { %5727 = vst [vmem:[#allocation35_spill] sm:$0xff] %v4024_v27 }
  0x74   : > { %v3897_v29 = vsel %vm568_vm0, %v450_v25, 0  ;;  %1205 = vrot.lane.b32.xlu1 %v3884_v19, %s3581_s9  ;;  %v471_v31 = vpack.c.bf16 %v470_v30, %v470_v30  ;;  %v3992_v7 = vld [vmem:[#allocation1] sm:$0xff]  ;;  %v3994_v8 = vld [vmem:[#allocation1 + $0x9] sm:$0xff]  ;;  %v3996_v9 = vld [vmem:[#allocation1 + $0x12] sm:$0xff]  ;;  %v4016_v25 = vsel %vm568_vm0, %v549_v22, 0  ;;  %v550_v26 = vpack.c.b16 %v518_v24, %v518_v24 }
  0x75   : > { %1203 = vrot.lane.b32.xlu0 %v3866_v16, %s3581_s9  ;;  %v4000_v11 = vld [vmem:[#allocation1 + $0x1b] sm:$0xff]  ;;  %v4002_v12 = vld [vmem:[#allocation1 + $0x24] sm:$0xff]  ;;  %v4004_v13 = vld [vmem:[#allocation1 + $0x2d] sm:$0xff]  ;;  %5726 = vst [vmem:[#allocation34_spill] sm:$0xff] %v4016_v25  ;;  %v4075_v22 = vsel %vm568_vm0, %v552_v46, 0  ;;  %v553_v24 = vpack.c.b16 %v521_v1, %v521_v1 }
  0x76   : > { %1201 = vrot.lane.b32.xlu2 %v3897_v29, %s3581_s9  ;;  %v3907_v33 = vsel %vm568_vm0, %v471_v31, 0  ;;  %5721 = vst [vmem:[#allocation29_spill] sm:$0xff] %v4002_v12  ;;  %v4007_v20 = vld [vmem:[#allocation1 + $0x36] sm:$0xff]  ;;  %v4009_v21 = vld [vmem:[#allocation1 + $0x3f] sm:$0xff]  ;;  %v4044_v41 = vsel %vm568_vm0, %v550_v26, 0 }
  0x77   : > { %5716 = vst [vmem:[#allocation24_spill] sm:$0xff] %v3907_v33  ;;  %v481_v26 = vld [vmem:[%s3822_s11 + $0x48] sm:$0xff]  ;;  %v4086_v32 = vsel %vm568_vm0, %v553_v24, 0  ;;  %v482_v24 = vld [vmem:[%s3822_s11 + $0x50] sm:$0xff]  ;;  %s5852_s13 = smov %s5851_s7  ;;  %s2955_s15 = scalar_lea.hbm %s5851_s7, %s3178_s18 }
  0x78   : > { %5722 = vst [vmem:[#allocation30_spill] sm:$0xff] %v4004_v13  ;;  %v522_v42 = vunpack.c.l.b16 %v481_v26  ;;  %s2959_s26 = sshll.u32 %s2955_s15, 4  ;;  %p5854_p12 = scmp.ne.s32.totalorder %s5853_s27, 0  ;;  %s2960_s26 = int_to_ptr.hbm [resolvable:$true] %s2959_s26 }
  0x79   : > { %5723 = vst [vmem:[#allocation31_spill] sm:$0xff] %v4007_v20  ;;  %s3449_s30 = sshra.s32 %s2960_s26, 4  ;;  %s3450_s30 = int_to_ptr.hbm [resolvable:$true] %s3449_s30 }
  0x7a   : > { %5724 = vst [vmem:[#allocation32_spill] sm:$0xff] %v4009_v21  ;;  %v554_v1 = vpack.c.b16 %v522_v42, %v522_v42  ;;  %s3451_s21 = scalar_lea.hbm %s3450_s30, 256  ;;  %p3456_p7 = scmp.lt.s32.totalorder %s3450_s30, %s5852_s13 }
  0x7b   : > { %872 = vst [vmem:[#allocation1] ss:$9 sm:$0xff] %v3986_v6  ;;  %p3452_p6 = scmp.ne.s32.totalorder %s3450_s30, %s3451_s21 }
  0x7c   : > { %678 = vrot.lane.b32.xlu1 %v3907_v33, %s3580_s10  ;;  %5736 = vst [vmem:[#allocation44_spill] sm:$0xff] %v4044_v41 }
  0x7d   : > { %1209 = vrot.lane.b32.xlu0 %v3876_v18, %s3581_s9  ;;  %5747 = vst [vmem:[#allocation55_spill] sm:$0xff] %v4075_v22  ;;  %p3453_p2 = pnand %p3452_p6, %p5854_p12 }
  0x7e   : > { %713 = vrot.lane.b32.xlu2 %v3897_v29, %s3580_s10  ;;  %5748 = vst [vmem:[#allocation56_spill] sm:$0xff] %v4086_v32 }
  0x7f   : > { %p3454_p5 = pneg %p3453_p2 }
  0x82   : > { %v4026_v28 = vld [vmem:[#allocation1] sm:$0xff]  ;;  %v4028_v30 = vld [vmem:[#allocation1 + $0x9] sm:$0xff]  ;;  %v4030_v31 = vld [vmem:[#allocation1 + $0x12] sm:$0xff] }
  0x83   : > { %5728 = vst [vmem:[#allocation36_spill] sm:$0xff] %v4026_v28  ;;  %v4033_v34 = vld [vmem:[#allocation1 + $0x1b] sm:$0xff]  ;;  %v4035_v35 = vld [vmem:[#allocation1 + $0x24] sm:$0xff]  ;;  %v4037_v36 = vld [vmem:[#allocation1 + $0x2d] sm:$0xff] }
  0x84   : > { %727 = vrot.lane.b32.xlu1 %v3917_v38, %s3580_s10  ;;  %5729 = vst [vmem:[#allocation37_spill] sm:$0xff] %v4028_v30  ;;  %v4039_v37 = vld [vmem:[#allocation1 + $0x36] sm:$0xff]  ;;  %v4041_v40 = vld [vmem:[#allocation1 + $0x3f] sm:$0xff] }
  0x85   : > { %725 = vrot.lane.b32.xlu0 %v3920_v39, %s3580_s10  ;;  %5730 = vst [vmem:[#allocation38_spill] sm:$0xff] %v4030_v31 }
  0x86   : > { %1211 = vrot.lane.b32.xlu2 %v3860_v14, %s3581_s9  ;;  %5731 = vst [vmem:[#allocation39_spill] sm:$0xff] %v4033_v34 }
  0x87   : > { %5732 = vst [vmem:[#allocation40_spill] sm:$0xff] %v4035_v35 }
  0x88   : > { %5733 = vst [vmem:[#allocation41_spill] sm:$0xff] %v4037_v36 }
  0x89   : > { %5734 = vst [vmem:[#allocation42_spill] sm:$0xff] %v4039_v37 }
  0x8a   : > { %5735 = vst [vmem:[#allocation43_spill] sm:$0xff] %v4041_v40 }
  0x8b   : > { %882 = vst [vmem:[#allocation1] ss:$9 sm:$0xff] %v4024_v27 }
  0x8c   : > { %1215 = vrot.lane.b32.xlu1 %v3917_v38, %s3581_s9 }
  0x8d   : > { %1213 = vrot.lane.b32.xlu0 %v3920_v39, %s3581_s9 }
  0x8e   : > { %1217 = vrot.lane.b32.xlu2 %v3930_v44, %s3581_s9 }
  0x92   : > { %v4055_v50 = vld [vmem:[#allocation1] sm:$0xff]  ;;  %v4057_v51 = vld [vmem:[#allocation1 + $0x9] sm:$0xff]  ;;  %v4059_v52 = vld [vmem:[#allocation1 + $0x12] sm:$0xff] }
  0x93   : > { %5738 = vst [vmem:[#allocation46_spill] sm:$0xff] %v4055_v50  ;;  %v4064_v2 = vld [vmem:[#allocation1 + $0x1b] sm:$0xff]  ;;  %v4066_v4 = vld [vmem:[#allocation1 + $0x24] sm:$0xff]  ;;  %v4068_v5 = vld [vmem:[#allocation1 + $0x2d] sm:$0xff] }
  0x94   : > { %731 = vrot.lane.b32.xlu1 %v3940_v47, %s3580_s10  ;;  %5739 = vst [vmem:[#allocation47_spill] sm:$0xff] %v4057_v51  ;;  %v4070_v10 = vld [vmem:[#allocation1 + $0x36] sm:$0xff]  ;;  %v4072_v17 = vld [vmem:[#allocation1 + $0x3f] sm:$0xff] }
  0x95   : > { %729 = vrot.lane.b32.xlu0 %v3930_v44, %s3580_s10  ;;  %5740 = vst [vmem:[#allocation48_spill] sm:$0xff] %v4059_v52  ;;  %v483_v52 = vld [vmem:[%s3822_s11 + $0x58] sm:$0xff] }
  0x96   : > { %1219 = vrot.lane.b32.xlu2 %v3940_v47, %s3581_s9  ;;  %5742 = vst [vmem:[#allocation50_spill] sm:$0xff] %v4064_v2 }
  0x97   : > { %5743 = vst [vmem:[#allocation51_spill] sm:$0xff] %v4066_v4  ;;  %v524_v4 = vunpack.c.l.b16 %v482_v24 }
  0x98   : > { %5744 = vst [vmem:[#allocation52_spill] sm:$0xff] %v4068_v5  ;;  %v523_v5 = vunpack.c.h.b16 %v481_v26 }
  0x99   : > { %5745 = vst [vmem:[#allocation53_spill] sm:$0xff] %v4070_v10  ;;  %v525_v10 = vunpack.c.h.b16 %v482_v24  ;;  %v904_v24 = vpack.i.b16 %v3965_v60, %v3965_v60 }
  0x9a   : > { %5746 = vst [vmem:[#allocation54_spill] sm:$0xff] %v4072_v17  ;;  %v898_v17 = vpack.i.b16 %v3954_v55, %v3954_v55  ;;  %v901_v55 = vpack.i.b16 %v3963_v59, %v3963_v59 }
  0x9b   : > { %892 = vst [vmem:[#allocation1] ss:$9 sm:$0xff] %v4053_v48  ;;  %v4123_v48 = vld [vmem:[%s3822_s11 + $0x60] sm:$0xff] }
  0x9c   : > { %733 = vrot.lane.b32.xlu1 %v3952_v53, %s3580_s10 }
  0x9d   : > { %1221 = vrot.lane.b32.xlu0 %v3952_v53, %s3581_s9 }
  0x9e   : > { %735 = vrot.lane.b32.xlu2 %v3961_v58, %s3580_s10 }
  0xa2   : > { %v4088_v43 = vld [vmem:[#allocation1] sm:$0xff]  ;;  %v4090_v45 = vld [vmem:[#allocation1 + $0x9] sm:$0xff] }
  0xa3   : > { %5749 = vst [vmem:[#allocation57_spill] sm:$0xff] %v4088_v43  ;;  %v555_v43 = vpack.c.b16 %v523_v5, %v523_v5  ;;  %v556_v5 = vpack.c.b16 %v524_v4, %v524_v4  ;;  %v526_v4 = vunpack.c.l.b16 %v483_v52 }
  0xa4   : > { %1225 = vrot.lane.b32.xlu1 %v3984_v3, %s3581_s9  ;;  %5750 = vst [vmem:[#allocation58_spill] sm:$0xff] %v4090_v45  ;;  %v4103_v45 = vsel %vm568_vm0, %v554_v1, 0 }
  0xa5   : > { %1223 = vrot.lane.b32.xlu0 %v3961_v58, %s3581_s9  ;;  %1341 = vst [vmem:[#allocation1] ss:$9 sm:$0xff] %v3942_v49  ;;  %v4106_v26 = vsel %vm568_vm0, %v555_v43, 0  ;;  %v4118_v43 = vsel %vm568_vm0, %v556_v5, 0  ;;  %v910_v5 = vpack.i.b16 %v3973_v62, %v3973_v62  ;;  %v528_v62 = vunpack.c.l.b16 %v4123_v48 }
  0xa6   : > { %737 = vrot.lane.b32.xlu2 %v3984_v3, %s3580_s10  ;;  %5751 = vst [vmem:[#allocation59_spill] sm:$0xff] %v4103_v45 }
  0xa7   : > { %5752 = vst [vmem:[#allocation60_spill] sm:$0xff] %v4106_v26 }
  0xa8   : > { %5753 = vst [vmem:[#allocation61_spill] sm:$0xff] %v4118_v43 }
  0xac   : > { %1227 = vrot.lane.b32.xlu1 %v4013_v23, %s3581_s9  ;;  %v1344_v42 = vld [vmem:[#allocation1 + $0x12] sm:$0xff]  ;;  %v1342_v1 = vld [vmem:[#allocation1] sm:$0xff]  ;;  %v1343_v2 = vld [vmem:[#allocation1 + $0x9] sm:$0xff] }
  0xad   : > { %739 = vrot.lane.b32.xlu0 %v4013_v23, %s3580_s10  ;;  %v1388_v40 = vshrl.u32 %v1344_v42, 16  ;;  %v1380_v37 = vshrl.u32 %v1342_v1, 16  ;;  %v1345_v36 = vld [vmem:[#allocation1 + $0x1b] sm:$0xff]  ;;  %v1346_v42 = vld [vmem:[#allocation1 + $0x24] sm:$0xff]  ;;  %v557_v1 = vpack.c.b16 %v525_v10, %v525_v10  ;;  %v4148_v10 = vperm.slane %v904_v24, 0 }
  0xae   : > { %1229 = vrot.lane.b32.xlu2 %v4016_v25, %s3581_s9  ;;  %v1392_v51 = vshrl.u32 %v1345_v36, 16  ;;  %v1396_v34 = vshrl.u32 %v1346_v42, 16 }
  0xaf   : > { %v1389_v35 = vpack.i.b16 %v1388_v40, %v1388_v40 }
  0xb0   : > { %v1393_v3 = vpack.i.b16 %v1392_v51, %v1392_v51  ;;  %v1397_v24 = vpack.i.b16 %v1396_v34, %v1396_v34  ;;  %v1068_v51 = vunpack.c.l.bf16 %v4148_v10 }
  0xb1   : > { %v1391_v36 = vperm.slane %v1389_v35, 0 }
  0xb2   : > { %v1399_v31 = vperm.slane %v1397_v24, 0 }
  0xb4   : > { %743 = vrot.lane.b32.xlu1 %v4044_v41, %s3580_s10 }
  0xb5   : > { %741 = vrot.lane.b32.xlu0 %v4016_v25, %s3580_s10 }
  0xb6   : > { %1231 = vrot.lane.b32.xlu2 %v4044_v41, %s3581_s9 }
  0xbc   : > { %745 = vrot.lane.b32.xlu1 %v4062_v54, %s3580_s10 }
  0xbd   : > { %1233 = vrot.lane.b32.xlu0 %v4062_v54, %s3581_s9 }
  0xbe   : > { %747 = vrot.lane.b32.xlu2 %v4075_v22, %s3580_s10  ;;  %v4092_v46 = vpop.permute.xlu2 %723 }
  0xc4   : > { %1237 = vrot.lane.b32.xlu1 %v4086_v32, %s3581_s9 }
  0xc5   : > { %1235 = vrot.lane.b32.xlu0 %v4075_v22, %s3581_s9  ;;  %v1381_v22 = vpack.i.b16 %v1380_v37, %v1380_v37  ;;  %v4152_v37 = vsel %vm568_vm0, %v557_v1, 0  ;;  %v4184_v1 = vld [vmem:[#allocation1 + $0x3f] sm:$0xff] }
  0xc6   : > { %749 = vrot.lane.b32.xlu2 %v4086_v32, %s3580_s10  ;;  %v1384_v32 = vshrl.u32 %v1343_v2, 16  ;;  %v527_v2 = vunpack.c.h.b16 %v483_v52  ;;  %5755 = vst [vmem:[#allocation63_spill] sm:$0xff] %v4152_v37 }
  0xc7   : > { %v1383_v25 = vperm.slane %v1381_v22, 0 }
  0xc8   : > { %v4112_v49 = vpop.permute.xlu2 %1207  ;;  %v1385_v59 = vpack.i.b16 %v1384_v32, %v1384_v32  ;;  %v559_v40 = vpack.c.b16 %v527_v2, %v527_v2  ;;  %v560_v32 = vpack.c.b16 %v528_v62, %v528_v62  ;;  %v529_v2 = vunpack.c.h.b16 %v4123_v48 }
  0xca   : > { %v1387_v41 = vperm.slane %v1385_v59, 0  ;;  %v4168_v42 = vsel %vm568_vm0, %v559_v40, 0  ;;  %v4177_v34 = vsel %vm568_vm0, %v560_v32, 0  ;;  %v4186_v59 = vunpack.c.l.bf16 %v1383_v25 }
  0xcb   : > { %5757 = vst [vmem:[#allocation65_spill] sm:$0xff] %v4168_v42 }
  0xcc   : > { %1239 = vrot.lane.b32.xlu1 %v4103_v45, %s3581_s9  ;;  %5758 = vst [vmem:[#allocation66_spill] sm:$0xff] %v4177_v34 }
  0xcd   : > { %751 = vrot.lane.b32.xlu0 %v4103_v45, %s3580_s10  ;;  %v907_v45 = vpack.i.b16 %v3967_v61, %v3967_v61  ;;  %v4139_v61 = vperm.slane %v898_v17, 0  ;;  %v4146_v17 = vperm.slane %v901_v55, 0 }
  0xce   : > { %1241 = vrot.lane.b32.xlu2 %v4106_v26, %s3581_s9 }
  0xcf   : > { %v909_v52 = vperm.slane %v907_v45, 0  ;;  %v895_v45 = vpack.i.b16 %v3958_v57, %v3958_v57  ;;  %v1067_v22 = vunpack.c.l.bf16 %v4146_v17  ;;  %v4174_v57 = vunpack.c.l.bf16 %v1391_v36 }
  0xd0   : > { %v4142_v50 = vpop.permute.xlu2 %1201  ;;  %v1395_v17 = vperm.slane %v1393_v3, 0 }
  0xd1   : > { %5754 = vst [vmem:[#allocation62_spill] sm:$0xff] %v4142_v50  ;;  %v4190_v10 = vperm.slane %v895_v45, 0  ;;  %v913_v45 = vpack.i.b16 %v3975_v63, %v3975_v63 }
  0xd2   : > { %v4212_v63 = vunpack.c.l.bf16 %v1395_v17 }
  0xd4   : > { %755 = vrot.lane.b32.xlu1 %v4118_v43, %s3580_s10 }
  0xd5   : > { %753 = vrot.lane.b32.xlu0 %v4106_v26, %s3580_s10  ;;  %v912_v26 = vperm.slane %v910_v5, 0  ;;  %v1069_v5 = vunpack.c.l.bf16 %v909_v52  ;;  %v4188_v52 = vunpack.c.l.bf16 %v1387_v41 }
  0xd6   : > { %1243 = vrot.lane.b32.xlu2 %v4118_v43, %s3581_s9  ;;  %v720_v54 = vpop.permute.xlu1 %719  ;;  %v558_v43 = vpack.c.b16 %v526_v4, %v526_v4  ;;  %v4157_v4 = vld [vmem:[%s3822_s11 + $0x68] sm:$0xff] }
  0xd7   : > { %v4144_v60 = vpop.permute.xlu0 %715  ;;  %v1070_v35 = vunpack.c.l.bf16 %v912_v26  ;;  %v530_v48 = vunpack.c.l.b16 %v4157_v4  ;;  %v4180_v26 = vld [vmem:[#allocation1 + $0x2d] sm:$0xff] }
  0xd8   : > { %v4160_v55 = vsel %vm568_vm0, %v558_v43, 0  ;;  %v4182_v43 = vld [vmem:[#allocation1 + $0x36] sm:$0xff]  ;;  %v4196_v28 = vpop.permute.xlu2 %713 }
  0xd9   : > { %5756 = vst [vmem:[#allocation64_spill] sm:$0xff] %v4160_v55 }
  0xda   : > { %1350 = vst [vmem:[#allocation1] ss:$9 sm:$0xff] %v3956_v56  ;;  %v562_v56 = vpack.c.b16 %v530_v48, %v530_v48 }
  0xdc   : > { %757 = vrot.lane.b32.xlu1 %v4152_v37, %s3580_s10 }
  0xdd   : > { %1245 = vrot.lane.b32.xlu0 %v4152_v37, %s3581_s9  ;;  %v561_v37 = vpack.c.b16 %v529_v2, %v529_v2 }
  0xde   : > { %759 = vrot.lane.b32.xlu2 %v4160_v55, %s3580_s10  ;;  %v722_v62 = vpop.permute.xlu1 %721 }
  0xdf   : > { %v783_v40 = vsel %vm779_vm1, %v720_v54, %v722_v62  ;;  %v784_v36 = vsel %vm779_vm1, %v722_v62, %v4092_v46  ;;  %v718_v32 = vpop.permute.xlu0 %717 }
  0xe0   : > { %v1001_v30 = vunpack.c.l.bf16 %v783_v40  ;;  %v1002_v23 = vunpack.c.l.bf16 %v784_v36  ;;  %v1035_v27 = vunpack.c.h.bf16 %v783_v40  ;;  %v1036_v25 = vunpack.c.h.bf16 %v784_v36 }
  0xe1   : > { %v781_v3 = vsel %vm779_vm1, %v4144_v60, %v718_v32  ;;  %v782_v41 = vsel %vm779_vm1, %v718_v32, %v720_v54  ;;  %v780_v36 = vsel %vm779_vm1, %v4196_v28, %v4144_v60 }
  0xe2   : > { %v1103_v53 = vmul.f32 %v1069_v5, %v1001_v30  ;;  %v1104_v62 = vmul.f32 %v1070_v35, %v1002_v23  ;;  %v1137_v21 = vmul.f32 %v1069_v5, %v1035_v27  ;;  %v1138_v24 = vmul.f32 %v1070_v35, %v1036_v25 }
  0xe3   : > { %v999_v2 = vunpack.c.l.bf16 %v781_v3  ;;  %v1000_v20 = vunpack.c.l.bf16 %v782_v41  ;;  %v1033_v58 = vunpack.c.h.bf16 %v781_v3  ;;  %v1034_v40 = vunpack.c.h.bf16 %v782_v41 }
  0xe4   : > { %v4206_v13 = vpack.c.bf16 %v1104_v62, %v1103_v53  ;;  %v4208_v12 = vpack.c.bf16 %v1138_v24, %v1137_v21  ;;  %1249 = vrot.lane.b32.xlu1 %v4168_v42, %s3581_s9  ;;  %v1065_v53 = vunpack.c.l.bf16 %v4190_v10  ;;  %v4219_v21 = vunpack.c.l.bf16 %v1399_v31 }
  0xe5   : > { %v1101_v23 = vmul.f32 %v1067_v22, %v999_v2  ;;  %v1102_v27 = vmul.f32 %v1068_v51, %v1000_v20  ;;  %v1135_v30 = vmul.f32 %v1067_v22, %v1033_v58  ;;  %v1136_v54 = vmul.f32 %v1068_v51, %v1034_v40  ;;  %1247 = vrot.lane.b32.xlu0 %v4160_v55, %s3581_s9  ;;  %v4242_v2 = vpop.permute.xlu2 %1211 }
  0xe6   : > { %761 = vrot.lane.b32.xlu2 %v4168_v42, %s3580_s10  ;;  %v1206_v60 = vpop.permute.xlu1 %1205  ;;  %v4222_v5 = vsel %vm568_vm0, %v561_v37, 0  ;;  %v4225_v35 = vsel %vm568_vm0, %v562_v56, 0  ;;  %v998_v48 = vunpack.c.l.bf16 %v780_v36  ;;  %v4231_v22 = vperm.slane %v913_v45, 0 }
  0xe7   : > { %5759 = vst [vmem:[#allocation67_spill] sm:$0xff] %v4222_v5  ;;  %v4227_v17 = vpack.c.bf16 %v1102_v27, %v1101_v23  ;;  %v4229_v20 = vpack.c.bf16 %v1136_v54, %v1135_v30  ;;  %v1204_v58 = vpop.permute.xlu0 %1203  ;;  %v1756_v10 = vunpack.c.l.b16 %v4206_v13  ;;  %v1788_v37 = vunpack.c.l.b16 %v4208_v12 }
  0xe8   : > { %5760 = vst [vmem:[#allocation68_spill] sm:$0xff] %v4225_v35  ;;  %v1270_v51 = vsel %vm1269_vm2, %v4142_v50, %v1204_v58  ;;  %v1271_v31 = vsel %vm1269_vm2, %v1204_v58, %v1206_v60  ;;  %v1032_v56 = vunpack.c.h.bf16 %v780_v36  ;;  %v1272_v62 = vsel %vm1269_vm2, %v1206_v60, %v4112_v49 }
  0xe9   : > { %v1516_v32 = vunpack.c.l.bf16 %v1270_v51  ;;  %v1517_v25 = vunpack.c.l.bf16 %v1271_v31  ;;  %v1550_v3 = vunpack.c.h.bf16 %v1270_v51  ;;  %v1551_v41 = vunpack.c.h.bf16 %v1271_v31 }
  0xea   : > { %v1754_v45 = vunpack.c.l.b16 %v4227_v17  ;;  %v1786_v24 = vunpack.c.l.b16 %v4229_v20  ;;  %v4250_v36 = vpack.c.b16 %v1788_v37, %v1756_v10  ;;  %v916_v58 = vpack.i.b16 %v3977_v0, %v3977_v0 }
  0xeb   : > { %v1618_v40 = vmul.f32 %v4186_v59, %v1516_v32  ;;  %v1619_v23 = vmul.f32 %v4188_v52, %v1517_v25  ;;  %v1652_v27 = vmul.f32 %v4186_v59, %v1550_v3  ;;  %v1653_v30 = vmul.f32 %v4188_v52, %v1551_v41 }
  0xec   : > { %v4248_v54 = vpack.c.b16 %v1786_v24, %v1754_v45  ;;  %1251 = vrot.lane.b32.xlu1 %v4177_v34, %s3581_s9  ;;  %v1400_v51 = vshrl.u32 %v4180_v26, 16  ;;  %v1404_v31 = vshrl.u32 %v4182_v43, 16  ;;  %v5761_v10 = vunpack.c.l.bf16 %v4139_v61  ;;  %2130 = vmatpush.bf16.msra.mxu1 %v4250_v36 }
  0xed   : > { %763 = vrot.lane.b32.xlu0 %v4177_v34, %s3580_s10  ;;  %v4261_v59 = vpack.c.bf16 %v1619_v23, %v1618_v40  ;;  %v4263_v52 = vpack.c.bf16 %v1653_v30, %v1652_v27  ;;  %v1518_v25 = vunpack.c.l.bf16 %v1272_v62  ;;  %v531_v41 = vunpack.c.h.b16 %v4157_v4  ;;  %v4286_v50 = vpop.permute.xlu2 %1217 }
  0xee   : > { %1253 = vrot.lane.b32.xlu2 %v4222_v5, %s3581_s9  ;;  %v1100_v37 = vmul.f32 %v5761_v10, %v998_v48  ;;  %v5762_v32 = vmov %v5761_v10  ;;  %2078 = vmatpush.bf16.msra.mxu0 %v4248_v54  ;;  %v4273_v3 = vpop.permute.xlu1 %678  ;;  %v1552_v45 = vunpack.c.h.bf16 %v1272_v62  ;;  %v1408_v23 = vshrl.u32 %v4184_v1, 16  ;;  %v486_v1 = vld [vmem:[%s3822_s11 + $0x70] sm:$0xff] }
  0xef   : > { %v1134_v0 = vmul.f32 %v5762_v32, %v1032_v56  ;;  %5763 = vst [vmem:[#allocation69_spill] sm:$0xff] %v4273_v3  ;;  %v1210_v24 = vpop.permute.xlu0 %1209  ;;  %v849_v26 = vsel %vm779_vm1, %v4273_v3, %v4196_v28  ;;  %v1913_v43 = vunpack.c.h.b16 %v4261_v59  ;;  %v1945_v61 = vunpack.c.h.b16 %v4263_v52 }
  0xf0   : > { %v1273_v48 = vsel %vm1269_vm2, %v4112_v49, %v1210_v24  ;;  %v997_v56 = vunpack.c.l.bf16 %v849_v26  ;;  %v1031_v40 = vunpack.c.h.bf16 %v849_v26  ;;  %v1401_v62 = vpack.i.b16 %v1400_v51, %v1400_v51 }
  0xf1   : > { %v1519_v27 = vunpack.c.l.bf16 %v1273_v48  ;;  %v1553_v4 = vunpack.c.h.bf16 %v1273_v48  ;;  %v1405_v30 = vpack.i.b16 %v1404_v31, %v1404_v31  ;;  %v4284_v60 = vpack.c.b16 %v1945_v61, %v1913_v43 }
  0xf2   : > { %v1099_v10 = vmul.f32 %v1065_v53, %v997_v56  ;;  %v1133_v32 = vmul.f32 %v1065_v53, %v1031_v40  ;;  %v563_v28 = vpack.c.b16 %v531_v41, %v531_v41  ;;  %v1620_v3 = vmul.f32 %v4174_v57, %v1518_v25 }
  0xf3   : > { %v1654_v49 = vmul.f32 %v4174_v57, %v1552_v45  ;;  %v1621_v42 = vmul.f32 %v4212_v63, %v1519_v27  ;;  %v1655_v26 = vmul.f32 %v4212_v63, %v1553_v4  ;;  %2079 = vmatpush.bf16.msra.mxu0 %v4284_v60  ;;  %v4296_v53 = vperm.slane %v916_v58, 0  ;;  %v4307_v45 = vld [vmem:[%s5764_s16] sm:$0xff]  ;;  %s3455_s16 = scalar_lea.hbm %s5852_s13, 512 }
  0xf4   : > { %767 = vrot.lane.b32.xlu1 %v4225_v35, %s3580_s10  ;;  %v4298_v51 = vpack.c.bf16 %v1100_v37, %v1099_v10  ;;  %v4300_v31 = vpack.c.bf16 %v1134_v0, %v1133_v32  ;;  %v1409_v41 = vpack.i.b16 %v1408_v23, %v1408_v23  ;;  %v1403_v57 = vperm.slane %v1401_v62, 0  ;;  %p3457_p10 = scmp.lt.s32.totalorder %s3455_s16, %s3451_s21 }
  0xf5   : > { %v1687_v25 = vpack.c.bf16 %v1621_v42, %v1620_v3  ;;  %v1704_v43 = vpack.c.bf16 %v1655_v26, %v1654_v49  ;;  %765 = vrot.lane.b32.xlu0 %v4222_v5, %s3580_s10  ;;  %v1407_v63 = vperm.slane %v1405_v30, 0  ;;  %v1274_v58 = vsel %vm1269_vm2, %v1210_v24, %v4242_v2 }
  0xf6   : > { %v4311_v37 = vpop.permute.xlu1 %727  ;;  %v1753_v0 = vunpack.c.h.b16 %v4298_v51  ;;  %v1785_v42 = vunpack.c.h.b16 %v4300_v31  ;;  %v532_v3 = vunpack.c.l.b16 %v486_v1  ;;  %1255 = vrot.lane.b32.xlu2 %v4225_v35, %s3581_s9  ;;  %v1411_v24 = vperm.slane %v1409_v41, 0  ;;  %p3458_p0 = por %p3457_p10, %p3456_p7 }
  0xf7   : > { %v726_v61 = vpop.permute.xlu0 %725  ;;  %v1914_v48 = vunpack.c.l.b16 %v1687_v25  ;;  %v1946_v56 = vunpack.c.l.b16 %v1704_v43  ;;  %v1915_v40 = vunpack.c.h.b16 %v1687_v25  ;;  %v1947_v23 = vunpack.c.h.b16 %v1704_v43  ;;  %2080 = vmatpush.bf16.msra.mxu0 %v3866_v16 }
  0xf8   : > { %v4318_v27 = vpack.c.b16 %v1785_v42, %v1753_v0  ;;  %v1755_v4 = vunpack.c.h.b16 %v4227_v17  ;;  %v2069_v62 = vunpack.c.h.b16 %v4307_v45  ;;  %v1520_v30 = vunpack.c.l.bf16 %v1274_v58  ;;  %v4329_v0 = vpop.permute.xlu2 %1219  ;;  %p3459_p8 = pnand %p3458_p0, %p3454_p5 }
  0xf9   : > { %v1554_v10 = vunpack.c.h.bf16 %v1274_v58  ;;  %v1912_v32 = vunpack.c.l.b16 %v4261_v59  ;;  %v1944_v49 = vunpack.c.l.b16 %v4263_v52  ;;  %v4324_v26 = vpack.c.b16 %v1946_v56, %v1914_v48 }
  0xfa   : > { %v4326_v5 = vpack.c.b16 %v1947_v23, %v1915_v40  ;;  %v1787_v25 = vunpack.c.h.b16 %v4229_v20  ;;  %v533_v43 = vunpack.c.h.b16 %v486_v1  ;;  %v4333_v17 = vsel %vm568_vm0, %v563_v28, 0 }
  0xfb   : > { %5765 = vst [vmem:[#allocation70_spill] sm:$0xff] %v4333_v17  ;;  %v1589_v42 = vunpack.c.l.bf16 %v1403_v57  ;;  %v564_v58 = vpack.c.b16 %v532_v3, %v532_v3  ;;  %v785_v59 = vsel %vm779_vm1, %v4092_v46, %v726_v61  ;;  %2081 = vmatpush.bf16.msra.mxu0 %v4318_v27  ;;  %2097 = vmatpush.bf16.msra.mxu2 %v4324_v26  ;;  %v1590_v52 = vunpack.c.l.bf16 %v1407_v63 }
  0xfc   : > { %v1591_v48 = vunpack.c.l.bf16 %v1411_v24  ;;  %v4339_v20 = vpack.c.b16 %v2069_v62, %v2069_v62  ;;  %v1622_v1 = vmul.f32 %v4219_v21, %v1520_v30  ;;  %v1656_v56 = vmul.f32 %v4219_v21, %v1554_v10  ;;  %2123 = vmatpush.bf16.msra.mxu3 %v4326_v5  ;;  %2131 = vmatpush.bf16.msra.mxu1 %v4326_v5 }
  0xfd   : > { %v1976_v28 = vpack.c.b16 %v1944_v49, %v1912_v32  ;;  %v786_v46 = vsel %vm779_vm1, %v726_v61, %v4311_v37  ;;  %1257 = vrot.lane.b32.xlu0 %v4333_v17, %s3581_s9  ;;  %v4350_v63 = vpack.c.b16 %v1787_v25, %v1755_v4  ;;  %v565_v3 = vpack.c.b16 %v533_v43, %v533_v43 }
  0xfe   : > { %v1216_v57 = vpop.permute.xlu1 %1215  ;;  %v2068_v21 = vunpack.c.l.b16 %v4307_v45  ;;  %v1003_v40 = vunpack.c.l.bf16 %v785_v59  ;;  %v1037_v23 = vunpack.c.h.bf16 %v785_v59  ;;  %769 = vrot.lane.b32.xlu1 %v4333_v17, %s3580_s10  ;;  %v4358_v62 = vsel %vm568_vm0, %v564_v58, 0  ;;  %3132 = vmatmul.msk.bf16.vlgmr.msra.gmra.mxu2 %vm2073_vm3, %v4339_v20  ;;  %v4369_v58 = vld [vmem:[%s3822_s11 + $0x78] sm:$0xff] }
  0xff   : > { %2103 = vmatpush.bf16.msrb.mxu2 %v3863_v15  ;;  %v1214_v24 = vpop.permute.xlu0 %1213  ;;  %v1277_v61 = vsel %vm1269_vm2, %v1216_v57, %v4286_v50  ;;  %5766 = vst [vmem:[#allocation71_spill] sm:$0xff] %v4358_v62  ;;  %2082 = vmatpush.bf16.msra.mxu0 %v1976_v28  ;;  %v1038_v59 = vunpack.c.h.bf16 %v786_v46  ;;  %v1752_v28 = vunpack.c.l.b16 %v4298_v51 }
 0x100   : > { %v1275_v4 = vsel %vm1269_vm2, %v4242_v2, %v1214_v24  ;;  %v1276_v45 = vsel %vm1269_vm2, %v1214_v24, %v1216_v57  ;;  %v1523_v30 = vunpack.c.l.bf16 %v1277_v61  ;;  %v1557_v10 = vunpack.c.h.bf16 %v1277_v61  ;;  %3133 = vmatmul.msk.bf16.vlgmr.msra.gmra.mxu3 %vm2073_vm3, %v4339_v20  ;;  %2132 = vmatpush.bf16.msra.mxu1 %v3863_v15  ;;  %v4385_v51 = vpop.permute.xlu2 %735 }
 0x101   : > { %v1521_v32 = vunpack.c.l.bf16 %v1275_v4  ;;  %v1555_v49 = vunpack.c.h.bf16 %v1275_v4  ;;  %v1522_v25 = vunpack.c.l.bf16 %v1276_v45  ;;  %v1556_v43 = vunpack.c.h.bf16 %v1276_v45  ;;  %771 = vrot.lane.b32.xlu2 %v4358_v62, %s3580_s10 }
 0x102   : > { %v1004_v2 = vunpack.c.l.bf16 %v786_v46  ;;  %v1784_v57 = vunpack.c.l.b16 %v4300_v31  ;;  %v5767_v24 = vunpack.c.l.bf16 %v4231_v22  ;;  %v4379_v45 = vsel %vm568_vm0, %v565_v3, 0 }
 0x103   : > { %2104 = vmatpush.bf16.msrb.mxu2 %v4350_v63  ;;  %v1623_v41 = vmul.f32 %v1589_v42, %v1521_v32  ;;  %v1657_v4 = vmul.f32 %v1589_v42, %v1555_v49  ;;  %5768 = vst [vmem:[#allocation72_spill] sm:$0xff] %v4379_v45  ;;  %v1625_v34 = vmul.f32 %v1591_v48, %v1523_v30  ;;  %v534_v46 = vunpack.c.l.b16 %v4369_v58 }
 0x104   : > { %v1105_v61 = vmul.f32 %v5767_v24, %v1003_v40  ;;  %v5769_v17 = vmov %v5767_v24  ;;  %v1659_v55 = vmul.f32 %v1591_v48, %v1557_v10  ;;  %2083 = vmatpush.bf16.msra.mxu0 %v3897_v29  ;;  %v1624_v15 = vmul.f32 %v1590_v52, %v1522_v25  ;;  %2133 = vmatpush.bf16.msra.mxu1 %v4350_v63  ;;  %v1351_v10 = vld [vmem:[#allocation1] sm:$0xff]  ;;  %v1352_v25 = vld [vmem:[#allocation1 + $0x9] sm:$0xff] }
 0x105   : > { %v1139_v35 = vmul.f32 %v5769_v17, %v1037_v23  ;;  %v1688_v31 = vpack.c.bf16 %v1623_v41, %v1622_v1  ;;  %v1705_v44 = vpack.c.bf16 %v1657_v4, %v1656_v56  ;;  %v1658_v40 = vmul.f32 %v1590_v52, %v1556_v43  ;;  %1259 = vrot.lane.b32.xlu0 %v4358_v62, %s3581_s9 }
 0x106   : > { %v5770_v42 = vunpack.c.l.bf16 %v4296_v53  ;;  %v4395_v29 = vpop.permute.xlu1 %731  ;;  %v1816_v48 = vpack.c.b16 %v1784_v57, %v1752_v28  ;;  %1261 = vrot.lane.b32.xlu1 %v4379_v45, %s3581_s9  ;;  %v4401_v56 = vpack.c.b16 %v2068_v21, %v2068_v21  ;;  %v566_v30 = vpack.c.b16 %v534_v46, %v534_v46 }
 0x107   : > { %2105 = vmatpush.bf16.msrb.mxu2 %v4324_v26  ;;  %v4399_v41 = vpop.permute.xlu0 %729  ;;  %v1916_v52 = vunpack.c.l.b16 %v1688_v31  ;;  %v1948_v1 = vunpack.c.l.b16 %v1705_v44  ;;  %v1917_v53 = vunpack.c.h.b16 %v1688_v31  ;;  %v1949_v23 = vunpack.c.h.b16 %v1705_v44 }
 0x108   : > { %v1106_v3 = vmul.f32 %v5770_v42, %v1004_v2  ;;  %v5771_v22 = vmov %v5770_v42  ;;  %2084 = vmatpush.bf16.msra.mxu0 %v1816_v48  ;;  %v1689_v32 = vpack.c.bf16 %v1625_v34, %v1624_v15  ;;  %v1706_v49 = vpack.c.bf16 %v1659_v55, %v1658_v40  ;;  %2134 = vmatpush.bf16.msra.mxu1 %v4324_v26  ;;  %v4454_v48 = vld [vmem:[#allocation1 + $0x12] sm:$0xff] }
 0x109   : > { %v1140_v17 = vmul.f32 %v5771_v22, %v1038_v59  ;;  %773 = vrot.lane.b32.xlu2 %v4379_v45, %s3580_s10  ;;  %v4411_v21 = vpack.c.b16 %v1948_v1, %v1916_v52  ;;  %v4413_v59 = vpack.c.b16 %v1949_v23, %v1917_v53  ;;  %v1412_v15 = vshrl.u32 %v1351_v10, 16  ;;  %v4456_v52 = vld [vmem:[#allocation1 + $0x1b] sm:$0xff]  ;;  %v4458_v1 = vld [vmem:[#allocation1 + $0x24] sm:$0xff]  ;;  %v4462_v23 = vld [vmem:[#allocation1 + $0x2d] sm:$0xff] }
 0x10a   : > { %v4406_v43 = vpack.c.bf16 %v1106_v3, %v1105_v61  ;;  %v4419_v44 = vsel %vm568_vm0, %v566_v30, 0  ;;  %v1416_v55 = vshrl.u32 %v1352_v25, 16  ;;  %v1757_v34 = vunpack.c.h.b16 %v4206_v13  ;;  %v4435_v13 = vpop.permute.xlu2 %737  ;;  %v4466_v30 = vld [vmem:[#allocation1 + $0x3f] sm:$0xff] }
 0x10b   : > { %v4408_v2 = vpack.c.bf16 %v1140_v17, %v1139_v35  ;;  %2106 = vmatpush.bf16.msrb.mxu2 %v3884_v19  ;;  %2085 = vmatmul.bf16.vlgmr.msra.gmra.mxu0 %v4401_v56  ;;  %5772 = vst [vmem:[#allocation73_spill] sm:$0xff] %v4419_v44  ;;  %v1789_v35 = vunpack.c.h.b16 %v4208_v12  ;;  %v1918_v26 = vunpack.c.l.b16 %v1689_v32  ;;  %v1950_v28 = vunpack.c.l.b16 %v1706_v49 }
 0x10c   : > { %2149 = vmatpush.bf16.msrb.mxu3 %v4411_v21  ;;  %2175 = vmatpush.bf16.msrb.mxu0 %v4413_v59  ;;  %v919_v57 = vpack.i.b16 %v3992_v7, %v3992_v7  ;;  %v922_v24 = vpack.i.b16 %v3994_v8, %v3994_v8  ;;  %v1759_v12 = vunpack.c.h.b16 %v4406_v43  ;;  %v1919_v4 = vunpack.c.h.b16 %v1689_v32 }
 0x10d   : > { %2135 = vmatpush.bf16.msra.mxu1 %v3884_v19  ;;  %v1791_v19 = vunpack.c.h.b16 %v4408_v2  ;;  %v1951_v46 = vunpack.c.h.b16 %v1706_v49  ;;  %775 = vrot.lane.b32.xlu0 %v4419_v44, %s3580_s10  ;;  %v4443_v8 = vpack.c.b16 %v1789_v35, %v1757_v34  ;;  %v535_v31 = vunpack.c.h.b16 %v4369_v58 }
 0x10e   : > { %v4431_v61 = vpop.permute.xlu1 %733  ;;  %1263 = vrot.lane.b32.xlu1 %v4419_v44, %s3581_s9  ;;  %v1413_v40 = vpack.i.b16 %v1412_v15, %v1412_v15  ;;  %v1417_v42 = vpack.i.b16 %v1416_v55, %v1416_v55  ;;  %v4446_v3 = vpack.c.b16 %v1950_v28, %v1918_v26  ;;  %v921_v58 = vperm.slane %v919_v57, 0 }
 0x10f   : > { %2107 = vmatpush.bf16.msrb.mxu2 %v4248_v54  ;;  %v4441_v7 = vpop.permute.xlu0 %1221  ;;  %v4452_v22 = vpack.c.b16 %v1791_v19, %v1759_v12  ;;  %v567_v17 = vpack.c.b16 %v535_v31, %v535_v31  ;;  %v924_v53 = vperm.slane %v922_v24, 0  ;;  %v4469_v10 = vpack.c.b16 %v1951_v46, %v1919_v4 }
 0x110   : > { %2155 = vmatpush.bf16.msra.mxu3 %v3860_v14  ;;  %2207 = vmatpush.bf16.msra.mxu0 %v3917_v38  ;;  %v788_v49 = vsel %vm779_vm1, %v4399_v41, %v4395_v29  ;;  %v1415_v25 = vperm.slane %v1413_v40, 0  ;;  %v1419_v15 = vperm.slane %v1417_v42, 0  ;;  %v1278_v55 = vsel %vm1269_vm2, %v4286_v50, %v4329_v0 }
 0x111   : > { %3134 = vmatmul.msk.bf16.vlgmr.msrb.gmra.mxu3 %vm2073_vm3, %v4339_v20  ;;  %2136 = vmatpush.bf16.msra.mxu1 %v4248_v54  ;;  %v4464_v54 = vld [vmem:[#allocation1 + $0x36] sm:$0xff]  ;;  %v4472_v32 = vsel %vm568_vm0, %v567_v17, 0  ;;  %v1006_v28 = vunpack.c.l.bf16 %v788_v49  ;;  %v1040_v57 = vunpack.c.h.bf16 %v788_v49  ;;  %v1524_v19 = vunpack.c.l.bf16 %v1278_v55 }
 0x112   : > { %5773 = vst [vmem:[#allocation74_spill] sm:$0xff] %v4472_v32  ;;  %1265 = vrot.lane.b32.xlu2 %v4472_v32, %s3581_s9  ;;  %v1592_v24 = vunpack.c.l.bf16 %v1415_v25  ;;  %v1593_v12 = vunpack.c.l.bf16 %v1419_v15  ;;  %v1558_v4 = vunpack.c.h.bf16 %v1278_v55  ;;  %v1758_v31 = vunpack.c.l.b16 %v4406_v43 }
 0x113   : > { %2108 = vmatpush.bf16.msrb.mxu2 %v4284_v60  ;;  %1359 = vst [vmem:[#allocation1] ss:$9 sm:$0xff] %v3986_v6  ;;  %v787_v60 = vsel %vm779_vm1, %v4311_v37, %v4399_v41  ;;  %v1073_v6 = vunpack.c.l.bf16 %v921_v58  ;;  %v1074_v37 = vunpack.c.l.bf16 %v924_v53  ;;  %v1279_v41 = vsel %vm1269_vm2, %v4329_v0, %v4441_v7 }
 0x114   : > { %2156 = vmatpush.bf16.msra.mxu3 %v4443_v8  ;;  %2208 = vmatpush.bf16.msra.mxu0 %v4452_v22  ;;  %v1005_v35 = vunpack.c.l.bf16 %v787_v60  ;;  %v1039_v26 = vunpack.c.h.bf16 %v787_v60  ;;  %v1525_v0 = vunpack.c.l.bf16 %v1279_v41  ;;  %v1559_v46 = vunpack.c.h.bf16 %v1279_v41 }
 0x115   : > { %2201 = vmatpush.bf16.msrb.mxu1 %v4446_v3  ;;  %777 = vrot.lane.b32.xlu0 %v4472_v32, %s3580_s10  ;;  %v1790_v40 = vunpack.c.l.b16 %v4408_v2  ;;  %v925_v42 = vpack.i.b16 %v3996_v9, %v3996_v9  ;;  %v1420_v17 = vshrl.u32 %v4454_v48, 16  ;;  %v1424_v58 = vshrl.u32 %v4456_v52, 16 }
 0x116   : > { %2137 = vmatmul.bf16.vlgmr.msra.gmra.mxu1 %v4401_v56  ;;  %v4493_v34 = vpop.permute.xlu1 %1225  ;;  %1267 = vrot.lane.b32.xlu1 %v3907_v33, %s3581_s9  ;;  %v1107_v53 = vmul.f32 %v1073_v6, %v1005_v35  ;;  %v1141_v60 = vmul.f32 %v1073_v6, %v1039_v26  ;;  %v1108_v49 = vmul.f32 %v1074_v37, %v1006_v28  ;;  %s2942_s9 = scalar_lea.sflag [#allocation4], %s3819_s5 }
 0x117   : > { %2109 = vmatpush.bf16.msrb.mxu2 %v3866_v16  ;;  %v1224_v50 = vpop.permute.xlu0 %1223  ;;  %v4500_v16 = vpop.permute.xlu2 %1229  ;;  %v1142_v25 = vmul.f32 %v1074_v37, %v1040_v57  ;;  %v1626_v15 = vmul.f32 %v1592_v24, %v1524_v19  ;;  %v1660_v55 = vmul.f32 %v1592_v24, %v1558_v4  ;;  %v928_v43 = vpack.i.b16 %v4000_v11, %v4000_v11 }
 0x118   : > { %2157 = vmatpush.bf16.msra.mxu3 %v4411_v21  ;;  %2209 = vmatpush.bf16.msra.mxu0 %v4446_v3  ;;  %v1627_v9 = vmul.f32 %v1593_v12, %v1525_v0  ;;  %v1661_v2 = vmul.f32 %v1593_v12, %v1559_v46  ;;  %v1421_v48 = vpack.i.b16 %v1420_v17, %v1420_v17  ;;  %v927_v41 = vperm.slane %v925_v42, 0 }
 0x119   : > { %2227 = vmatpush.bf16.msra.mxu1 %v4469_v10  ;;  %v1425_v52 = vpack.i.b16 %v1424_v58, %v1424_v58  ;;  %v4522_v37 = vpack.c.bf16 %v1108_v49, %v1107_v53  ;;  %v4524_v11 = vpack.c.bf16 %v1142_v25, %v1141_v60  ;;  %v789_v26 = vsel %vm779_vm1, %v4395_v29, %v4431_v61  ;;  %v5774_v49 = vld [vmem:[#allocation23_spill] sm:$0xff] }
 0x11a   : > { %v1690_v28 = vpack.c.bf16 %v1627_v9, %v1626_v15  ;;  %v1707_v57 = vpack.c.bf16 %v1661_v2, %v1660_v55  ;;  %v930_v24 = vperm.slane %v928_v43, 0  ;;  %v790_v12 = vsel %vm779_vm1, %v4431_v61, %v4385_v51 }
 0x11b   : > { %2110 = vmatpush.bf16.msrb.mxu2 %v4318_v27  ;;  %3135 = vmatmul.msk.bf16.vlgmr.msrb.gmra.mxu0 %vm2073_vm3, %v4339_v20  ;;  %v4518_v27 = vpack.c.b16 %v1790_v40, %v1758_v31  ;;  %v1423_v19 = vperm.slane %v1421_v48, 0  ;;  %v1427_v4 = vperm.slane %v1425_v52, 0  ;;  %v1075_v46 = vunpack.c.l.bf16 %v927_v41 }
 0x11c   : > { %2158 = vmatpush.bf16.msra.mxu3 %v3876_v18  ;;  %2210 = vmatpush.bf16.msra.mxu0 %v3920_v39  ;;  %v1280_v31 = vsel %vm1269_vm2, %v4441_v7, %v1224_v50  ;;  %v1761_v29 = vunpack.c.h.b16 %v4522_v37  ;;  %v1793_v40 = vunpack.c.h.b16 %v4524_v11  ;;  %v1007_v42 = vunpack.c.l.bf16 %v789_v26 }
 0x11d   : > { %v1041_v17 = vunpack.c.h.bf16 %v789_v26  ;;  %v1281_v61 = vsel %vm1269_vm2, %v1224_v50, %v4493_v34  ;;  %v1921_v58 = vunpack.c.h.b16 %v1690_v28  ;;  %v1953_v53 = vunpack.c.h.b16 %v1707_v57 }
 0x11e   : > { %2111 = vmatmul.bf16.vlgmr.msrb.gmra.mxu2 %v4401_v56  ;;  %v4520_v6 = vpop.permute.xlu1 %1227  ;;  %v1076_v7 = vunpack.c.l.bf16 %v930_v24  ;;  %v1042_v60 = vunpack.c.h.bf16 %v790_v12  ;;  %v1594_v25 = vunpack.c.l.bf16 %v1423_v19  ;;  %v1526_v15 = vunpack.c.l.bf16 %v1280_v31 }
 0x11f   : > { %2181 = vmatpush.bf16.msra.mxu2 %v3920_v39  ;;  %v4527_v35 = vpop.permute.xlu0 %739  ;;  %v4537_v0 = vpop.permute.xlu2 %1231  ;;  %v1560_v55 = vunpack.c.h.bf16 %v1280_v31  ;;  %v1595_v43 = vunpack.c.l.bf16 %v1427_v4  ;;  %v1527_v50 = vunpack.c.l.bf16 %v1281_v61  ;;  %v1920_v48 = vunpack.c.l.b16 %v1690_v28  ;;  %v5775_v28 = vld [vmem:[#allocation25_spill] sm:$0xff] }
 0x120   : > { %2159 = vmatpush.bf16.msra.mxu3 %v4250_v36  ;;  %2211 = vmatpush.bf16.msra.mxu0 %v4518_v27  ;;  %v1952_v52 = vunpack.c.l.b16 %v1707_v57  ;;  %v1561_v41 = vunpack.c.h.bf16 %v1281_v61  ;;  %v1760_v26 = vunpack.c.l.b16 %v4522_v37  ;;  %v1792_v24 = vunpack.c.l.b16 %v4524_v11  ;;  %v5776_v37 = vld [vmem:[#allocation29_spill] sm:$0xff] }
 0x121   : > { %v1143_v19 = vmul.f32 %v1075_v46, %v1041_v17  ;;  %v1428_v4 = vshrl.u32 %v4458_v1, 16  ;;  %v1628_v31 = vmul.f32 %v1594_v25, %v1526_v15  ;;  %v4565_v57 = vpack.c.b16 %v1953_v53, %v1921_v58 }
 0x122   : > { %v1629_v61 = vmul.f32 %v1595_v43, %v1527_v50  ;;  %v931_v11 = vpack.i.b16 %v5776_v37, %v5776_v37  ;;  %v1663_v1 = vmul.f32 %v1595_v43, %v1561_v41  ;;  %v4576_v17 = vpack.c.b16 %v1792_v24, %v1760_v26 }
 0x123   : > { %2182 = vmatpush.bf16.msra.mxu2 %v4518_v27  ;;  %v1429_v53 = vpack.i.b16 %v1428_v4, %v1428_v4  ;;  %v791_v50 = vsel %vm779_vm1, %v4385_v51, %v4435_v13  ;;  %v1432_v41 = vshrl.u32 %v4462_v23, 16  ;;  %v1282_v24 = vsel %vm1269_vm2, %v4493_v34, %v4520_v6 }
 0x124   : > { %2160 = vmatpush.bf16.msra.mxu3 %v4326_v5  ;;  %2212 = vmatpush.bf16.msra.mxu0 %v4413_v59  ;;  %v1008_v5 = vunpack.c.l.bf16 %v790_v12  ;;  %v1109_v12 = vmul.f32 %v1075_v46, %v1007_v42  ;;  %v4570_v46 = vpack.c.b16 %v1952_v52, %v1920_v48  ;;  %v5777_v42 = vld [vmem:[#allocation30_spill] sm:$0xff]  ;;  %v4593_v15 = vpack.c.bf16 %v1629_v61, %v1628_v31 }
 0x125   : > { %v792_v48 = vsel %vm779_vm1, %v4435_v13, %v4527_v35  ;;  %v1431_v52 = vperm.slane %v1429_v53, 0  ;;  %v1043_v31 = vunpack.c.h.bf16 %v791_v50 }
 0x126   : > { %3136 = vmatmul.msk.bf16.vlgmr.msrb.gmra.mxu1 %vm2073_vm3, %v4339_v20  ;;  %v4551_v9 = vpop.permute.xlu1 %743  ;;  %v1010_v4 = vunpack.c.l.bf16 %v792_v48  ;;  %v1922_v13 = vunpack.c.l.b16 %v4593_v15 }
 0x127   : > { %2183 = vmatpush.bf16.msra.mxu2 %v4413_v59  ;;  %2259 = vmatpush.bf16.msrb.mxu1 %v3940_v47  ;;  %v4554_v59 = vpack.c.b16 %v1793_v40, %v1761_v29  ;;  %v4556_v2 = vpop.permute.xlu0 %741  ;;  %v1110_v29 = vmul.f32 %v1076_v7, %v1008_v5  ;;  %v1144_v40 = vmul.f32 %v1076_v7, %v1042_v60  ;;  %v4578_v5 = vpop.permute.xlu2 %747  ;;  %v933_v60 = vperm.slane %v931_v11, 0 }
 0x128   : > { %2161 = vmatpush.bf16.msra.mxu3 %v5774_v49  ;;  %2213 = vmatpush.bf16.msra.mxu0 %v3860_v14  ;;  %v5778_v49 = vld [vmem:[#allocation27_spill] sm:$0xff]  ;;  %v1596_v34 = vunpack.c.l.bf16 %v1431_v52  ;;  %v1562_v11 = vunpack.c.h.bf16 %v1282_v24  ;;  %v1440_v52 = vshrl.u32 %v4466_v30, 16  ;;  %v1283_v30 = vsel %vm1269_vm2, %v4520_v6, %v4500_v16 }
 0x129   : > { %v4582_v58 = vpack.c.bf16 %v1110_v29, %v1109_v12  ;;  %v1077_v51 = vunpack.c.l.bf16 %v933_v60  ;;  %v1009_v12 = vunpack.c.l.bf16 %v791_v50  ;;  %v1044_v29 = vunpack.c.h.bf16 %v792_v48 }
 0x12a   : > { %v1436_v60 = vshrl.u32 %v4464_v54, 16  ;;  %v1923_v54 = vunpack.c.h.b16 %v4593_v15 }
 0x12b   : > { %2184 = vmatpush.bf16.msra.mxu2 %v3860_v14  ;;  %2260 = vmatpush.bf16.msrb.mxu1 %v4554_v59  ;;  %v1662_v14 = vmul.f32 %v1594_v25, %v1560_v55  ;;  %v1763_v26 = vunpack.c.h.b16 %v4582_v58  ;;  %v1111_v50 = vmul.f32 %v1077_v51, %v1009_v12 }
 0x12c   : > { %2162 = vmatpush.bf16.msra.mxu3 %v4350_v63  ;;  %2214 = vmatpush.bf16.msra.mxu0 %v4443_v8  ;;  %v934_v63 = vpack.i.b16 %v5777_v42, %v5777_v42 }
 0x12d   : > { %v4595_v55 = vpack.c.bf16 %v1663_v1, %v1662_v14  ;;  %v1433_v14 = vpack.i.b16 %v1432_v41, %v1432_v41  ;;  %v5779_v1 = vld [vmem:[#allocation31_spill] sm:$0xff] }
 0x12e   : > { %v4586_v7 = vpop.permute.xlu1 %745  ;;  %v936_v43 = vperm.slane %v934_v63, 0  ;;  %v937_v42 = vpack.i.b16 %v5779_v1, %v5779_v1  ;;  %v5780_v63 = vld [vmem:[#allocation32_spill] sm:$0xff] }
 0x12f   : > { %2185 = vmatpush.bf16.msra.mxu2 %v4443_v8  ;;  %2261 = vmatpush.bf16.msrb.mxu1 %v4570_v46  ;;  %v4588_v8 = vpack.c.bf16 %v1144_v40, %v1143_v19  ;;  %v4591_v25 = vpop.permute.xlu0 %1233  ;;  %v1954_v23 = vunpack.c.l.b16 %v4595_v55  ;;  %v1528_v40 = vunpack.c.l.bf16 %v1282_v24  ;;  %v940_v53 = vpack.i.b16 %v5780_v63, %v5780_v63 }
 0x130   : > { %2233 = vmatpush.bf16.msrb.mxu3 %v5775_v28  ;;  %2279 = vmatpush.bf16.msrb.mxu0 %v4565_v57  ;;  %v1078_v19 = vunpack.c.l.bf16 %v936_v43  ;;  %v1435_v12 = vperm.slane %v1433_v14, 0  ;;  %v4653_v15 = vperm.slane %v937_v42, 0  ;;  %v793_v14 = vsel %vm779_vm1, %v4527_v35, %v4556_v2  ;;  %v4676_v42 = vld [vmem:[#allocation1] sm:$0xff]  ;;  %v5783_v35 = vld [vmem:[#allocation36_spill] sm:$0xff] }
 0x131   : > { %2163 = vmatmul.bf16.vlgmr.msra.gmra.mxu3 %v4401_v56  ;;  %2215 = vmatmul.bf16.vlgmr.msra.gmra.mxu0 %v4401_v56  ;;  %v4634_v41 = vpack.c.b16 %v1954_v23, %v1922_v13  ;;  %v1441_v13 = vpack.i.b16 %v1440_v52, %v1440_v52  ;;  %v1529_v23 = vunpack.c.l.bf16 %v1283_v30  ;;  %v3582_v52 = vmov 0  }
 0x132   : > { %v1112_v48 = vmul.f32 %v1078_v19, %v1010_v4  ;;  %v1146_v24 = vmul.f32 %v1078_v19, %v1044_v29  ;;  %v4645_v4 = vmul.f32 %v1596_v34, %v1528_v40  ;;  %v1794_v29 = vunpack.c.l.b16 %v4588_v8  ;;  %v4668_v40 = vld [vmem:[#allocation1 + $0x2d] sm:$0xff]  ;;  %3313 = vset.pattern.permute.xlu2 %v3582_v52  ;;  %3314 = vset.pattern.permute.xlu0 %v3582_v52 }
 0x133   : > { %2186 = vmatpush.bf16.msra.mxu2 %v4411_v21  ;;  %2262 = vmatpush.bf16.msrb.mxu1 %v5775_v28  ;;  %v1795_v21 = vunpack.c.h.b16 %v4588_v8  ;;  %v1597_v1 = vunpack.c.l.bf16 %v1435_v12  ;;  %v4678_v8 = vld [vmem:[#allocation1 + $0x9] sm:$0xff]  ;;  %v4702_v12 = vld [vmem:[#allocation1 + $0x3f] sm:$0xff]  ;;  %v1011_v32 = vunpack.c.l.bf16 %v793_v14  ;;  %v1045_v33 = vunpack.c.h.bf16 %v793_v14 }
 0x134   : > { %2234 = vmatpush.bf16.msrb.mxu3 %v4576_v17  ;;  %2311 = vmatpush.bf16.msra.mxu0 %v5778_v49  ;;  %v4651_v19 = vpack.c.bf16 %v1112_v48, %v1111_v50 }
 0x135   : > { %v4618_v61 = vpack.c.b16 %v1795_v21, %v1763_v26  ;;  %v1145_v26 = vmul.f32 %v1077_v51, %v1043_v31  ;;  %v1955_v21 = vunpack.c.h.b16 %v4595_v55  ;;  %v1437_v51 = vpack.i.b16 %v1436_v60, %v1436_v60  ;;  %v5781_v31 = vld [vmem:[#allocation26_spill] sm:$0xff] }
 0x136   : > { %3137 = vmatmul.msk.bf16.vlgmr.msra.gmra.mxu1 %vm2073_vm3, %v4339_v20  ;;  %v4621_v37 = vpop.permute.xlu1 %1237  ;;  %v4655_v55 = vperm.slane %v940_v53, 0  ;;  %v4685_v53 = vld [vmem:[#allocation1 + $0x36] sm:$0xff]  ;;  %v943_v60 = vpack.i.b16 %v5783_v35, %v5783_v35  ;;  %v1079_v35 = vunpack.c.l.bf16 %v4653_v15  ;;  %v1631_v44 = vmul.f32 %v1597_v1, %v1529_v23 }
 0x137   : > { %2187 = vmatpush.bf16.msra.mxu2 %v3876_v18  ;;  %2263 = vmatpush.bf16.msrb.mxu1 %v4576_v17  ;;  %v4623_v18 = vpop.permute.xlu2 %749  ;;  %v4630_v43 = vpop.permute.xlu0 %1235  ;;  %v4658_v6 = vpack.c.bf16 %v1146_v24, %v1145_v26  ;;  %v1439_v50 = vperm.slane %v1437_v51, 0  ;;  %v4700_v24 = vld [vmem:[#allocation1 + $0x1b] sm:$0xff]  ;;  %v1285_v51 = vsel %vm1269_vm2, %v4537_v0, %v4591_v25 }
 0x138   : > { %2235 = vmatpush.bf16.msrb.mxu3 %v4469_v10  ;;  %2312 = vmatpush.bf16.msra.mxu0 %v4618_v61  ;;  %v1080_v45 = vunpack.c.l.bf16 %v4655_v55  ;;  %v1531_v14 = vunpack.c.l.bf16 %v1285_v51 }
 0x139   : > { %v1797_v23 = vunpack.c.h.b16 %v4658_v6 }
 0x13b   : > { %2188 = vmatpush.bf16.msra.mxu2 %v4250_v36  ;;  %2264 = vmatpush.bf16.msrb.mxu1 %v4469_v10  ;;  %v4647_v36 = vmul.f32 %v1596_v34, %v1562_v11  ;;  %v1762_v10 = vunpack.c.l.b16 %v4582_v58  ;;  %v2061_v58 = vld [vmem:[%s5782_s19] sm:$0xff]  ;;  %v794_v11 = vsel %vm779_vm1, %v4556_v2, %v4551_v9  ;;  %v4692_v2 = vsel %vm1269_vm2, %v4500_v16, %v4537_v0 }
 0x13c   : > { %2236 = vmatpush.bf16.msrb.mxu3 %v3917_v38  ;;  %2313 = vmatpush.bf16.msra.mxu0 %v4634_v41  ;;  %v4666_v34 = vld [vmem:[#allocation1 + $0x24] sm:$0xff]  ;;  %v4708_v16 = vpack.c.b16 %v1955_v21, %v1923_v54  ;;  %v1012_v0 = vunpack.c.l.bf16 %v794_v11  ;;  %v4719_v54 = vperm.slane %v943_v60, 0  ;;  %v1598_v21 = vunpack.c.l.bf16 %v1439_v50 }
 0x13d   : > { %v4694_v48 = vpack.c.b16 %v1794_v29, %v1762_v10  ;;  %2064 = vperm.xlu2 %3313, %v2061_v58   ;;  %v5784_v29 = vld [vmem:[#allocation35_spill] sm:$0xff]  ;;  %v1530_v15 = vunpack.c.l.bf16 %v4692_v2  ;;  %v1564_v52 = vunpack.c.h.bf16 %v4692_v2 }
 0x13e   : > { %2189 = vmatmul.bf16.vlgmr.msra.gmra.mxu2 %v4401_v56  ;;  %v4683_v63 = vpop.permute.xlu1 %1239  ;;  %v1114_v60 = vmul.f32 %v1080_v45, %v1012_v0 }
 0x13f   : > { %2253 = vmatpush.bf16.msrb.mxu2 %v4570_v46  ;;  %2265 = vmatpush.bf16.msrb.mxu1 %v3917_v38  ;;  %v1563_v38 = vunpack.c.h.bf16 %v1283_v30  ;;  %v4696_v26 = vpop.permute.xlu0 %751  ;;  %v1443_v30 = vperm.slane %v1441_v13, 0  ;;  %v4710_v10 = vpop.permute.xlu2 %1241  ;;  %v1046_v13 = vunpack.c.h.bf16 %v794_v11  ;;  %v1113_v11 = vmul.f32 %v1079_v35, %v1011_v32 }
 0x140   : > { %2237 = vmatpush.bf16.msrb.mxu3 %v4452_v22  ;;  %2314 = vmatpush.bf16.msra.mxu0 %v5781_v31  ;;  %v1632_v2 = vmul.f32 %v1598_v21, %v1530_v15 }
 0x141   : > { %3139 = vmatmul.msk.bf16.vlgmr.msrb.gmra.mxu0 %vm2073_vm3, %v4339_v20  ;;  %v1665_v58 = vmul.f32 %v1597_v1, %v1563_v38  ;;  %v1599_v55 = vunpack.c.l.bf16 %v1443_v30  ;;  %v4730_v1 = vsel %vm779_vm1, %v4551_v9, %v4586_v7  ;;  %v1448_v38 = vshrl.u32 %v4678_v8, 16 }
 0x142   : > { %v1148_v50 = vmul.f32 %v1080_v45, %v1046_v13  ;;  %v1565_v30 = vunpack.c.h.bf16 %v1285_v51  ;;  %v1013_v45 = vunpack.c.l.bf16 %v4730_v1  ;;  %v5788_v13 = vld [vmem:[#allocation37_spill] sm:$0xff] }
 0x143   : > { %2285 = vmatpush.bf16.msra.mxu2 %v5781_v31  ;;  %2266 = vmatpush.bf16.msrb.mxu1 %v4452_v22  ;;  %v1765_v22 = vunpack.c.h.b16 %v4651_v19  ;;  %v1709_v9 = vpack.c.bf16 %v1665_v58, %v4647_v36  ;;  %v1633_v51 = vmul.f32 %v1599_v55, %v1531_v14  ;;  %v946_v58 = vpack.i.b16 %v5788_v13, %v5788_v13 }
 0x144   : > { %2238 = vmatpush.bf16.msrb.mxu3 %v4446_v3  ;;  %v4698_v3 = vld [vmem:[#allocation1 + $0x12] sm:$0xff]  ;;  %2315 = vmatpush.bf16.msra.mxu0 %v4694_v48  ;;  %v1667_v36 = vmul.f32 %v1599_v55, %v1565_v30 }
 0x145   : > { %1368 = vst [vmem:[#allocation1] ss:$9 sm:$0xff] %v5784_v29  ;;  %v1444_v29 = vshrl.u32 %v4676_v42, 16  ;;  %v5785_v42 = vld [vmem:[#allocation33_spill] sm:$0xff]  ;;  %v4743_v8 = vpack.c.b16 %v1797_v23, %v1765_v22  ;;  %v4766_v55 = vpack.c.bf16 %v1633_v51, %v1632_v2 }
 0x146   : > { %2267 = vmatmul.bf16.vlgmr.msrb.gmra.mxu1 %v4401_v56  ;;  %v4737_v32 = vpop.permute.xlu1 %755 }
 0x147   : > { %2286 = vmatpush.bf16.msra.mxu2 %v4694_v48  ;;  %2331 = vmatpush.bf16.msra.mxu1 %v4708_v16  ;;  %5786 = vst [vmem:[#allocation23_spill] sm:$0xff] %v4737_v32  ;;  %v4745_v62 = vpop.permute.xlu0 %753  ;;  %v1445_v0 = vpack.i.b16 %v1444_v29, %v1444_v29  ;;  %v1244_v22 = vpop.permute.xlu2 %1243  ;;  %v1957_v29 = vunpack.c.h.b16 %v1709_v9 }
 0x148   : > { %2239 = vmatpush.bf16.msrb.mxu3 %v3920_v39  ;;  %v1147_v39 = vmul.f32 %v1079_v35, %v1045_v33  ;;  %v1692_v33 = vpack.c.bf16 %v1631_v44, %v4645_v4  ;;  %v5674_v35 = vunpack.c.l.bf16 %v4719_v54  ;;  %5787 = vst [vmem:[#allocation25_spill] sm:$0xff] %v4745_v62  ;;  %2316 = vmatpush.bf16.msra.mxu0 %v4565_v57 }
 0x149   : > { %v4751_v44 = vpack.c.bf16 %v1114_v60, %v1113_v11  ;;  %v1666_v4 = vmul.f32 %v1598_v21, %v1564_v52  ;;  %v1764_v52 = vunpack.c.l.b16 %v4651_v19 }
 0x14a   : > { %v4756_v15 = vpack.c.bf16 %v1148_v50, %v1147_v39  ;;  %v1925_v14 = vunpack.c.h.b16 %v1692_v33  ;;  %v1924_v23 = vunpack.c.l.b16 %v1692_v33  ;;  %v4764_v21 = vmul.f32 %v5674_v35, %v1013_v45 }
 0x14b   : > { %2287 = vmatpush.bf16.msra.mxu2 %v4565_v57  ;;  %2363 = vmatpush.bf16.msrb.mxu1 %v5785_v42  ;;  %v5789_v57 = vld [vmem:[#allocation28_spill] sm:$0xff]  ;;  %v1286_v39 = vsel %vm1269_vm2, %v4591_v25, %v4630_v43  ;;  %v1956_v50 = vunpack.c.l.b16 %v1709_v9  ;;  %v4774_v30 = vpack.c.bf16 %v1667_v36, %v1666_v4  ;;  %v1287_v33 = vsel %vm1269_vm2, %v4630_v43, %v4621_v37 }
 0x14c   : > { %2240 = vmatpush.bf16.msrb.mxu3 %v4518_v27  ;;  %v1449_v27 = vpack.i.b16 %v1448_v38, %v1448_v38  ;;  %v1447_v38 = vperm.slane %v1445_v0, 0  ;;  %2317 = vmatpush.bf16.msra.mxu0 %v3940_v47  ;;  %v4779_v45 = vperm.slane %v946_v58, 0  ;;  %v4787_v25 = vsel %vm779_vm1, %v4586_v7, %v4578_v5 }
 0x14d   : > { %v4789_v9 = vpack.c.b16 %v1957_v29, %v1925_v14  ;;  %v4791_v19 = vpack.c.b16 %v1956_v50, %v1924_v23  ;;  %v1460_v0 = vshrl.u32 %v4666_v34, 16  ;;  %v1532_v43 = vunpack.c.l.bf16 %v1286_v39 }
 0x14e   : > { %3138 = vmatmul.msk.bf16.vlgmr.msrb.gmra.mxu2 %vm2073_vm3, %v4339_v20  ;;  %v1451_v60 = vperm.slane %v1449_v27, 0  ;;  %v4782_v2 = vpop.permute.xlu1 %757  ;;  %v1600_v27 = vunpack.c.l.bf16 %v1447_v38  ;;  %v1566_v4 = vunpack.c.h.bf16 %v1286_v39  ;;  %v1533_v13 = vunpack.c.l.bf16 %v1287_v33 }
 0x14f   : > { %2288 = vmatpush.bf16.msra.mxu2 %v3940_v47  ;;  %2364 = vmatpush.bf16.msrb.mxu1 %v4743_v8  ;;  %v1796_v47 = vunpack.c.l.b16 %v4658_v6  ;;  %5790 = vst [vmem:[#allocation29_spill] sm:$0xff] %v4782_v2  ;;  %v1246_v51 = vpop.permute.xlu0 %1245  ;;  %v1461_v7 = vpack.i.b16 %v1460_v0, %v1460_v0  ;;  %v1464_v58 = vshrl.u32 %v4668_v40, 16  ;;  %v1567_v14 = vunpack.c.h.bf16 %v1287_v33 }
 0x150   : > { %2305 = vmatpush.bf16.msra.mxu3 %v4634_v41  ;;  %2318 = vmatpush.bf16.msra.mxu0 %v4554_v59  ;;  %v1601_v36 = vunpack.c.l.bf16 %v1451_v60  ;;  %v1082_v29 = vunpack.c.l.bf16 %v4779_v45  ;;  %v1014_v34 = vunpack.c.l.bf16 %v4787_v25  ;;  %v1048_v23 = vunpack.c.h.bf16 %v4787_v25  ;;  %v4817_v45 = vpop.permute.xlu2 %759 }
 0x151   : > { %2241 = vmatmul.bf16.vlgmr.msrb.gmra.mxu3 %v4401_v56  ;;  %v4795_v6 = vpack.c.b16 %v1796_v47, %v1764_v52  ;;  %v1463_v38 = vperm.slane %v1461_v7, 0  ;;  %v1465_v39 = vpack.i.b16 %v1464_v58, %v1464_v58  ;;  %v1291_v40 = vsel %vm1269_vm2, %v1244_v22, %v1246_v51  ;;  %v5791_v52 = vld [vmem:[#allocation44_spill] sm:$0xff] }
 0x152   : > { %v4809_v60 = vmul.f32 %v1600_v27, %v1532_v43  ;;  %v4811_v50 = vmul.f32 %v1600_v27, %v1566_v4  ;;  %v1767_v33 = vunpack.c.h.b16 %v4751_v44  ;;  %v1635_v47 = vmul.f32 %v1601_v36, %v1533_v13 }
 0x153   : > { %2289 = vmatpush.bf16.msra.mxu2 %v4554_v59  ;;  %2365 = vmatpush.bf16.msrb.mxu1 %v4791_v19  ;;  %v1290_v59 = vsel %vm1269_vm2, %v4710_v10, %v1244_v22  ;;  %v1467_v25 = vperm.slane %v1465_v39, 0  ;;  %v1604_v0 = vunpack.c.l.bf16 %v1463_v38  ;;  %v1537_v22 = vunpack.c.l.bf16 %v1291_v40 }
 0x154   : > { %2337 = vmatpush.bf16.msrb.mxu3 %v5789_v57  ;;  %2383 = vmatpush.bf16.msrb.mxu0 %v4789_v9  ;;  %v1570_v43 = vunpack.c.h.bf16 %v1290_v59  ;;  %v1571_v7 = vunpack.c.h.bf16 %v1291_v40  ;;  %v1799_v27 = vunpack.c.h.b16 %v4756_v15  ;;  %v1926_v4 = vunpack.c.l.b16 %v4766_v55 }
 0x155   : > { %2319 = vmatmul.bf16.vlgmr.msra.gmra.mxu0 %v4401_v56  ;;  %v1605_v35 = vunpack.c.l.bf16 %v1467_v25  ;;  %v1958_v13 = vunpack.c.l.b16 %v4774_v30  ;;  %v1468_v39 = vshrl.u32 %v4685_v53, 16 }
 0x156   : > { %3141 = vmatmul.msk.bf16.vlgmr.msra.gmra.mxu1 %vm2073_vm3, %v4339_v20  ;;  %v4824_v58 = vpop.permute.xlu1 %1249  ;;  %v1672_v2 = vmul.f32 %v1604_v0, %v1570_v43  ;;  %v5792_v43 = vunpack.c.h.bf16 %v4730_v1  ;;  %v1766_v1 = vunpack.c.l.b16 %v4751_v44 }
 0x157   : > { %2290 = vmatpush.bf16.msra.mxu2 %v4570_v46  ;;  %v1536_v46 = vunpack.c.l.bf16 %v1290_v59  ;;  %2366 = vmatpush.bf16.msrb.mxu1 %v5789_v57  ;;  %v1248_v38 = vpop.permute.xlu0 %1247  ;;  %v4828_v59 = vpack.c.b16 %v1799_v27, %v1767_v33  ;;  %v1639_v32 = vmul.f32 %v1605_v35, %v1537_v22  ;;  %v1673_v62 = vmul.f32 %v1605_v35, %v1571_v7 }
 0x158   : > { %2338 = vmatpush.bf16.msrb.mxu3 %v4795_v6  ;;  %2415 = vmatpush.bf16.msra.mxu0 %v5791_v52  ;;  %v1292_v40 = vsel %vm1269_vm2, %v1246_v51, %v1248_v38  ;;  %v1669_v52 = vmul.f32 %v1601_v36, %v1567_v14  ;;  %v1469_v57 = vpack.i.b16 %v1468_v39, %v1468_v39  ;;  %v1452_v14 = vshrl.u32 %v4698_v3, 16 }
 0x159   : > { %v1638_v11 = vmul.f32 %v1604_v0, %v1536_v46  ;;  %v4834_v46 = vpack.c.b16 %v1958_v13, %v1926_v4  ;;  %v1538_v53 = vunpack.c.l.bf16 %v1292_v40  ;;  %v1293_v33 = vsel %vm1269_vm2, %v1248_v38, %v4824_v58  ;;  %v5794_v4 = vld [vmem:[#allocation34_spill] sm:$0xff] }
 0x15a   : > { %v1471_v35 = vperm.slane %v1469_v57, 0  ;;  %v1572_v36 = vunpack.c.h.bf16 %v1292_v40  ;;  %v1539_v22 = vunpack.c.l.bf16 %v1293_v33  ;;  %v1927_v3 = vunpack.c.h.b16 %v4766_v55 }
 0x15b   : > { %2291 = vmatpush.bf16.msra.mxu2 %v5775_v28  ;;  %v1472_v28 = vshrl.u32 %v4702_v12, 16  ;;  %2367 = vmatpush.bf16.msrb.mxu1 %v4795_v6  ;;  %v4839_v51 = vpack.c.bf16 %v1639_v32, %v1638_v11  ;;  %v4841_v12 = vpack.c.bf16 %v1673_v62, %v1672_v2  ;;  %v5793_v32 = vunpack.c.l.bf16 %v4719_v54 }
 0x15c   : > { %2339 = vmatpush.bf16.msrb.mxu3 %v4708_v16  ;;  %2416 = vmatpush.bf16.msra.mxu0 %v4828_v59  ;;  %v1116_v11 = vmul.f32 %v1082_v29, %v1014_v34  ;;  %v1150_v2 = vmul.f32 %v1082_v29, %v1048_v23  ;;  %v1606_v7 = vunpack.c.l.bf16 %v1471_v35  ;;  %v1959_v57 = vunpack.c.h.b16 %v4774_v30  ;;  %v762_v34 = vpop.permute.xlu2 %761 }
 0x15d   : > { %v1473_v25 = vpack.i.b16 %v1472_v28, %v1472_v28  ;;  %v1149_v62 = vmul.f32 %v5793_v32, %v5792_v43  ;;  %v4862_v29 = vpack.c.bf16 %v1635_v47, %v4809_v60  ;;  %v1798_v55 = vunpack.c.l.b16 %v4756_v15  ;;  %v5796_v47 = vld [vmem:[#allocation38_spill] sm:$0xff] }
 0x15e   : > { %v4859_v54 = vpop.permute.xlu1 %1251  ;;  %v1674_v23 = vmul.f32 %v1606_v7, %v1572_v36  ;;  %v4869_v13 = vpack.c.bf16 %v1669_v52, %v4811_v50  ;;  %v1453_v39 = vpack.i.b16 %v1452_v14, %v1452_v14  ;;  %v4872_v40 = vpack.c.bf16 %v1116_v11, %v4764_v21 }
 0x15f   : > { %2292 = vmatpush.bf16.msra.mxu2 %v4576_v17  ;;  %v1475_v0 = vperm.slane %v1473_v25, 0  ;;  %v1573_v17 = vunpack.c.h.bf16 %v1293_v33  ;;  %2368 = vmatpush.bf16.msrb.mxu1 %v4708_v16  ;;  %v1640_v16 = vmul.f32 %v1606_v7, %v1538_v53  ;;  %v4866_v30 = vpop.permute.xlu0 %763  ;;  %v4874_v28 = vpack.c.bf16 %v1150_v2, %v1149_v62  ;;  %v5797_v25 = vld [vmem:[#allocation39_spill] sm:$0xff] }
 0x160   : > { %2340 = vmatpush.bf16.msrb.mxu3 %v5778_v49  ;;  %2417 = vmatpush.bf16.msra.mxu0 %v4834_v46  ;;  %5795 = vst [vmem:[#allocation30_spill] sm:$0xff] %v4866_v30  ;;  %v4879_v60 = vsel %vm1269_vm2, %v4621_v37, %v4683_v63  ;;  %v1456_v15 = vshrl.u32 %v4700_v24, 16  ;;  %v949_v50 = vpack.i.b16 %v5796_v47, %v5796_v47  ;;  %v5799_v24 = vld [vmem:[#allocation47_spill] sm:$0xff]  ;;  %v1455_v36 = vperm.slane %v1453_v39, 0 }
 0x161   : > { %3140 = vmatmul.msk.bf16.vlgmr.msra.gmra.mxu3 %vm2073_vm3, %v4339_v20  ;;  %v1607_v27 = vunpack.c.l.bf16 %v1475_v0  ;;  %v4890_v21 = vpack.c.b16 %v1798_v55, %v1766_v1  ;;  %v952_v33 = vpack.i.b16 %v5797_v25, %v5797_v25  ;;  %v970_v35 = vpack.i.b16 %v5799_v24, %v5799_v24 }
 0x162   : > { %2293 = vmatmul.bf16.vlgmr.msra.gmra.mxu2 %v4401_v56  ;;  %v4904_v14 = vsel %vm779_vm1, %v4578_v5, %v4623_v18  ;;  %v4909_v0 = vsel %vm779_vm1, %v4623_v18, %v4696_v26  ;;  %v803_v32 = vsel %vm779_vm1, %v4817_v45, %v762_v34  ;;  %v4917_v62 = vperm.slane %v949_v50, 0 }
 0x163   : > { %2357 = vmatpush.bf16.msrb.mxu2 %v4791_v19  ;;  %v1641_v38 = vmul.f32 %v1607_v27, %v1539_v22  ;;  %v1675_v44 = vmul.f32 %v1607_v27, %v1573_v17  ;;  %2369 = vmatpush.bf16.msrb.mxu1 %v5778_v49  ;;  %v5798_v49 = vld [vmem:[#allocation46_spill] sm:$0xff]  ;;  %v1457_v22 = vpack.i.b16 %v1456_v15, %v1456_v15  ;;  %v972_v43 = vperm.slane %v970_v35, 0  ;;  %v5802_v15 = vld [vmem:[#allocation55_spill] sm:$0xff] }
 0x164   : > { %2341 = vmatpush.bf16.msrb.mxu3 %v4618_v61  ;;  %2418 = vmatpush.bf16.msra.mxu0 %v5794_v4  ;;  %v967_v37 = vpack.i.b16 %v5798_v49, %v5798_v49  ;;  %v804_v5 = vsel %vm779_vm1, %v762_v34, %v4866_v30  ;;  %v1021_v18 = vunpack.c.l.bf16 %v803_v32  ;;  %v1055_v11 = vunpack.c.h.bf16 %v803_v32  ;;  %v4933_v55 = vpop.permute.xlu2 %1253 }
 0x165   : > { %v4885_v52 = vpack.c.bf16 %v1641_v38, %v1640_v16  ;;  %v4887_v53 = vpack.c.bf16 %v1675_v44, %v1674_v23  ;;  %3143 = vmatmul.msk.bf16.vlgmr.msrb.gmra.mxu0 %vm2073_vm3, %v4339_v20  ;;  %v954_v2 = vperm.slane %v952_v33, 0  ;;  %v1534_v27 = vunpack.c.l.bf16 %v4879_v60 }
 0x166   : > { %v969_v17 = vperm.slane %v967_v37, 0  ;;  %v1022_v1 = vunpack.c.l.bf16 %v804_v5  ;;  %v1056_v16 = vunpack.c.h.bf16 %v804_v5  ;;  %v1801_v34 = vunpack.c.h.b16 %v4874_v28  ;;  %v4931_v23 = vpop.permute.xlu1 %767 }
 0x167   : > { %2389 = vmatpush.bf16.msra.mxu2 %v5794_v4  ;;  %2370 = vmatpush.bf16.msrb.mxu1 %v4618_v61  ;;  %v1769_v61 = vunpack.c.h.b16 %v4872_v40  ;;  %5801 = vst [vmem:[#allocation31_spill] sm:$0xff] %v4931_v23  ;;  %v1459_v39 = vperm.slane %v1457_v22, 0  ;;  %v1016_v47 = vunpack.c.l.bf16 %v4909_v0  ;;  %v1289_v50 = vsel %vm1269_vm2, %v4683_v63, %v4710_v10 }
 0x168   : > { %2342 = vmatpush.bf16.msrb.mxu3 %v4634_v41  ;;  %v4912_v41 = vpack.c.b16 %v1959_v57, %v1927_v3  ;;  %2419 = vmatpush.bf16.msra.mxu0 %v4890_v21  ;;  %v1089_v7 = vunpack.c.l.bf16 %v969_v17  ;;  %v1090_v3 = vunpack.c.l.bf16 %v972_v43  ;;  %v4925_v57 = vpop.permute.xlu0 %765  ;;  %v1602_v49 = vunpack.c.l.bf16 %v1455_v36 }
 0x169   : > { %5800 = vst [vmem:[#allocation27_spill] sm:$0xff] %v4925_v57  ;;  %v1083_v37 = vunpack.c.l.bf16 %v4917_v62  ;;  %v1084_v24 = vunpack.c.l.bf16 %v954_v2  ;;  %v4944_v35 = vpack.c.b16 %v1801_v34, %v1769_v61  ;;  %v1929_v22 = vunpack.c.h.b16 %v4862_v29  ;;  %v5818_v57 = vld [vmem:[#allocation29_spill] sm:$0xff] }
 0x16a   : > { %2371 = vmatmul.bf16.vlgmr.msrb.gmra.mxu1 %v4401_v56  ;;  %v1123_v38 = vmul.f32 %v1089_v7, %v1021_v18  ;;  %v1157_v44 = vmul.f32 %v1089_v7, %v1055_v11  ;;  %v1124_v25 = vmul.f32 %v1090_v3, %v1022_v1  ;;  %v1158_v33 = vmul.f32 %v1090_v3, %v1056_v16  ;;  %v4972_v16 = vld [vmem:[#allocation1 + $0x9] sm:$0xff] }
 0x16b   : > { %2390 = vmatpush.bf16.msra.mxu2 %v4890_v21  ;;  %2435 = vmatpush.bf16.msra.mxu1 %v4912_v41  ;;  %v1961_v17 = vunpack.c.h.b16 %v4869_v13  ;;  %v1049_v63 = vunpack.c.h.bf16 %v4904_v14  ;;  %v1050_v10 = vunpack.c.h.bf16 %v4909_v0  ;;  %v1568_v36 = vunpack.c.h.bf16 %v4879_v60  ;;  %v4963_v0 = vld [vmem:[#allocation1] sm:$0xff] }
 0x16c   : > { %2343 = vmatpush.bf16.msrb.mxu3 %v5781_v31  ;;  %v1015_v31 = vunpack.c.l.bf16 %v4904_v14  ;;  %2420 = vmatpush.bf16.msra.mxu0 %v4789_v9  ;;  %v4948_v43 = vpack.c.bf16 %v1124_v25, %v1123_v38  ;;  %v4950_v32 = vpack.c.bf16 %v1158_v33, %v1157_v44  ;;  %v1569_v62 = vunpack.c.h.bf16 %v1289_v50  ;;  %v5803_v14 = vld [vmem:[#allocation49_spill] sm:$0xff]  ;;  %v5805_v38 = vld [vmem:[#allocation40_spill] sm:$0xff] }
 0x16d   : > { %v1636_v5 = vmul.f32 %v1602_v49, %v1534_v27  ;;  %v1118_v11 = vmul.f32 %v1084_v24, %v1016_v47  ;;  %v1928_v2 = vunpack.c.l.b16 %v4862_v29  ;;  %v1960_v7 = vunpack.c.l.b16 %v4869_v13  ;;  %v4987_v47 = vpop.permute.xlu2 %1255  ;;  %v1374_v25 = vld [vmem:[#allocation1 + $0x2d] sm:$0xff]  ;;  %v4989_v33 = vld [vmem:[#allocation1 + $0x36] sm:$0xff] }
 0x16e   : > { %v1117_v18 = vmul.f32 %v1083_v37, %v1015_v31  ;;  %v1768_v60 = vunpack.c.l.b16 %v4872_v40  ;;  %v1800_v3 = vunpack.c.l.b16 %v4874_v28  ;;  %v1151_v61 = vmul.f32 %v1083_v37, %v1049_v63  ;;  %v4976_v31 = vld [vmem:[#allocation1 + $0x12] sm:$0xff]  ;;  %5807 = vst [vmem:[#allocation36_spill] sm:$0xff] %v4987_v47 }
 0x16f   : > { %2391 = vmatpush.bf16.msra.mxu2 %v4789_v9  ;;  %2467 = vmatpush.bf16.msrb.mxu1 %v5802_v15  ;;  %v1603_v9 = vunpack.c.l.bf16 %v1459_v39  ;;  %v1152_v27 = vmul.f32 %v1084_v24, %v1050_v10  ;;  %v4974_v34 = vpack.c.b16 %v1961_v17, %v1929_v22  ;;  %v4978_v39 = vld [vmem:[#allocation1 + $0x1b] sm:$0xff]  ;;  %v1670_v29 = vmul.f32 %v1602_v49, %v1568_v36  ;;  %v5810_v36 = vld [vmem:[#allocation59_spill] sm:$0xff] }
 0x170   : > { %2344 = vmatpush.bf16.msrb.mxu3 %v4694_v48  ;;  %v1535_v48 = vunpack.c.l.bf16 %v1289_v50  ;;  %2421 = vmatpush.bf16.msra.mxu0 %v5785_v42  ;;  %v955_v13 = vpack.i.b16 %v5805_v38, %v5805_v38  ;;  %v4983_v28 = vpack.c.b16 %v1960_v7, %v1928_v2  ;;  %v4985_v44 = vpop.permute.xlu1 %769  ;;  %v1373_v50 = vld [vmem:[#allocation1 + $0x24] sm:$0xff]  ;;  %v4992_v37 = vpack.c.b16 %v1800_v3, %v1768_v60  ;;  %v5808_v24 = vld [vmem:[#allocation41_spill] sm:$0xff] }
 0x171   : > { %v1671_v40 = vmul.f32 %v1603_v9, %v1569_v62  ;;  %5806 = vst [vmem:[#allocation26_spill] sm:$0xff] %v4985_v44  ;;  %v4994_v49 = vpack.c.bf16 %v1118_v11, %v1117_v18  ;;  %v958_v22 = vpack.i.b16 %v5808_v24, %v5808_v24  ;;  %v5002_v17 = vpack.c.bf16 %v1152_v27, %v1151_v61  ;;  %v5809_v10 = vld [vmem:[#allocation45_spill] sm:$0xff]  ;;  %v5811_v18 = vld [vmem:[#allocation28_spill] sm:$0xff]  ;;  %v5813_v3 = vld [vmem:[#allocation23_spill] sm:$0xff] }
 0x172   : > { %3142 = vmatmul.msk.bf16.vlgmr.msrb.gmra.mxu2 %vm2073_vm3, %v4339_v20  ;;  %v1637_v1 = vmul.f32 %v1603_v9, %v1535_v48  ;;  %v957_v9 = vperm.slane %v955_v13, 0  ;;  %v1496_v13 = vshrl.u32 %v1374_v25, 16 }
 0x173   : > { %2392 = vmatpush.bf16.msra.mxu2 %v5785_v42  ;;  %2468 = vmatpush.bf16.msrb.mxu1 %v4944_v35  ;;  %v4970_v42 = vpop.permute.xlu0 %1257  ;;  %v5009_v48 = vpack.c.bf16 %v1671_v40, %v1670_v29  ;;  %v960_v62 = vperm.slane %v958_v22, 0  ;;  %v1803_v2 = vunpack.c.h.b16 %v5002_v17 }
 0x174   : > { %2409 = vmatpush.bf16.msra.mxu3 %v4834_v46  ;;  %5804 = vst [vmem:[#allocation32_spill] sm:$0xff] %v4970_v42  ;;  %2422 = vmatpush.bf16.msra.mxu0 %v4743_v8  ;;  %v5004_v63 = vpack.c.bf16 %v1637_v1, %v1636_v5  ;;  %v5812_v5 = vld [vmem:[#allocation25_spill] sm:$0xff]  ;;  %v1085_v60 = vunpack.c.l.bf16 %v957_v9  ;;  %v1497_v25 = vpack.i.b16 %v1496_v13, %v1496_v13  ;;  %v5816_v13 = vld [vmem:[#allocation56_spill] sm:$0xff] }
 0x175   : > { %2345 = vmatmul.bf16.vlgmr.msrb.gmra.mxu3 %v4401_v56  ;;  %v799_v11 = vsel %vm779_vm1, %v4696_v26, %v5812_v5  ;;  %v800_v61 = vsel %vm779_vm1, %v5812_v5, %v5813_v3  ;;  %v1962_v27 = vunpack.c.l.b16 %v5009_v48  ;;  %v1492_v26 = vshrl.u32 %v1373_v50, 16  ;;  %v5815_v50 = vld [vmem:[#allocation44_spill] sm:$0xff] }
 0x176   : > { %v1930_v7 = vunpack.c.l.b16 %v5004_v63  ;;  %v1017_v40 = vunpack.c.l.bf16 %v799_v11  ;;  %v1051_v24 = vunpack.c.h.bf16 %v799_v11  ;;  %v1086_v22 = vunpack.c.l.bf16 %v960_v62 }
 0x177   : > { %2393 = vmatpush.bf16.msra.mxu2 %v4743_v8  ;;  %2469 = vmatpush.bf16.msrb.mxu1 %v4983_v28  ;;  %v5000_v8 = vld [vmem:[#allocation1 + $0x3f] sm:$0xff]  ;;  %v1493_v5 = vpack.i.b16 %v1492_v26, %v1492_v26  ;;  %v1052_v11 = vunpack.c.h.bf16 %v800_v61 }
 0x178   : > { %2441 = vmatpush.bf16.msrb.mxu3 %v5803_v14  ;;  %2487 = vmatpush.bf16.msrb.mxu0 %v4974_v34  ;;  %1377 = vst [vmem:[#allocation1] ss:$9 sm:$0xff] %v5809_v10  ;;  %v5032_v10 = vpack.c.b16 %v1962_v27, %v1930_v7  ;;  %v5035_v9 = vpop.permute.xlu1 %1261  ;;  %v1499_v27 = vperm.slane %v1497_v25, 0  ;;  %v1119_v47 = vmul.f32 %v1085_v60, %v1017_v40 }
 0x179   : > { %2423 = vmatmul.bf16.vlgmr.msra.gmra.mxu0 %v4401_v56  ;;  %v1153_v26 = vmul.f32 %v1085_v60, %v1051_v24  ;;  %v1154_v25 = vmul.f32 %v1086_v22, %v1052_v11  ;;  %v1802_v60 = vunpack.c.l.b16 %v5002_v17 }
 0x17a   : > { %3145 = vmatmul.msk.bf16.vlgmr.msra.gmra.mxu1 %vm2073_vm3, %v4339_v20 }
 0x17b   : > { %2394 = vmatpush.bf16.msra.mxu2 %v4791_v19  ;;  %2470 = vmatpush.bf16.msrb.mxu1 %v5803_v14  ;;  %v1771_v19 = vunpack.c.h.b16 %v4994_v49  ;;  %v1260_v1 = vpop.permute.xlu0 %1259 }
 0x17c   : > { %2442 = vmatpush.bf16.msrb.mxu3 %v4992_v37  ;;  %2519 = vmatpush.bf16.msra.mxu0 %v5810_v36  ;;  %v1298_v38 = vsel %vm1269_vm2, %v4970_v42, %v1260_v1  ;;  %v1299_v62 = vsel %vm1269_vm2, %v1260_v1, %v5035_v9 }
 0x17d   : > { %v5027_v29 = vpack.c.b16 %v1803_v2, %v1771_v19  ;;  %v1018_v19 = vunpack.c.l.bf16 %v800_v61  ;;  %v1544_v2 = vunpack.c.l.bf16 %v1298_v38  ;;  %v1578_v7 = vunpack.c.h.bf16 %v1298_v38 }
 0x17e   : > { %v1545_v44 = vunpack.c.l.bf16 %v1299_v62  ;;  %v1579_v42 = vunpack.c.h.bf16 %v1299_v62  ;;  %v1613_v38 = vunpack.c.l.bf16 %v1499_v27  ;;  %v1931_v62 = vunpack.c.h.b16 %v5004_v63  ;;  %v5819_v63 = vld [vmem:[#allocation43_spill] sm:$0xff] }
 0x17f   : > { %2395 = vmatpush.bf16.msra.mxu2 %v5811_v18  ;;  %5814 = vst [vmem:[#allocation35_spill] sm:$0xff] %v5027_v29  ;;  %2471 = vmatpush.bf16.msrb.mxu1 %v4992_v37  ;;  %v5037_v18 = vpop.permute.xlu2 %771  ;;  %v1120_v61 = vmul.f32 %v1086_v22, %v1018_v19 }
 0x180   : > { %2443 = vmatpush.bf16.msrb.mxu3 %v4912_v41  ;;  %2520 = vmatpush.bf16.msra.mxu0 %v5027_v29  ;;  %v1963_v29 = vunpack.c.h.b16 %v5009_v48  ;;  %v1647_v19 = vmul.f32 %v1613_v38, %v1545_v44  ;;  %v1681_v23 = vmul.f32 %v1613_v38, %v1579_v42  ;;  %v964_v48 = vpack.i.b16 %v5819_v63, %v5819_v63  ;;  %v5820_v44 = vld [vmem:[#allocation53_spill] sm:$0xff] }
 0x181   : > { %v5055_v40 = vpop.f32.mrf.mxu2  ;;  %v985_v11 = vpack.i.b16 %v5820_v44, %v5820_v44 }
 0x182   : > { %v5089_v38 = vpack.c.b16 %v1963_v29, %v1931_v62 }
 0x183   : > { %2396 = vmatpush.bf16.msra.mxu2 %v4795_v6  ;;  %v1495_v6 = vperm.slane %v1493_v5, 0  ;;  %2472 = vmatpush.bf16.msrb.mxu1 %v4912_v41  ;;  %v1770_v5 = vunpack.c.l.b16 %v4994_v49  ;;  %v5057_v30 = vpop.f32.mrf.mxu3  ;;  %v5064_v49 = vsel %vm779_vm1, %v5813_v3, %v5818_v57  ;;  %v5079_v3 = vpack.c.bf16 %v1120_v61, %v1119_v47 }
 0x184   : > { %2444 = vmatpush.bf16.msrb.mxu3 %v5815_v50  ;;  %2521 = vmatpush.bf16.msra.mxu0 %v5032_v10 }
 0x185   : > { %3144 = vmatmul.msk.bf16.vlgmr.msra.gmra.mxu3 %vm2073_vm3, %v4339_v20  ;;  %v1612_v1 = vunpack.c.l.bf16 %v1495_v6  ;;  %v5817_v6 = vld [vmem:[#allocation42_spill] sm:$0xff]  ;;  %v5069_v17 = vpack.c.b16 %v1802_v60, %v1770_v5  ;;  %v1019_v5 = vunpack.c.l.bf16 %v5064_v49  ;;  %v966_v60 = vperm.slane %v964_v48, 0 }
 0x186   : > { %2397 = vmatmul.bf16.vlgmr.msra.gmra.mxu2 %v4401_v56  ;;  %v961_v27 = vpack.i.b16 %v5817_v6, %v5817_v6 }
 0x187   : > { %2461 = vmatpush.bf16.msrb.mxu2 %v4983_v28  ;;  %v1646_v41 = vmul.f32 %v1612_v1, %v1544_v2  ;;  %v1680_v24 = vmul.f32 %v1612_v1, %v1578_v7  ;;  %2473 = vmatpush.bf16.msrb.mxu1 %v5815_v50  ;;  %v1500_v50 = vshrl.u32 %v4989_v33, 16  ;;  %v5821_v2 = vld [vmem:[#allocation54_spill] sm:$0xff]  ;;  %v774_v7 = vpop.permute.xlu2 %773  ;;  %v5087_v1 = vpack.c.bf16 %v1154_v25, %v1153_v26 }
 0x188   : > { %2445 = vmatpush.bf16.msrb.mxu3 %v4828_v59  ;;  %2522 = vmatpush.bf16.msra.mxu0 %v5816_v13  ;;  %v809_v47 = vsel %vm779_vm1, %v5037_v18, %v774_v7  ;;  %v963_v61 = vperm.slane %v961_v27, 0 }
 0x189   : > { %v5071_v22 = vpack.c.bf16 %v1647_v19, %v1646_v41  ;;  %v5073_v42 = vpack.c.bf16 %v1681_v23, %v1680_v24  ;;  %3147 = vmatmul.msk.bf16.vlgmr.msrb.gmra.mxu0 %vm2073_vm3, %v4339_v20  ;;  %v988_v23 = vpack.i.b16 %v5821_v2, %v5821_v2  ;;  %v5095_v41 = vpop.permute.xlu0 %775  ;;  %v5097_v24 = vpop.f32.mrf.mxu0  ;;  %v1027_v25 = vunpack.c.l.bf16 %v809_v47 }
 0x18a   : > { %v810_v26 = vsel %vm779_vm1, %v774_v7, %v5095_v41  ;;  %v1061_v62 = vunpack.c.h.bf16 %v809_v47  ;;  %v802_v19 = vsel %vm779_vm1, %v5818_v57, %v4817_v45  ;;  %v2101_v63 = vpop.f32.mrf.mxu2  ;;  %v1773_v2 = vunpack.c.h.b16 %v5079_v3  ;;  %v5822_v57 = vld [vmem:[#allocation61_spill] sm:$0xff] }
 0x18b   : > { %2493 = vmatpush.bf16.msra.mxu2 %v5816_v13  ;;  %2474 = vmatpush.bf16.msrb.mxu1 %v4828_v59  ;;  %v990_v33 = vperm.slane %v988_v23, 0  ;;  %v1501_v59 = vpack.i.b16 %v1500_v50, %v1500_v50  ;;  %v1028_v27 = vunpack.c.l.bf16 %v810_v26  ;;  %v1062_v48 = vunpack.c.h.bf16 %v810_v26  ;;  %v2127_v23 = vpop.f32.mrf.mxu3  ;;  %v1264_v26 = vpop.permute.xlu1 %1263 }
 0x18c   : > { %2446 = vmatpush.bf16.msrb.mxu3 %v4834_v46  ;;  %v987_v46 = vperm.slane %v985_v11, 0  ;;  %2523 = vmatpush.bf16.msra.mxu0 %v5069_v17  ;;  %v1087_v7 = vunpack.c.l.bf16 %v963_v61  ;;  %v1805_v50 = vunpack.c.h.b16 %v5087_v1  ;;  %v1020_v47 = vunpack.c.l.bf16 %v802_v19 }
 0x18d   : > { %v1096_v6 = vunpack.c.l.bf16 %v990_v33  ;;  %v1054_v33 = vunpack.c.h.bf16 %v802_v19 }
 0x18e   : > { %v1095_v29 = vunpack.c.l.bf16 %v987_v46  ;;  %2475 = vmatmul.bf16.vlgmr.msrb.gmra.mxu1 %v4401_v56  ;;  %v1053_v46 = vunpack.c.h.bf16 %v5064_v49  ;;  %v5118_v61 = vpack.c.b16 %v1805_v50, %v1773_v2  ;;  %v1503_v49 = vperm.slane %v1501_v59, 0 }
 0x18f   : > { %2494 = vmatpush.bf16.msra.mxu2 %v5069_v17  ;;  %2539 = vmatpush.bf16.msra.mxu1 %v5089_v38  ;;  %v1130_v45 = vmul.f32 %v1096_v6, %v1028_v27  ;;  %v1164_v63 = vmul.f32 %v1096_v6, %v1062_v48  ;;  %v1504_v59 = vshrl.u32 %v5000_v8, 16  ;;  %v5130_v27 = vpop.permute.xlu2 %1265  ;;  %v5823_v8 = vld [vmem:[#allocation60_spill] sm:$0xff] }
 0x190   : > { %2447 = vmatpush.bf16.msrb.mxu3 %v5794_v4  ;;  %v1129_v44 = vmul.f32 %v1095_v29, %v1027_v25  ;;  %v1163_v11 = vmul.f32 %v1095_v29, %v1061_v62  ;;  %v1088_v4 = vunpack.c.l.bf16 %v966_v60  ;;  %2524 = vmatpush.bf16.msra.mxu0 %v4974_v34  ;;  %v1121_v60 = vmul.f32 %v1087_v7, %v1019_v5 }
 0x191   : > { %v1155_v62 = vmul.f32 %v1087_v7, %v1053_v46  ;;  %v1933_v5 = vunpack.c.h.b16 %v4839_v51  ;;  %v1505_v23 = vpack.i.b16 %v1504_v59, %v1504_v59  ;;  %v1476_v46 = vshrl.u32 %v4963_v0, 16 }
 0x192   : > { %v5114_v29 = vpack.c.bf16 %v1130_v45, %v1129_v44  ;;  %v5120_v25 = vpack.c.bf16 %v1164_v63, %v1163_v11  ;;  %v1122_v19 = vmul.f32 %v1088_v4, %v1020_v47  ;;  %v1156_v6 = vmul.f32 %v1088_v4, %v1054_v33 }
 0x193   : > { %2495 = vmatpush.bf16.msra.mxu2 %v4974_v34  ;;  %2571 = vmatpush.bf16.msrb.mxu1 %v5822_v57  ;;  %v1300_v34 = vsel %vm1269_vm2, %v5035_v9, %v1264_v26  ;;  %v5133_v48 = vpop.f32.mrf.mxu1  ;;  %v1965_v9 = vunpack.c.h.b16 %v4841_v12  ;;  %v1301_v44 = vsel %vm1269_vm2, %v1264_v26, %v5130_v27  ;;  %v1614_v11 = vunpack.c.l.bf16 %v1503_v49 }
 0x194   : > { %2448 = vmatpush.bf16.msrb.mxu3 %v4890_v21  ;;  %v2088_v21 = vpop.f32.mrf.mxu0  ;;  %2525 = vmatpush.bf16.msra.mxu0 %v5802_v15  ;;  %v1546_v2 = vunpack.c.l.bf16 %v1300_v34  ;;  %v5141_v7 = vpop.f32.mrf.mxu3  ;;  %v5144_v45 = vpack.c.bf16 %v1122_v19, %v1121_v60  ;;  %v5146_v50 = vpack.c.bf16 %v1156_v6, %v1155_v62  ;;  %v1507_v4 = vperm.slane %v1505_v23, 0 }
 0x195   : > { %v1547_v47 = vunpack.c.l.bf16 %v1301_v44  ;;  %v1480_v33 = vshrl.u32 %v4972_v16, 16  ;;  %v1581_v63 = vunpack.c.h.bf16 %v1301_v44  ;;  %v5150_v49 = vpack.c.b16 %v1965_v9, %v1933_v5 }
 0x196   : > { %3146 = vmatmul.msk.bf16.vlgmr.msrb.gmra.mxu2 %vm2073_vm3, %v4339_v20  ;;  %v1648_v26 = vmul.f32 %v1614_v11, %v1546_v2  ;;  %v1615_v21 = vunpack.c.l.bf16 %v1507_v4  ;;  %v1932_v0 = vunpack.c.l.b16 %v4839_v51  ;;  %v5154_v60 = vpack.i.b16 %v1476_v46, %v1476_v46 }
 0x197   : > { %2496 = vmatpush.bf16.msra.mxu2 %v5802_v15  ;;  %2572 = vmatpush.bf16.msrb.mxu1 %v5118_v61  ;;  %v1580_v15 = vunpack.c.h.bf16 %v1300_v34  ;;  %v1964_v62 = vunpack.c.l.b16 %v4841_v12  ;;  %v1804_v16 = vunpack.c.l.b16 %v5087_v1  ;;  %v1807_v59 = vunpack.c.h.b16 %v5146_v50 }
 0x198   : > { %2513 = vmatpush.bf16.msra.mxu3 %v5032_v10  ;;  %2526 = vmatpush.bf16.msra.mxu0 %v4944_v35  ;;  %v1649_v19 = vmul.f32 %v1615_v21, %v1547_v47  ;;  %v1683_v6 = vmul.f32 %v1615_v21, %v1581_v63  ;;  %v1935_v9 = vunpack.c.h.b16 %v4885_v52  ;;  %v1967_v44 = vunpack.c.h.b16 %v4887_v53 }
 0x199   : > { %2449 = vmatmul.bf16.vlgmr.msrb.gmra.mxu3 %v4401_v56  ;;  %v1682_v34 = vmul.f32 %v1614_v11, %v1580_v15  ;;  %v5167_v12 = vpack.c.b16 %v1964_v62, %v1932_v0  ;;  %v5173_v11 = vpop.permute.xlu2 %2064  ;;  %v1481_v2 = vpack.i.b16 %v1480_v33, %v1480_v33  ;;  %v1934_v46 = vunpack.c.l.b16 %v4885_v52 }
 0x19a   : > { %v5175_v15 = vpack.c.bf16 %v1649_v19, %v1648_v26  ;;  %v1966_v33 = vunpack.c.l.b16 %v4887_v53  ;;  %v2087_v63 = vadd.f32 %v5097_v24, %v5173_v11  ;;  %v1479_v26 = vperm.slane %v5154_v60, 0  ;;  %v5825_v19 = vld [vmem:[#allocation48_spill] sm:$0xff] }
 0x19b   : > { %2497 = vmatpush.bf16.msra.mxu2 %v4944_v35  ;;  %v1772_v35 = vunpack.c.l.b16 %v5079_v3  ;;  %2527 = vmatmul.bf16.vlgmr.msra.gmra.mxu0 %v4401_v56  ;;  %v2140_v51 = vpop.f32.mrf.mxu1  ;;  %v5824_v3 = vld [vmem:[#allocation64_spill] sm:$0xff]  ;;  %v5177_v23 = vpack.c.bf16 %v1683_v6, %v1682_v34  ;;  %v1295_v52 = vsel %vm1269_vm2, %v4859_v54, %v4933_v55  ;;  %v1483_v53 = vperm.slane %v1481_v2, 0 }
 0x19c   : > { %2545 = vmatpush.bf16.msrb.mxu3 %v5823_v8  ;;  %2591 = vmatpush.bf16.msrb.mxu0 %v5150_v49  ;;  %v5163_v5 = vpop.f32.mrf.mxu0  ;;  %v2153_v4 = vpop.f32.mrf.mxu3  ;;  %v5198_v34 = vpack.c.b16 %v1966_v33, %v1934_v46  ;;  %v2100_v21 = vadd.f32 %v5055_v40, %v2087_v63  ;;  %v2139_v24 = vadd.f32 %v5133_v48, %v5173_v11  ;;  %v1484_v60 = vshrl.u32 %v4976_v31, 16 }
 0x19d   : > { %v5170_v1 = vpack.c.b16 %v1804_v16, %v1772_v35  ;;  %2573 = vmatpush.bf16.msrb.mxu1 %v5167_v12  ;;  %v5204_v0 = vpack.c.b16 %v1967_v44, %v1935_v9  ;;  %v1809_v48 = vunpack.c.h.b16 %v4950_v32  ;;  %v973_v6 = vpack.i.b16 %v5825_v19, %v5825_v19  ;;  %v5827_v9 = vld [vmem:[#allocation63_spill] sm:$0xff] }
 0x19e   : > { %3149 = vmatmul.msk.bf16.vlgmr.msra.gmra.mxu1 %vm2073_vm3, %v4339_v20  ;;  %2909 = vst [vmem:[%s5210_s12] sm:$0xff] %v2100_v21  ;;  %v2152_v31 = vadd.f32 %v5141_v7, %v2139_v24  ;;  %v5826_v7 = vld [vmem:[#allocation50_spill] sm:$0xff]  ;;  %v1608_v44 = vunpack.c.l.bf16 %v1479_v26  ;;  %v1541_v46 = vunpack.c.l.bf16 %v1295_v52  ;;  %v1575_v33 = vunpack.c.h.bf16 %v1295_v52 }
 0x19f   : > { %2498 = vmatpush.bf16.msra.mxu2 %v4983_v28  ;;  %v1775_v28 = vunpack.c.h.b16 %v5144_v45  ;;  %v976_v51 = vpack.i.b16 %v5826_v7, %v5826_v7  ;;  %v1485_v63 = vpack.i.b16 %v1484_v60, %v1484_v60  ;;  %v5831_v60 = vld [vmem:[#allocation35_spill] sm:$0xff] }
 0x1a0   : > { %2623 = vmatpush.bf16.msra.mxu0 %v5824_v3  ;;  %2546 = vmatpush.bf16.msrb.mxu3 %v5170_v1  ;;  %2911 = vst [vmem:[%s5210_s12 + $0x10] sm:$0xff] %v2152_v31  ;;  %v5830_v31 = vld [vmem:[#allocation31_spill] sm:$0xff] }
 0x1a1   : > { %v5185_v47 = vpack.c.b16 %v1807_v59, %v1775_v28  ;;  %2574 = vmatpush.bf16.msrb.mxu1 %v5823_v8  ;;  %v2112_v40 = vpop.f32.mrf.mxu2  ;;  %v1488_v28 = vshrl.u32 %v4978_v39, 16  ;;  %v1609_v39 = vunpack.c.l.bf16 %v1483_v53  ;;  %v978_v53 = vperm.slane %v976_v51, 0 }
 0x1a2   : > { %v2113_v62 = vadd.f32 %v2112_v40, %v5173_v11  ;;  %v5829_v40 = vld [vmem:[#allocation30_spill] sm:$0xff] }
 0x1a3   : > { %2499 = vmatpush.bf16.msra.mxu2 %v5803_v14  ;;  %v1294_v14 = vsel %vm1269_vm2, %v4824_v58, %v4859_v54  ;;  %v1777_v58 = vunpack.c.h.b16 %v4948_v43  ;;  %v1774_v54 = vunpack.c.l.b16 %v5144_v45  ;;  %v5221_v35 = vpop.f32.mrf.mxu1  ;;  %v1776_v45 = vunpack.c.l.b16 %v4948_v43 }
 0x1a4   : > { %2624 = vmatpush.bf16.msra.mxu0 %v5185_v47  ;;  %2547 = vmatpush.bf16.msrb.mxu3 %v5089_v38  ;;  %v2179_v16 = vpop.f32.mrf.mxu0  ;;  %v2126_v43 = vadd.f32 %v5057_v30, %v2113_v62  ;;  %v1540_v2 = vunpack.c.l.bf16 %v1294_v14  ;;  %v1574_v4 = vunpack.c.h.bf16 %v1294_v14  ;;  %v1489_v24 = vpack.i.b16 %v1488_v28, %v1488_v28 }
 0x1a5   : > { %v5230_v59 = vpack.c.b16 %v1809_v48, %v1777_v58  ;;  %2575 = vmatpush.bf16.msrb.mxu1 %v5170_v1  ;;  %v975_v30 = vperm.slane %v973_v6, 0  ;;  %v5828_v58 = vld [vmem:[#allocation27_spill] sm:$0xff]  ;;  %v1643_v52 = vmul.f32 %v1609_v39, %v1541_v46  ;;  %v1677_v62 = vmul.f32 %v1609_v39, %v1575_v33  ;;  %v5832_v6 = vld [vmem:[#allocation36_spill] sm:$0xff] }
 0x1a6   : > { %2910 = vst [vmem:[%s5210_s12 + $0x8] sm:$0xff] %v2126_v43  ;;  %v805_v26 = vsel %vm779_vm1, %v5829_v40, %v5828_v58  ;;  %v1642_v48 = vmul.f32 %v1608_v44, %v1540_v2  ;;  %v806_v14 = vsel %vm779_vm1, %v5828_v58, %v5830_v31  ;;  %v1487_v16 = vperm.slane %v1485_v63, 0  ;;  %v5833_v43 = vld [vmem:[#allocation32_spill] sm:$0xff] }
 0x1a7   : > { %2500 = vmatpush.bf16.msra.mxu2 %v4992_v37  ;;  %v1806_v37 = vunpack.c.l.b16 %v5146_v50  ;;  %v1808_v50 = vunpack.c.l.b16 %v4950_v32  ;;  %v1491_v19 = vperm.slane %v1489_v24, 0  ;;  %v1296_v28 = vsel %vm1269_vm2, %v4933_v55, %v5832_v6 }
 0x1a8   : > { %2625 = vmatpush.bf16.msra.mxu0 %v5198_v34  ;;  %2548 = vmatpush.bf16.msrb.mxu3 %v5810_v36  ;;  %v1091_v7 = vunpack.c.l.bf16 %v975_v30  ;;  %v1024_v51 = vunpack.c.l.bf16 %v806_v14  ;;  %v1057_v39 = vunpack.c.h.bf16 %v805_v26  ;;  %v1058_v46 = vunpack.c.h.bf16 %v806_v14 }
 0x1a9   : > { %3148 = vmatmul.msk.bf16.vlgmr.msra.gmra.mxu3 %vm2073_vm3, %v4339_v20  ;;  %v5237_v32 = vpack.c.b16 %v1808_v50, %v1776_v45  ;;  %v5241_v21 = vpack.c.b16 %v1806_v37, %v1774_v54  ;;  %2576 = vmatpush.bf16.msrb.mxu1 %v5089_v38  ;;  %v2114_v54 = vpop.f32.mrf.mxu2  ;;  %v1676_v37 = vmul.f32 %v1608_v44, %v1574_v4  ;;  %v1023_v50 = vunpack.c.l.bf16 %v805_v26 }
 0x1aa   : > { %2501 = vmatmul.bf16.vlgmr.msra.gmra.mxu2 %v4401_v56  ;;  %v1092_v38 = vunpack.c.l.bf16 %v978_v53  ;;  %v1297_v44 = vsel %vm1269_vm2, %v5832_v6, %v5833_v43  ;;  %v5264_v4 = vpack.c.bf16 %v1643_v52, %v1642_v48  ;;  %v1610_v33 = vunpack.c.l.bf16 %v1487_v16 }
 0x1ab   : > { %2565 = vmatpush.bf16.msrb.mxu2 %v5167_v12  ;;  %3151 = vmatmul.msk.bf16.vlgmr.msrb.gmra.mxu0 %vm2073_vm3, %v4339_v20  ;;  %v2205_v45 = vpop.f32.mrf.mxu1  ;;  %v1715_v55 = vpack.c.bf16 %v1677_v62, %v1676_v37  ;;  %v1542_v63 = vunpack.c.l.bf16 %v1296_v28  ;;  %v1576_v24 = vunpack.c.h.bf16 %v1296_v28  ;;  %v1611_v30 = vunpack.c.l.bf16 %v1491_v19 }
 0x1ac   : > { %2626 = vmatpush.bf16.msra.mxu0 %v5827_v9  ;;  %2549 = vmatpush.bf16.msrb.mxu3 %v5831_v60  ;;  %v1543_v58 = vunpack.c.l.bf16 %v1297_v44  ;;  %v1577_v40 = vunpack.c.h.bf16 %v1297_v44  ;;  %v1125_v54 = vmul.f32 %v1091_v7, %v1023_v50  ;;  %v1126_v26 = vmul.f32 %v1092_v38, %v1024_v51 }
 0x1ad   : > { %2577 = vmatpush.bf16.msrb.mxu1 %v5810_v36  ;;  %v1159_v48 = vmul.f32 %v1091_v7, %v1057_v39  ;;  %v1160_v14 = vmul.f32 %v1092_v38, %v1058_v46  ;;  %v1937_v36 = vunpack.c.h.b16 %v5264_v4  ;;  %v1969_v52 = vunpack.c.h.b16 %v1715_v55  ;;  %v5834_v38 = vld [vmem:[#allocation66_spill] sm:$0xff]  ;;  %v5835_v39 = vld [vmem:[#allocation65_spill] sm:$0xff] }
 0x1ae   : > { %v2216_v2 = vpop.f32.mrf.mxu0  ;;  %v1644_v37 = vmul.f32 %v1610_v33, %v1542_v63  ;;  %v1678_v62 = vmul.f32 %v1610_v33, %v1576_v24  ;;  %v1645_v45 = vmul.f32 %v1611_v30, %v1543_v58  ;;  %v1679_v50 = vmul.f32 %v1611_v30, %v1577_v40  ;;  %v5836_v30 = vld [vmem:[#allocation68_spill] sm:$0xff] }
 0x1af   : > { %2597 = vmatpush.bf16.msra.mxu2 %v5827_v9  ;;  %v2217_v53 = vadd.f32 %v2216_v2, %v5173_v11  ;;  %v5284_v28 = vpack.c.bf16 %v1160_v14, %v1159_v48  ;;  %v1941_v7 = vunpack.c.h.b16 %v5071_v22  ;;  %v5292_v51 = vpack.c.b16 %v1969_v52, %v1937_v36 }
 0x1b0   : > { %2627 = vmatpush.bf16.msra.mxu0 %v5241_v21  ;;  %2550 = vmatpush.bf16.msrb.mxu3 %v5032_v10  ;;  %v5295_v43 = vpack.c.bf16 %v1645_v45, %v1644_v37  ;;  %v1936_v44 = vunpack.c.l.b16 %v5264_v4  ;;  %v1968_v2 = vunpack.c.l.b16 %v1715_v55  ;;  %v1972_v4 = vunpack.c.l.b16 %v5073_v42 }
 0x1b1   : > { %2578 = vmatpush.bf16.msrb.mxu1 %v5831_v60  ;;  %v1811_v46 = vunpack.c.h.b16 %v5284_v28  ;;  %v1783_v52 = vunpack.c.h.b16 %v5114_v29  ;;  %v1815_v37 = vunpack.c.h.b16 %v5120_v25 }
 0x1b2   : > { %v5313_v24 = vpack.c.b16 %v1968_v2, %v1936_v44  ;;  %v1938_v58 = vunpack.c.l.b16 %v5295_v43 }
 0x1b3   : > { %2598 = vmatpush.bf16.msra.mxu2 %v5241_v21  ;;  %v2229_v16 = vpop.f32.mrf.mxu1 }
 0x1b4   : > { %2628 = vmatpush.bf16.msra.mxu0 %v5150_v49  ;;  %2551 = vmatpush.bf16.msrb.mxu3 %v5816_v13  ;;  %v2164_v10 = vpop.f32.mrf.mxu3  ;;  %v2230_v60 = vadd.f32 %v2229_v16, %v2217_v53  ;;  %v5279_v13 = vpack.c.bf16 %v1126_v26, %v1125_v54  ;;  %v5838_v26 = vld [vmem:[#allocation52_spill] sm:$0xff] }
 0x1b5   : > { %2643 = vmatpush.bf16.msra.mxu1 %v5204_v0  ;;  %v982_v48 = vpack.i.b16 %v5838_v26, %v5838_v26  ;;  %v1939_v26 = vunpack.c.h.b16 %v5295_v43 }
 0x1b6   : > { %2579 = vmatmul.bf16.vlgmr.msrb.gmra.mxu1 %v4401_v56  ;;  %v2218_v6 = vpop.f32.mrf.mxu0  ;;  %2914 = vst [vmem:[%s5210_s12 + $0x28] sm:$0xff] %v2230_v60 }
 0x1b7   : > { %2599 = vmatpush.bf16.msra.mxu2 %v5150_v49  ;;  %v2165_v49 = vadd.f32 %v2164_v10, %v5173_v11  ;;  %v984_v16 = vperm.slane %v982_v48, 0  ;;  %v5348_v6 = vpack.c.b16 %v1815_v37, %v1783_v52  ;;  %v1943_v48 = vunpack.c.h.b16 %v5175_v15 }
 0x1b8   : > { %2629 = vmatpush.bf16.msra.mxu0 %v5822_v57  ;;  %2552 = vmatpush.bf16.msrb.mxu3 %v5069_v17  ;;  %v1779_v17 = vunpack.c.h.b16 %v5279_v13  ;;  %v1814_v52 = vunpack.c.l.b16 %v5120_v25 }
 0x1b9   : > { %v2178_v19 = vadd.f32 %v5163_v5, %v2165_v49  ;;  %2675 = vmatpush.bf16.msrb.mxu1 %v5834_v38  ;;  %v5297_v5 = vpack.c.bf16 %v1679_v50, %v1678_v62  ;;  %v5839_v49 = vld [vmem:[#allocation26_spill] sm:$0xff] }
 0x1ba   : > { %3150 = vmatmul.msk.bf16.vlgmr.msrb.gmra.mxu2 %vm2073_vm3, %v4339_v20  ;;  %v808_v60 = vsel %vm779_vm1, %v5839_v49, %v5037_v18  ;;  %v1810_v18 = vunpack.c.l.b16 %v5284_v28 }
 0x1bb   : > { %2600 = vmatpush.bf16.msra.mxu2 %v5822_v57  ;;  %v1973_v57 = vunpack.c.h.b16 %v5073_v42  ;;  %2912 = vst [vmem:[%s5210_s12 + $0x18] sm:$0xff] %v2178_v19  ;;  %2553 = vmatmul.bf16.vlgmr.msrb.gmra.mxu3 %v4401_v56  ;;  %v2231_v55 = vpop.f32.mrf.mxu1  ;;  %v1970_v40 = vunpack.c.l.b16 %v5297_v5  ;;  %v5837_v42 = vld [vmem:[#allocation51_spill] sm:$0xff] }
 0x1bc   : > { %2617 = vmatpush.bf16.msra.mxu3 %v5198_v34  ;;  %2630 = vmatpush.bf16.msra.mxu0 %v5118_v61  ;;  %v2166_v33 = vpop.f32.mrf.mxu3 }
 0x1bd   : > { %2676 = vmatpush.bf16.msrb.mxu1 %v5230_v59  ;;  %v5307_v63 = vpack.c.b16 %v1973_v57, %v1941_v7  ;;  %v5330_v14 = vpack.c.b16 %v1970_v40, %v1938_v58  ;;  %v1942_v7 = vunpack.c.l.b16 %v5175_v15  ;;  %v1974_v57 = vunpack.c.l.b16 %v5177_v23 }
 0x1be   : > { %v2281_v54 = vpop.f32.mrf.mxu0  ;;  %v1060_v33 = vunpack.c.h.bf16 %v808_v60 }
 0x1bf   : > { %2601 = vmatpush.bf16.msra.mxu2 %v5118_v61  ;;  %v1940_v61 = vunpack.c.l.b16 %v5071_v22  ;;  %2631 = vmatmul.bf16.vlgmr.msra.gmra.mxu0 %v4401_v56  ;;  %v5322_v22 = vpack.c.b16 %v1811_v46, %v1779_v17  ;;  %v1094_v17 = vunpack.c.l.bf16 %v984_v16  ;;  %v1026_v46 = vunpack.c.l.bf16 %v808_v60  ;;  %v1378_v60 = vld [vmem:[#allocation1] sm:$0xff] }
 0x1c0   : > { %2695 = vmatpush.bf16.msrb.mxu0 %v5292_v51  ;;  %2649 = vmatpush.bf16.msrb.mxu3 %v5835_v39  ;;  %v5363_v28 = vpack.c.b16 %v1974_v57, %v1942_v7  ;;  %v1508_v7 = vshrl.u32 %v1378_v60, 16  ;;  %v5848_v60 = vld [vmem:[#allocation72_spill] sm:$0xff] }
 0x1c1   : > { %v5318_v53 = vpack.c.b16 %v1972_v4, %v1940_v61  ;;  %2677 = vmatpush.bf16.msrb.mxu1 %v5313_v24  ;;  %v2190_v36 = vpop.f32.mrf.mxu2  ;;  %v5840_v61 = vld [vmem:[#allocation67_spill] sm:$0xff]  ;;  %v1128_v40 = vmul.f32 %v1094_v17, %v1026_v46  ;;  %v5845_v46 = vld [vmem:[#allocation58_spill] sm:$0xff] }
 0x1c2   : > { %v2191_v10 = vadd.f32 %v2190_v36, %v5173_v11  ;;  %v1975_v36 = vunpack.c.h.b16 %v5177_v23 }
 0x1c3   : > { %2602 = vmatpush.bf16.msra.mxu2 %v5167_v12  ;;  %v979_v12 = vpack.i.b16 %v5837_v42, %v5837_v42  ;;  %v2268_v50 = vpop.f32.mrf.mxu1 }
 0x1c4   : > { %2727 = vmatpush.bf16.msra.mxu0 %v5836_v30  ;;  %2650 = vmatpush.bf16.msrb.mxu3 %v5237_v32  ;;  %v2204_v45 = vadd.f32 %v5221_v35, %v2191_v10  ;;  %v2269_v19 = vadd.f32 %v2268_v50, %v5173_v11  ;;  %v1782_v10 = vunpack.c.l.b16 %v5114_v29  ;;  %v1379_v50 = vld [vmem:[#allocation1 + $0x9] sm:$0xff] }
 0x1c5   : > { %2678 = vmatpush.bf16.msrb.mxu1 %v5835_v39  ;;  %v981_v62 = vperm.slane %v979_v12, 0  ;;  %v1162_v12 = vmul.f32 %v1094_v17, %v1060_v33  ;;  %v778_v33 = vpop.permute.xlu0 %777 }
 0x1c6   : > { %3153 = vmatmul.msk.bf16.vlgmr.msra.gmra.mxu1 %vm2073_vm3, %v4339_v20  ;;  %2913 = vst [vmem:[%s5210_s12 + $0x20] sm:$0xff] %v2204_v45  ;;  %v2283_v35 = vpop.f32.mrf.mxu0  ;;  %v5386_v23 = vpack.c.b16 %v1814_v52, %v1782_v10  ;;  %v5847_v52 = vld [vmem:[#allocation62_spill] sm:$0xff] }
 0x1c7   : > { %2603 = vmatpush.bf16.msra.mxu2 %v5823_v8  ;;  %v807_v8 = vsel %vm779_vm1, %v5830_v31, %v5839_v49  ;;  %v2282_v31 = vadd.f32 %v2281_v54, %v2269_v19  ;;  %v1093_v44 = vunpack.c.l.bf16 %v981_v62 }
 0x1c8   : > { %2728 = vmatpush.bf16.msra.mxu0 %v5322_v22  ;;  %2651 = vmatpush.bf16.msrb.mxu3 %v5204_v0  ;;  %v1025_v2 = vunpack.c.l.bf16 %v807_v8 }
 0x1c9   : > { %2679 = vmatpush.bf16.msrb.mxu1 %v5237_v32  ;;  %v2192_v4 = vpop.f32.mrf.mxu2  ;;  %2916 = vst [vmem:[%s5210_s12 + $0x38] sm:$0xff] %v2282_v31  ;;  %v1512_v31 = vshrl.u32 %v1379_v50, 16 }
 0x1ca   : > { %v1127_v58 = vmul.f32 %v1093_v44, %v1025_v2  ;;  %v5844_v2 = vld [vmem:[#allocation57_spill] sm:$0xff] }
 0x1cb   : > { %2604 = vmatpush.bf16.msra.mxu2 %v5170_v1  ;;  %v1778_v1 = vunpack.c.l.b16 %v5279_v13  ;;  %v1059_v13 = vunpack.c.h.bf16 %v807_v8  ;;  %3152 = vmatmul.msk.bf16.vlgmr.msra.gmra.mxu3 %vm2073_vm3, %v4339_v20  ;;  %v2270_v54 = vpop.f32.mrf.mxu1  ;;  %v991_v17 = vpack.i.b16 %v5844_v2, %v5844_v2  ;;  %v1513_v4 = vpack.i.b16 %v1512_v31, %v1512_v31 }
 0x1cc   : > { %2729 = vmatpush.bf16.msra.mxu0 %v5330_v14  ;;  %2652 = vmatpush.bf16.msrb.mxu3 %v5824_v3  ;;  %v1181_v37 = vpack.c.bf16 %v1128_v40, %v1127_v58  ;;  %v1509_v58 = vpack.i.b16 %v1508_v7, %v1508_v7  ;;  %v1268_v40 = vpop.permute.xlu1 %1267 }
 0x1cd   : > { %2680 = vmatpush.bf16.msrb.mxu1 %v5204_v0  ;;  %v5369_v55 = vpack.c.b16 %v1810_v18, %v1778_v1  ;;  %v1161_v42 = vmul.f32 %v1093_v44, %v1059_v13  ;;  %v1971_v0 = vunpack.c.h.b16 %v5297_v5  ;;  %v5843_v44 = vld [vmem:[#allocation73_spill] sm:$0xff]  ;;  %v994_v13 = vpack.i.b16 %v5845_v46, %v5845_v46 }
 0x1ce   : > { %2605 = vmatmul.bf16.vlgmr.msra.gmra.mxu2 %v4401_v56  ;;  %v1781_v8 = vunpack.c.h.b16 %v1181_v37  ;;  %v1780_v19 = vunpack.c.l.b16 %v1181_v37  ;;  %v1515_v10 = vperm.slane %v1513_v4, 0  ;;  %v1339_v37 = vsel %vm1269_vm2, %v1268_v40, %v5847_v52 }
 0x1cf   : > { %2669 = vmatpush.bf16.msrb.mxu2 %v5313_v24  ;;  %3155 = vmatmul.msk.bf16.vlgmr.msrb.gmra.mxu0 %vm2073_vm3, %v4339_v20  ;;  %v1198_v49 = vpack.c.bf16 %v1162_v12, %v1161_v42  ;;  %v996_v54 = vperm.slane %v994_v13, 0  ;;  %v811_v42 = vsel %vm779_vm1, %v5095_v41, %v778_v33  ;;  %v1302_v41 = vsel %vm1269_vm2, %v5130_v27, %v1268_v40 }
 0x1d0   : > { %2730 = vmatpush.bf16.msra.mxu0 %v5840_v61  ;;  %2653 = vmatpush.bf16.msrb.mxu3 %v5185_v47  ;;  %v1617_v27 = vunpack.c.l.bf16 %v1515_v10 }
 0x1d1   : > { %2681 = vmatpush.bf16.msrb.mxu1 %v5824_v3  ;;  %v2255_v15 = vpop.f32.mrf.mxu2  ;;  %v5388_v3 = vpack.c.b16 %v1971_v0, %v1939_v26  ;;  %v1813_v16 = vunpack.c.h.b16 %v1198_v49  ;;  %v1812_v1 = vunpack.c.l.b16 %v1198_v49  ;;  %v5846_v26 = vld [vmem:[#allocation69_spill] sm:$0xff]  ;;  %v1029_v49 = vunpack.c.l.bf16 %v811_v42 }
 0x1d2   : > { %v2320_v25 = vpop.f32.mrf.mxu0  ;;  %v812_v0 = vsel %vm779_vm1, %v778_v33, %v5846_v26 }
 0x1d3   : > { %2701 = vmatpush.bf16.msra.mxu2 %v5840_v61  ;;  %v2333_v5 = vpop.f32.mrf.mxu1 }
 0x1d4   : > { %2731 = vmatpush.bf16.msra.mxu0 %v5369_v55  ;;  %2654 = vmatpush.bf16.msrb.mxu3 %v5198_v34  ;;  %v2242_v62 = vpop.f32.mrf.mxu3  ;;  %v5392_v34 = vpack.c.b16 %v1975_v36, %v1943_v48 }
 0x1d5   : > { %v2243_v43 = vadd.f32 %v2242_v62, %v5173_v11  ;;  %2682 = vmatpush.bf16.msrb.mxu1 %v5185_v47 }
 0x1d7   : > { %2702 = vmatpush.bf16.msra.mxu2 %v5369_v55  ;;  %v2256_v29 = vadd.f32 %v2255_v15, %v2243_v43  ;;  %v1098_v15 = vunpack.c.l.bf16 %v996_v54 }
 0x1d8   : > { %2732 = vmatpush.bf16.msra.mxu0 %v5292_v51  ;;  %2655 = vmatpush.bf16.msrb.mxu3 %v5827_v9  ;;  %v5841_v9 = vld [vmem:[#allocation71_spill] sm:$0xff] }
 0x1d9   : > { %2747 = vmatpush.bf16.msra.mxu1 %v5388_v3  ;;  %2915 = vst [vmem:[%s5210_s12 + $0x30] sm:$0xff] %v2256_v29  ;;  %v2257_v35 = vpop.f32.mrf.mxu2  ;;  %v1030_v29 = vunpack.c.l.bf16 %v812_v0 }
 0x1da   : > { %2683 = vmatmul.bf16.vlgmr.msrb.gmra.mxu1 %v4401_v56  ;;  %v2322_v18 = vpop.f32.mrf.mxu0 }
 0x1db   : > { %2703 = vmatpush.bf16.msra.mxu2 %v5292_v51  ;;  %v2321_v51 = vadd.f32 %v2320_v25, %v5173_v11  ;;  %v2335_v57 = vpop.f32.mrf.mxu1  ;;  %v1132_v35 = vmul.f32 %v1098_v15, %v1030_v29 }
 0x1dc   : > { %2733 = vmatpush.bf16.msra.mxu0 %v5834_v38  ;;  %2656 = vmatpush.bf16.msrb.mxu3 %v5241_v21  ;;  %v2244_v45 = vpop.f32.mrf.mxu3  ;;  %v5842_v21 = vld [vmem:[#allocation70_spill] sm:$0xff] }
 0x1dd   : > { %v2334_v47 = vadd.f32 %v2333_v5, %v2321_v51  ;;  %2779 = vmatpush.bf16.msrb.mxu1 %v5841_v9  ;;  %v1063_v51 = vunpack.c.h.bf16 %v811_v42  ;;  %v1064_v5 = vunpack.c.h.bf16 %v812_v0  ;;  %v1582_v45 = vunpack.c.h.bf16 %v1302_v41 }
 0x1de   : > { %3154 = vmatmul.msk.bf16.vlgmr.msrb.gmra.mxu2 %vm2073_vm3, %v4339_v20 }
 0x1df   : > { %2704 = vmatpush.bf16.msra.mxu2 %v5834_v38  ;;  %2918 = vst [vmem:[%s5210_s12 + $0x48] sm:$0xff] %v2334_v47  ;;  %v5406_v38 = vpack.c.b16 %v1813_v16, %v1781_v8  ;;  %2657 = vmatmul.bf16.vlgmr.msrb.gmra.mxu3 %v4401_v56  ;;  %v1549_v8 = vunpack.c.l.bf16 %v1339_v37  ;;  %v1583_v16 = vunpack.c.h.bf16 %v1339_v37  ;;  %v1548_v47 = vunpack.c.l.bf16 %v1302_v41  ;;  %v5850_v41 = vld [vmem:[#allocation74_spill] sm:$0xff] }
 0x1e0   : > { %2721 = vmatpush.bf16.msra.mxu3 %v5330_v14  ;;  %2734 = vmatpush.bf16.msra.mxu0 %v5230_v59  ;;  %v1166_v7 = vmul.f32 %v1098_v15, %v1064_v5 }
 0x1e1   : > { %2780 = vmatpush.bf16.msrb.mxu1 %v5406_v38  ;;  %v1651_v46 = vmul.f32 %v1617_v27, %v1549_v8  ;;  %v1685_v13 = vmul.f32 %v1617_v27, %v1583_v16 }
 0x1e2   : > { %v2385_v36 = vpop.f32.mrf.mxu0 }
 0x1e3   : > { %2705 = vmatpush.bf16.msra.mxu2 %v5230_v59  ;;  %2735 = vmatmul.bf16.vlgmr.msra.gmra.mxu0 %v4401_v56  ;;  %v5417_v59 = vpack.c.b16 %v1812_v1, %v1780_v19 }
 0x1e4   : > { %2799 = vmatpush.bf16.msrb.mxu0 %v5307_v63  ;;  %2753 = vmatpush.bf16.msrb.mxu3 %v5842_v21  ;;  %v2307_v12 = vpop.f32.mrf.mxu3 }
 0x1e5   : > { %2781 = vmatpush.bf16.msrb.mxu1 %v5318_v53  ;;  %v2294_v48 = vpop.f32.mrf.mxu2 }
 0x1e6   : > { %v2295_v62 = vadd.f32 %v2294_v48, %v5173_v11 }
 0x1e7   : > { %2706 = vmatpush.bf16.msra.mxu2 %v5313_v24  ;;  %v993_v24 = vperm.slane %v991_v17, 0  ;;  %v2372_v50 = vpop.f32.mrf.mxu1 }
 0x1e8   : > { %2831 = vmatpush.bf16.msra.mxu0 %v5843_v44  ;;  %2754 = vmatpush.bf16.msrb.mxu3 %v5417_v59  ;;  %v2308_v25 = vadd.f32 %v2307_v12, %v2295_v62  ;;  %v2373_v19 = vadd.f32 %v2372_v50, %v5173_v11 }
 0x1e9   : > { %2782 = vmatpush.bf16.msrb.mxu1 %v5842_v21  ;;  %v1097_v43 = vunpack.c.l.bf16 %v993_v24 }
 0x1ea   : > { %3157 = vmatmul.msk.bf16.vlgmr.msra.gmra.mxu1 %vm2073_vm3, %v4339_v20  ;;  %2917 = vst [vmem:[%s5210_s12 + $0x40] sm:$0xff] %v2308_v25  ;;  %v2386_v2 = vadd.f32 %v2385_v36, %v2373_v19  ;;  %v2387_v17 = vpop.f32.mrf.mxu0 }
 0x1eb   : > { %2707 = vmatpush.bf16.msra.mxu2 %v5835_v39  ;;  %v1511_v39 = vperm.slane %v1509_v58, 0  ;;  %v1131_v1 = vmul.f32 %v1097_v43, %v1029_v49  ;;  %v1165_v31 = vmul.f32 %v1097_v43, %v1063_v51 }
 0x1ec   : > { %2832 = vmatpush.bf16.msra.mxu0 %v5348_v6  ;;  %2755 = vmatpush.bf16.msrb.mxu3 %v5388_v3  ;;  %v2309_v18 = vpop.f32.mrf.mxu3  ;;  %2920 = vst [vmem:[%s5210_s12 + $0x58] sm:$0xff] %v2386_v2 }
 0x1ed   : > { %2783 = vmatpush.bf16.msrb.mxu1 %v5417_v59  ;;  %v2296_v57 = vpop.f32.mrf.mxu2  ;;  %v1200_v58 = vpack.c.bf16 %v1166_v7, %v1165_v31 }
 0x1ef   : > { %2708 = vmatpush.bf16.msra.mxu2 %v5237_v32  ;;  %v1616_v32 = vunpack.c.l.bf16 %v1511_v39  ;;  %3156 = vmatmul.msk.bf16.vlgmr.msra.gmra.mxu3 %vm2073_vm3, %v4339_v20  ;;  %v2374_v54 = vpop.f32.mrf.mxu1  ;;  %v2043_v62 = vunpack.c.l.b16 %v1200_v58 }
 0x1f0   : > { %2833 = vmatpush.bf16.msra.mxu0 %v5363_v28  ;;  %2756 = vmatpush.bf16.msrb.mxu3 %v5836_v30 }
 0x1f1   : > { %2784 = vmatpush.bf16.msrb.mxu1 %v5388_v3  ;;  %v1650_v33 = vmul.f32 %v1616_v32, %v1548_v47  ;;  %v1684_v4 = vmul.f32 %v1616_v32, %v1582_v45  ;;  %v1183_v3 = vpack.c.bf16 %v1132_v35, %v1131_v1 }
 0x1f2   : > { %2709 = vmatmul.bf16.vlgmr.msra.gmra.mxu2 %v4401_v56 }
 0x1f3   : > { %2773 = vmatpush.bf16.msrb.mxu2 %v5318_v53  ;;  %3159 = vmatmul.msk.bf16.vlgmr.msrb.gmra.mxu0 %vm2073_vm3, %v4339_v20  ;;  %v1702_v40 = vpack.c.bf16 %v1651_v46, %v1650_v33  ;;  %v1719_v24 = vpack.c.bf16 %v1685_v13, %v1684_v4  ;;  %v2042_v39 = vunpack.c.l.b16 %v1183_v3 }
 0x1f4   : > { %2834 = vmatpush.bf16.msra.mxu0 %v5848_v60  ;;  %2757 = vmatpush.bf16.msrb.mxu3 %v5322_v22 }
 0x1f5   : > { %2785 = vmatpush.bf16.msrb.mxu1 %v5836_v30  ;;  %v2359_v42 = vpop.f32.mrf.mxu2  ;;  %v2056_v12 = vunpack.c.h.b16 %v1702_v40  ;;  %v2057_v26 = vunpack.c.h.b16 %v1719_v24  ;;  %v2052_v30 = vunpack.c.h.b16 %v1183_v3  ;;  %v2048_v52 = vunpack.c.l.b16 %v1702_v40 }
 0x1f6   : > { %v2049_v37 = vunpack.c.l.b16 %v1719_v24 }
 0x1f7   : > { %2805 = vmatpush.bf16.msra.mxu2 %v5848_v60  ;;  %v2437_v49 = vpop.f32.mrf.mxu1 }
 0x1f8   : > { %2835 = vmatpush.bf16.msra.mxu0 %v5386_v23  ;;  %2758 = vmatpush.bf16.msrb.mxu3 %v5330_v14  ;;  %v2053_v14 = vunpack.c.h.b16 %v1200_v58  ;;  %v2346_v0 = vpop.f32.mrf.mxu3  ;;  %v2050_v29 = vpack.c.b16 %v2049_v37, %v2048_v52 }
 0x1f9   : > { %2786 = vmatpush.bf16.msrb.mxu1 %v5322_v22  ;;  %v2347_v48 = vadd.f32 %v2346_v0, %v5173_v11 }
 0x1fa   : > { %v2054_v10 = vpack.c.b16 %v2053_v14, %v2052_v30 }
 0x1fb   : > { %2806 = vmatpush.bf16.msra.mxu2 %v5386_v23  ;;  %v2360_v36 = vadd.f32 %v2359_v42, %v2347_v48 }
 0x1fc   : > { %2836 = vmatpush.bf16.msra.mxu0 %v5307_v63  ;;  %2759 = vmatpush.bf16.msrb.mxu3 %v5840_v61  ;;  %v5849_v61 = vld [vmem:[#allocation24_spill] sm:$0xff] }
 0x1fd   : > { %2851 = vmatpush.bf16.msra.mxu1 %v5392_v34  ;;  %2919 = vst [vmem:[%s5210_s12 + $0x50] sm:$0xff] %v2360_v36  ;;  %v2361_v43 = vpop.f32.mrf.mxu2 }
 0x1fe   : > { %2787 = vmatmul.bf16.vlgmr.msrb.gmra.mxu1 %v4401_v56 }
 0x1ff   : > { %2807 = vmatpush.bf16.msra.mxu2 %v5307_v63  ;;  %v2424_v63 = vpop.f32.mrf.mxu0  ;;  %v2439_v51 = vpop.f32.mrf.mxu1 }
 0x200   : > { %2837 = vmatpush.bf16.msra.mxu0 %v5841_v9  ;;  %v2425_v22 = vadd.f32 %v2424_v63, %v5173_v11  ;;  %2760 = vmatpush.bf16.msrb.mxu3 %v5369_v55  ;;  %v2348_v15 = vpop.f32.mrf.mxu3 }
 0x201   : > { %2883 = vmatpush.bf16.msrb.mxu1 %v5849_v61 }
 0x202   : > { %3158 = vmatmul.msk.bf16.vlgmr.msrb.gmra.mxu2 %vm2073_vm3, %v4339_v20  ;;  %v2438_v55 = vadd.f32 %v2437_v49, %v2425_v22 }
 0x203   : > { %2808 = vmatpush.bf16.msra.mxu2 %v5841_v9  ;;  %v2058_v9 = vpack.c.b16 %v2057_v26, %v2056_v12  ;;  %2761 = vmatmul.bf16.vlgmr.msrb.gmra.mxu3 %v4401_v56 }
 0x204   : > { %2825 = vmatpush.bf16.msra.mxu3 %v5363_v28  ;;  %2838 = vmatpush.bf16.msra.mxu0 %v5406_v38  ;;  %2922 = vst [vmem:[%s5210_s12 + $0x68] sm:$0xff] %v2438_v55 }
 0x205   : > { %2884 = vmatpush.bf16.msrb.mxu1 %v2054_v10 }
 0x207   : > { %2809 = vmatpush.bf16.msra.mxu2 %v5406_v38  ;;  %2839 = vmatmul.bf16.vlgmr.msra.gmra.mxu0 %v4401_v56  ;;  %v2044_v38 = vpack.c.b16 %v2043_v62, %v2042_v39  ;;  %v2426_v25 = vpop.f32.mrf.mxu0 }
 0x208   : > { %2903 = vmatpush.bf16.msrb.mxu0 %v2058_v9  ;;  %2857 = vmatpush.bf16.msrb.mxu3 %v5850_v41  ;;  %v2411_v5 = vpop.f32.mrf.mxu3 }
 0x209   : > { %2885 = vmatpush.bf16.msrb.mxu1 %v2050_v29  ;;  %v2398_v8 = vpop.f32.mrf.mxu2 }
 0x20b   : > { %2810 = vmatpush.bf16.msra.mxu2 %v5318_v53  ;;  %v2399_v53 = vadd.f32 %v2398_v8, %v5173_v11 }
 0x20c   : > { %2858 = vmatpush.bf16.msrb.mxu3 %v2044_v38 }
 0x20d   : > { %2886 = vmatpush.bf16.msrb.mxu1 %v5850_v41 }
 0x20e   : > { %3161 = vmatmul.msk.bf16.vlgmr.msra.gmra.mxu1 %vm2073_vm3, %v4339_v20 }
 0x20f   : > { %2811 = vmatpush.bf16.msra.mxu2 %v5842_v21  ;;  %v2489_v16 = vpop.f32.mrf.mxu0  ;;  %v2412_v21 = vadd.f32 %v2411_v5, %v2399_v53 }
 0x210   : > { %2859 = vmatpush.bf16.msrb.mxu3 %v5392_v34  ;;  %v2413_v27 = vpop.f32.mrf.mxu3 }
 0x211   : > { %2887 = vmatpush.bf16.msrb.mxu1 %v2044_v38  ;;  %2921 = vst [vmem:[%s5210_s12 + $0x60] sm:$0xff] %v2412_v21  ;;  %v2400_v47 = vpop.f32.mrf.mxu2 }
 0x213   : > { %2812 = vmatpush.bf16.msra.mxu2 %v5417_v59  ;;  %3160 = vmatmul.msk.bf16.vlgmr.msra.gmra.mxu3 %vm2073_vm3, %v4339_v20  ;;  %v2476_v59 = vpop.f32.mrf.mxu1 }
 0x214   : > { %2860 = vmatpush.bf16.msrb.mxu3 %v5843_v44  ;;  %v2477_v32 = vadd.f32 %v2476_v59, %v5173_v11 }
 0x215   : > { %2888 = vmatpush.bf16.msrb.mxu1 %v5392_v34 }
 0x216   : > { %2813 = vmatmul.bf16.vlgmr.msra.gmra.mxu2 %v4401_v56  ;;  %v2490_v45 = vadd.f32 %v2489_v16, %v2477_v32 }
 0x217   : > { %2877 = vmatpush.bf16.msrb.mxu2 %v2050_v29  ;;  %3163 = vmatmul.msk.bf16.vlgmr.msrb.gmra.mxu0 %vm2073_vm3, %v4339_v20  ;;  %v2491_v50 = vpop.f32.mrf.mxu0 }
 0x218   : > { %2861 = vmatpush.bf16.msrb.mxu3 %v5348_v6  ;;  %2924 = vst [vmem:[%s5210_s12 + $0x78] sm:$0xff] %v2490_v45 }
 0x219   : > { %2889 = vmatpush.bf16.msrb.mxu1 %v5843_v44  ;;  %v2463_v19 = vpop.f32.mrf.mxu2 }
 0x21b   : > { %v2478_v34 = vpop.f32.mrf.mxu1 }
 0x21c   : > { %2862 = vmatpush.bf16.msrb.mxu3 %v5363_v28  ;;  %v2450_v1 = vpop.f32.mrf.mxu3 }
 0x21d   : > { %2890 = vmatpush.bf16.msrb.mxu1 %v5348_v6  ;;  %v2451_v44 = vadd.f32 %v2450_v1, %v5173_v11 }
 0x21f   : > { %v2528_v28 = vpop.f32.mrf.mxu0  ;;  %v2464_v6 = vadd.f32 %v2463_v19, %v2451_v44 }
 0x220   : > { %2863 = vmatpush.bf16.msrb.mxu3 %v5848_v60  ;;  %2891 = vmatmul.bf16.vlgmr.msrb.gmra.mxu1 %v4401_v56  ;;  %v2529_v60 = vadd.f32 %v2528_v28, %v5173_v11 }
 0x221   : > { %2923 = vst [vmem:[%s5210_s12 + $0x70] sm:$0xff] %v2464_v6  ;;  %v2465_v31 = vpop.f32.mrf.mxu2 }
 0x223   : > { %v2541_v35 = vpop.f32.mrf.mxu1 }
 0x224   : > { %2864 = vmatpush.bf16.msrb.mxu3 %v5386_v23  ;;  %v2542_v18 = vadd.f32 %v2541_v35, %v2529_v60  ;;  %v2452_v23 = vpop.f32.mrf.mxu3 }
 0x226   : > { %3162 = vmatmul.msk.bf16.vlgmr.msrb.gmra.mxu2 %vm2073_vm3, %v4339_v20  ;;  %2926 = vst [vmem:[%s5210_s12 + $0x88] sm:$0xff] %v2542_v18 }
 0x227   : > { %2865 = vmatmul.bf16.vlgmr.msrb.gmra.mxu3 %v4401_v56  ;;  %v2530_v7 = vpop.f32.mrf.mxu0 }
 0x22b   : > { %v2543_v57 = vpop.f32.mrf.mxu1 }
 0x22c   : > { %v2515_v2 = vpop.f32.mrf.mxu3 }
 0x22d   : > { %v2502_v20 = vpop.f32.mrf.mxu2 }
 0x22e   : > { %v2503_v17 = vadd.f32 %v2502_v20, %v5173_v11 }
 0x22f   : > { %v2593_v46 = vpop.f32.mrf.mxu0 }
 0x230   : > { %v2516_v13 = vadd.f32 %v2515_v2, %v2503_v17 }
 0x232   : > { %2925 = vst [vmem:[%s5210_s12 + $0x80] sm:$0xff] %v2516_v13 }
 0x233   : > { %v2580_v3 = vpop.f32.mrf.mxu1 }
 0x234   : > { %v2517_v56 = vpop.f32.mrf.mxu3  ;;  %v2581_v58 = vadd.f32 %v2580_v3, %v5173_v11 }
 0x235   : > { %v2504_v33 = vpop.f32.mrf.mxu2 }
 0x236   : > { %v2594_v40 = vadd.f32 %v2593_v46, %v2581_v58 }
 0x237   : > { %v2595_v4 = vpop.f32.mrf.mxu0 }
 0x238   : > { %2928 = vst [vmem:[%s5210_s12 + $0x98] sm:$0xff] %v2594_v40 }
 0x23b   : > { %v2582_v42 = vpop.f32.mrf.mxu1 }
 0x23d   : > { %v2567_v24 = vpop.f32.mrf.mxu2 }
 0x23e   : > { %v2554_v12 = vpop.f32.mrf.mxu3 }
 0x23f   : > { %v2632_v54 = vpop.f32.mrf.mxu0  ;;  %v2555_v26 = vadd.f32 %v2554_v12, %v5173_v11 }
 0x240   : > { %v2633_v0 = vadd.f32 %v2632_v54, %v5173_v11 }
 0x241   : > { %v2568_v30 = vadd.f32 %v2567_v24, %v2555_v26 }
 0x243   : > { %2927 = vst [vmem:[%s5210_s12 + $0x90] sm:$0xff] %v2568_v30  ;;  %v2645_v63 = vpop.f32.mrf.mxu1 }
 0x244   : > { %v2646_v22 = vadd.f32 %v2645_v63, %v2633_v0 }
 0x245   : > { %v2569_v14 = vpop.f32.mrf.mxu2 }
 0x246   : > { %v2556_v61 = vpop.f32.mrf.mxu3  ;;  %2930 = vst [vmem:[%s5210_s12 + $0xa8] sm:$0xff] %v2646_v22 }
 0x247   : > { %v2634_v48 = vpop.f32.mrf.mxu0 }
 0x24b   : > { %v2647_v9 = vpop.f32.mrf.mxu1 }
 0x24e   : > { %v2619_v37 = vpop.f32.mrf.mxu3 }
 0x24f   : > { %v2697_v36 = vpop.f32.mrf.mxu0 }
 0x251   : > { %v2606_v10 = vpop.f32.mrf.mxu2 }
 0x252   : > { %v2607_v52 = vadd.f32 %v2606_v10, %v5173_v11 }
 0x254   : > { %v2620_v39 = vadd.f32 %v2619_v37, %v2607_v52 }
 0x256   : > { %2929 = vst [vmem:[%s5210_s12 + $0xa0] sm:$0xff] %v2620_v39  ;;  %v2621_v43 = vpop.f32.mrf.mxu3 }
 0x257   : > { %v2699_v62 = vpop.f32.mrf.mxu0  ;;  %v2684_v55 = vpop.f32.mrf.mxu1 }
 0x258   : > { %v2685_v41 = vadd.f32 %v2684_v55, %v5173_v11 }
 0x259   : > { %v2608_v49 = vpop.f32.mrf.mxu2 }
 0x25a   : > { %v2698_v15 = vadd.f32 %v2697_v36, %v2685_v41 }
 0x25c   : > { %2932 = vst [vmem:[%s5210_s12 + $0xb8] sm:$0xff] %v2698_v15 }
 0x25f   : > { %v2686_v25 = vpop.f32.mrf.mxu1 }
 0x260   : > { %v2736_v29 = vpop.f32.mrf.mxu0 }
 0x261   : > { %v2671_v38 = vpop.f32.mrf.mxu2  ;;  %v2737_v53 = vadd.f32 %v2736_v29, %v5173_v11 }
 0x262   : > { %v2658_v51 = vpop.f32.mrf.mxu3 }
 0x263   : > { %v2659_v5 = vadd.f32 %v2658_v51, %v5173_v11 }
 0x265   : > { %v2672_v8 = vadd.f32 %v2671_v38, %v2659_v5 }
 0x267   : > { %2931 = vst [vmem:[%s5210_s12 + $0xb0] sm:$0xff] %v2672_v8  ;;  %v2749_v59 = vpop.f32.mrf.mxu1 }
 0x268   : > { %v2738_v16 = vpop.f32.mrf.mxu0  ;;  %v2750_v27 = vadd.f32 %v2749_v59, %v2737_v53 }
 0x269   : > { %v2673_v21 = vpop.f32.mrf.mxu2 }
 0x26a   : > { %v2660_v32 = vpop.f32.mrf.mxu3  ;;  %2934 = vst [vmem:[%s5210_s12 + $0xc8] sm:$0xff] %v2750_v27 }
 0x26f   : > { %v2751_v50 = vpop.f32.mrf.mxu1 }
 0x270   : > { %v2801_v47 = vpop.f32.mrf.mxu0 }
 0x272   : > { %v2723_v19 = vpop.f32.mrf.mxu3 }
 0x275   : > { %v2710_v45 = vpop.f32.mrf.mxu2 }
 0x276   : > { %v2711_v34 = vadd.f32 %v2710_v45, %v5173_v11 }
 0x278   : > { %v2724_v1 = vadd.f32 %v2723_v19, %v2711_v34  ;;  %v2803_v44 = vpop.f32.mrf.mxu0 }
 0x27a   : > { %2933 = vst [vmem:[%s5210_s12 + $0xc0] sm:$0xff] %v2724_v1  ;;  %v2725_v35 = vpop.f32.mrf.mxu3 }
 0x27b   : > { %v2788_v6 = vpop.f32.mrf.mxu1 }
 0x27c   : > { %v2789_v60 = vadd.f32 %v2788_v6, %v5173_v11 }
 0x27d   : > { %v2712_v28 = vpop.f32.mrf.mxu2 }
 0x27e   : > { %v2802_v18 = vadd.f32 %v2801_v47, %v2789_v60 }
 0x280   : > { %2936 = vst [vmem:[%s5210_s12 + $0xd8] sm:$0xff] %v2802_v18 }
 0x283   : > { %v2790_v7 = vpop.f32.mrf.mxu1 }
 0x284   : > { %v2840_v31 = vpop.f32.mrf.mxu0 }
 0x285   : > { %v2775_v23 = vpop.f32.mrf.mxu2  ;;  %v2841_v17 = vadd.f32 %v2840_v31, %v5173_v11 }
 0x286   : > { %v2762_v57 = vpop.f32.mrf.mxu3 }
 0x287   : > { %v2763_v2 = vadd.f32 %v2762_v57, %v5173_v11 }
 0x289   : > { %v2776_v20 = vadd.f32 %v2775_v23, %v2763_v2 }
 0x28b   : > { %2935 = vst [vmem:[%s5210_s12 + $0xd0] sm:$0xff] %v2776_v20  ;;  %v2853_v56 = vpop.f32.mrf.mxu1 }
 0x28c   : > { %v2842_v46 = vpop.f32.mrf.mxu0  ;;  %v2854_v33 = vadd.f32 %v2853_v56, %v2841_v17 }
 0x28d   : > { %v2777_v13 = vpop.f32.mrf.mxu2 }
 0x28e   : > { %v2764_v4 = vpop.f32.mrf.mxu3  ;;  %2938 = vst [vmem:[%s5210_s12 + $0xe8] sm:$0xff] %v2854_v33 }
 0x293   : > { %v2855_v40 = vpop.f32.mrf.mxu1 }
 0x294   : > { %v2905_v3 = vpop.f32.mrf.mxu0 }
 0x296   : > { %v2827_v54 = vpop.f32.mrf.mxu3 }
 0x299   : > { %v2814_v58 = vpop.f32.mrf.mxu2 }
 0x29a   : > { %v2815_v24 = vadd.f32 %v2814_v58, %v5173_v11 }
 0x29c   : > { %v2828_v42 = vadd.f32 %v2827_v54, %v2815_v24  ;;  %v2907_v12 = vpop.f32.mrf.mxu0 }
 0x29d   : > { %v2892_v30 = vpop.f32.mrf.mxu1 }
 0x29e   : > { %2937 = vst [vmem:[%s5210_s12 + $0xe0] sm:$0xff] %v2828_v42  ;;  %v2893_v14 = vadd.f32 %v2892_v30, %v5173_v11  ;;  %v2829_v0 = vpop.f32.mrf.mxu3 }
 0x2a0   : > { %v2906_v48 = vadd.f32 %v2905_v3, %v2893_v14 }
 0x2a1   : > { %v2816_v26 = vpop.f32.mrf.mxu2 }
 0x2a2   : > { %2940 = vst [vmem:[%s5210_s12 + $0xf8] sm:$0xff] %v2906_v48 }
 0x2a5   : > { %v2894_v22 = vpop.f32.mrf.mxu1 }
 0x2a9   : > { %v2879_v63 = vpop.f32.mrf.mxu2 }
 0x2aa   : > { %v2866_v61 = vpop.f32.mrf.mxu3 }
 0x2ab   : > { %v2867_v36 = vadd.f32 %v2866_v61, %v5173_v11 }
 0x2ad   : > { %v2880_v10 = vadd.f32 %v2879_v63, %v2867_v36 }
 0x2af   : > { %2939 = vst [vmem:[%s5210_s12 + $0xf0] sm:$0xff] %v2880_v10 }
 0x2b1   : > { %v2881_v9 = vpop.f32.mrf.mxu2 }
 0x2b2   : > { %3462 = shalt.err (!%p3459_p8)
}
 0x2b3   : > { %3189 = dma.vmem_to_hbm [thread:$0]  (%p5854_p12), %s2958_s14, 4096, %s2960_s26, %s2942_s9   ;;  %v2868_v11 = vpop.f32.mrf.mxu3 }
 0x2b4 PF: > { %s5855_s5 = sld [smem:[#allocation20_spill]]  ;;  %s2971_s19 = sand.u32 1, %s3545_s24  }
 0x2b5   : > { %p5857_p11 = scmp.ge.s32.totalorder %s3577_s8, 2  ;;  %s2972_s6 = scalar_lea.sflag [#allocation4], %s2971_s19 }
 0x2ba   : > { %p5856_p9 = scmp.ne.s32.totalorder %s5855_s5, 0 }
 0x2bc   : > { %p3206_p13 = pnand %p5857_p11, %p5856_p9 }
 0x2be   : > { %p3207_p4 = pneg %p3206_p13 }
 0x2c0   : > { %3528 = dma.done.wait (%p3207_p4), %s2972_s6, 4096  }
 0x2c1   : > { %3530 = vsyncadd (%p3207_p4), %s2972_s6, 4294963200  ;;  %s26_s8 = sadd.s32 1, %s3577_s8   ;;  %s5858_s12 = sld [smem:[#allocation16_spill]] }
 0x2c2   : > { %p23_p1 = scmp.ge.s32.totalorder %s26_s8, 4   ;;  %s5859_s26 = sld [smem:[#allocation21_spill]] }
 0x2c3   : > { %s5860_s18 = sld [smem:[#allocation22_spill]]  ;;  %s5863_s21 = smov %s3537_s22 }
 0x2c4   : > { %s5861_s30 = sld [smem:[#allocation17_spill]]  ;;  %s5864_s22 = smov %s3541_s23 }
 0x2c5   : > { %s5862_s7 = sld [smem:[#allocation18_spill]]  ;;  %s5865_s23 = smov %s3799_s17 }
 0x2c6   : > { %s5866_s24 = smov %s3549_s25  ;;  %s5868_s27 = smov %s3561_s28 }
 0x2c7   : > { %s5867_s25 = smov %s5858_s12  ;;  %s5869_s28 = smov %s3565_s29 }
 0x2c8   :  { %25 = sbr.rel (!%p23_p1) target bundleno = 18 (0x12), region = 117 }
 0x2c9   : > { %s5870_s29 = smov %s5860_s18 }
 0x2cd   :  { %2978 = vsyncpa [#allocation3], 1 }
 0x2ce   :  { %2980 = vsyncpa [#allocation3 + $0x1], 1 }
 0x2cf   :  { %2981 = vsyncpa [#allocation6], 1 }
 0x2d0   :  { %2983 = vsyncpa [#allocation6 + $0x1], 1 }
 0x2d1   :  { %2984 = vsyncpa [#allocation9], 1 }
 0x2d2   :  { %2985 = vsyncpa [#allocation4], 1 }
 0x2d3   :  { %2987 = vsyncpa [#allocation4 + $0x1], 1 }

</bundles_post_ra>
